<compile_context>
chip_gen: v7x
topology: tpu7x:2x2x1
jax: 0.10.0
libtpu: 0.0.40
codegen_flags: <defaults>
</compile_context>

<pallas_src>
import functools

import jax
import jax.numpy as jnp
from jax.experimental import pallas as pl
from jax.experimental.pallas import tpu as pltpu


SQUARE_KERNEL_SIZE = 3
BAND_KERNEL_SIZE = 11
BRANCH_RATIO = 0.125


# ------------------------------ fused Pallas kernel ------------------------------

def _inception_dw_kernel(x_ref, w_ref, b_ref, o_ref, xp_ref, *,
                         offsets, H, W, PAD, LPAD_W, n_id, TILE_H):
    """Fused inception depthwise conv on one (1, H, W, C) batch block (NHWC).

    x_ref : (1, H, W, C)                       input block
    w_ref : (num_taps, Cc)                     per-channel tap weights, conv channels only
    b_ref : (1, Cc)                            per-channel bias, conv channels only
    o_ref : (1, H, W, C)                       output block
    xp_ref: (1, H+2*PAD, LPAD_W+W+PAD, Cc)     VMEM scratch: zero-padded conv-channel slab
    """
    Cc = w_ref.shape[-1]                       # 3*gc conv-branch channels
    Wp = LPAD_W + W + PAD
    n_tiles = H // TILE_H
    col0 = LPAD_W - PAD
    zdt = xp_ref.dtype

    # (1) Zero ONLY the halo border strips. Done every grid step (cheap) so it stays correct
    #     when grid steps are sharded across TensorCores (v7x megacore).
    xp_ref[:, :PAD, :, :] = jnp.zeros((1, PAD, Wp, Cc), zdt)
    xp_ref[:, PAD + H:, :, :] = jnp.zeros((1, PAD, Wp, Cc), zdt)
    xp_ref[:, PAD:PAD + H, :LPAD_W, :] = jnp.zeros((1, H, LPAD_W, Cc), zdt)
    xp_ref[:, PAD:PAD + H, LPAD_W + W:, :] = jnp.zeros((1, H, PAD, Cc), zdt)

    # (2) Fill the scratch interior with the conv-branch channels, row-tile-wise
    #     (keeps live ranges bounded instead of one whole-plane copy value).
    @pl.loop(0, n_tiles, unroll=True)
    def _fill(t):
        r0 = pl.multiple_of(t * TILE_H, TILE_H)
        xp_ref[:, pl.ds(PAD + r0, TILE_H), LPAD_W:LPAD_W + W, :] = (
            x_ref[:, pl.ds(r0, TILE_H), :, n_id:].astype(zdt))

    # (3) Row-tiled compute: identity channels copied through, conv channels accumulated
    #     over the static 25-tap union; one lane-dense full-C store per tile.
    @pl.loop(0, n_tiles, unroll=True)
    def _compute(t):
        r0 = pl.multiple_of(t * TILE_H, TILE_H)
        acc = jnp.zeros((1, TILE_H, W, Cc), jnp.float32)
        for kk, (di, dj) in enumerate(offsets):                # static unroll (25 taps)
            win = xp_ref[:, pl.ds(di + r0, TILE_H), col0 + dj:col0 + dj + W, :]
            tap = w_ref[kk, :].astype(jnp.float32).reshape(1, 1, 1, Cc)
            acc = acc + win.astype(jnp.float32) * tap
        acc = acc + b_ref[...].astype(jnp.float32).reshape(1, 1, 1, Cc)
        conv_out = acc.astype(o_ref.dtype)
        if n_id > 0:
            x_id = x_ref[:, pl.ds(r0, TILE_H), :, :n_id]        # identity passthrough
            out_tile = jnp.concatenate([x_id, conv_out], axis=-1)
        else:
            out_tile = conv_out
        o_ref[:, pl.ds(r0, TILE_H), :, :] = out_tile            # full-C lane-dense store


def inception_dwconv2d_nhwc(x, w_taps, bias, *, offsets, pad, n_id, tile_h=8):
    """Forward pass of InceptionDWConv2d, NHWC in / NHWC out (production path, no transposes)."""
    N, H, W, C = x.shape
    NT, Cc = w_taps.shape
    assert C == n_id + Cc, (C, n_id, Cc)

    tile_h = min(tile_h, H)
    while H % tile_h != 0:       # TODO(synk): handle non-divisible H via a ragged last tile
        tile_h -= 1
    lpad_w = ((pad + 7) // 8) * 8                              # sublane-aligned left halo

    kern = functools.partial(_inception_dw_kernel, offsets=tuple(offsets),
                             H=H, W=W, PAD=pad, LPAD_W=lpad_w, n_id=n_id, TILE_H=tile_h)

    itemsize = jnp.dtype(x.dtype).itemsize
    cost = pl.CostEstimate(
        flops=2 * NT * N * H * W * Cc,
        transcendentals=0,
        bytes_accessed=2 * N * H * W * C * itemsize + (w_taps.size + bias.size) * 4,
    )

    return pl.pallas_call(
        kern,
        out_shape=jax.ShapeDtypeStruct((N, H, W, C), x.dtype),
        grid=(N,),
        in_specs=[
            pl.BlockSpec((1, H, W, C), lambda n: (n, 0, 0, 0)),    # per-batch block
            pl.BlockSpec((NT, Cc), lambda n: (0, 0)),              # conv-slab tap weights
            pl.BlockSpec((1, Cc), lambda n: (0, 0)),               # conv-slab bias
        ],
        out_specs=pl.BlockSpec((1, H, W, C), lambda n: (n, 0, 0, 0)),
        scratch_shapes=[pltpu.VMEM((1, H + 2 * pad, lpad_w + W + pad, Cc), x.dtype)],
        compiler_params=pltpu.CompilerParams(dimension_semantics=("parallel",)),
        cost_estimate=cost,
    )(x, w_taps, bias)


def inception_dwconv2d_nchw(x_nchw, w_taps, bias, *, offsets, pad, n_id, tile_h=8):
    """NCHW wrapper for PyTorch interface parity only — production should stay NHWC
    end-to-end to avoid the two extra full-tensor HBM passes from the transposes."""
    x = jnp.transpose(x_nchw, (0, 2, 3, 1))
    y = inception_dwconv2d_nhwc(x, w_taps, bias, offsets=offsets, pad=pad,
                                n_id=n_id, tile_h=tile_h)
    return jnp.transpose(y, (0, 3, 1, 2))


# --------------------------- parameter prep (host side) ---------------------------

def init_params(key, in_chs):
    """Deterministic weights in simple layouts:
       dw_hw_w: (3, 3, gc)   dw_w_w: (11, gc)   dw_h_w: (11, gc)   biases: (gc,)"""
    gc = int(in_chs * BRANCH_RATIO)
    ks = jax.random.split(key, 6)

    def nrm(k, shape, std=0.02):
        return jax.random.normal(k, shape, jnp.float32) * std

    return dict(
        gc=gc,
        dw_hw_w=nrm(ks[0], (SQUARE_KERNEL_SIZE, SQUARE_KERNEL_SIZE, gc)),
        dw_hw_b=nrm(ks[1], (gc,)),
        dw_w_w=nrm(ks[2], (BAND_KERNEL_SIZE, gc)),
        dw_w_b=nrm(ks[3], (gc,)),
        dw_h_w=nrm(ks[4], (BAND_KERNEL_SIZE, gc)),
        dw_h_b=nrm(ks[5], (gc,)),
    )


def build_fused_taps(in_chs, p):
    """Assemble lane-dense per-channel tap weights for the CONV channels only
    (slab order [hw, w, h] matching x[:, :, :, n_id:] in NHWC).

    Returns (w_taps[num_taps, 3*gc], bias[1, 3*gc], offsets, pad, n_id)."""
    gc = p['gc']
    n_id = in_chs - 3 * gc
    ctr = BAND_KERNEL_SIZE // 2                                # 5
    off = ctr - SQUARE_KERNEL_SIZE // 2                        # 4

    # Static union of tap positions touched by any conv branch (25 of 121).
    offs = set()
    for i in range(SQUARE_KERNEL_SIZE):
        for j in range(SQUARE_KERNEL_SIZE):
            offs.add((off + i, off + j))
    for j in range(BAND_KERNEL_SIZE):
        offs.add((ctr, j))
    for i in range(BAND_KERNEL_SIZE):
        offs.add((i, ctr))
    offsets = tuple(sorted(offs))

    cc = 3 * gc
    taps = jnp.zeros((BAND_KERNEL_SIZE, BAND_KERNEL_SIZE, cc), jnp.float32)
    # 3x3 square branch, centered in the 11x11 grid
    taps = taps.at[off:off + SQUARE_KERNEL_SIZE,
                   off:off + SQUARE_KERNEL_SIZE, :gc].set(p['dw_hw_w'])
    # 1x11 horizontal band branch (center row)
    taps = taps.at[ctr, :, gc:2 * gc].set(p['dw_w_w'])
    # 11x1 vertical band branch (center column)
    taps = taps.at[:, ctr, 2 * gc:].set(p['dw_h_w'])

    w_taps = jnp.stack([taps[i, j, :] for (i, j) in offsets], axis=0)    # (NT, 3*gc)
    bias = jnp.concatenate([p['dw_hw_b'], p['dw_w_b'], p['dw_h_b']]).reshape(1, cc)
    return w_taps, bias, offsets, ctr, n_id


# ----------------------------- pure-JAX reference ---------------------------------

def reference_forward(x_nchw, p, in_chs):
    gc = p['gc']
    n_id = in_chs - 3 * gc
    pad_b = BAND_KERNEL_SIZE // 2
    pad_s = SQUARE_KERNEL_SIZE // 2
    x_id = x_nchw[:, :n_id]
    x_hw = x_nchw[:, n_id:n_id + gc]
    x_w = x_nchw[:, n_id + gc:n_id + 2 * gc]
    x_h = x_nchw[:, n_id + 2 * gc:]

    def dw(x, w_oihw, b, pad_hw):
        y = jax.lax.conv_general_dilated(
            x, w_oihw, window_strides=(1, 1), padding=pad_hw,
            dimension_numbers=('NCHW', 'OIHW', 'NCHW'),
            feature_group_count=x.shape[1])
        return y + b.reshape(1, -1, 1, 1)

    w_hw = jnp.transpose(p['dw_hw_w'], (2, 0, 1))[:, None]            # (gc,1,3,3)
    w_w = jnp.transpose(p['dw_w_w'], (1, 0))[:, None, None, :]        # (gc,1,1,11)
    w_h = jnp.transpose(p['dw_h_w'], (1, 0))[:, None, :, None]        # (gc,1,11,1)
    y_hw = dw(x_hw, w_hw, p['dw_hw_b'], [(pad_s, pad_s), (pad_s, pad_s)])
    y_w = dw(x_w, w_w, p['dw_w_b'], [(0, 0), (pad_b, pad_b)])
    y_h = dw(x_h, w_h, p['dw_h_b'], [(pad_b, pad_b), (0, 0)])
    return jnp.concatenate([x_id, y_hw, y_w, y_h], axis=1)


# ------------------------------------- main ---------------------------------------

if __name__ == "__main__":
    IN_CHS = 32                     # gc = int(32 * 0.125) = 4, identity = 20 channels
    N, H, W = 2, 16, 16

    key = jax.random.PRNGKey(0)
    k_params, k_x = jax.random.split(key)
    params = init_params(k_params, IN_CHS)
    x_nchw = jax.random.normal(k_x, (N, IN_CHS, H, W), jnp.float32)   # NCHW like PyTorch

    w_taps, bias, offsets, pad, n_id = build_fused_taps(IN_CHS, params)

    # Production path: NHWC end-to-end (no wrapper transposes around the kernel).
    fwd = jax.jit(functools.partial(inception_dwconv2d_nhwc,
                                    offsets=offsets, pad=pad, n_id=n_id))
    x_nhwc = jnp.transpose(x_nchw, (0, 2, 3, 1))                      # test harness only
    y_nhwc = fwd(x_nhwc, w_taps, bias)
    jax.block_until_ready(y_nhwc)
    assert y_nhwc.shape == (N, H, W, IN_CHS), y_nhwc.shape

    # Correctness check against a pure-JAX reference of the PyTorch module (NCHW).
    y_ref = reference_forward(x_nchw, params, IN_CHS)
    y_nchw = jnp.transpose(y_nhwc, (0, 3, 1, 2))
    err = float(jnp.max(jnp.abs(y_nchw - y_ref)))
    assert err < 1e-4, f"max abs err {err}"

    print("KERNEL_OK")
</pallas_src>

<mosaic_0001>
module attributes {stable_mosaic.version = 11 : i64} {
  func.func @_inception_dw_kernel(%arg0: i32, %arg1: memref<1x16x16x32xf32, #tpu.memory_space<vmem>>, %arg2: memref<25x12xf32, #tpu.memory_space<vmem>>, %arg3: memref<1x12xf32, #tpu.memory_space<vmem>>, %arg4: memref<1x16x16x32xf32, #tpu.memory_space<vmem>>, %arg5: memref<1x26x29x12xf32, #tpu.memory_space<vmem>>) attributes {dimension_semantics = [#tpu.dimension_semantics<parallel>], iteration_bounds = array<i64: 2>, scalar_prefetch = 0 : i64, scratch_operands = 1 : i64, tpu.core_type = #tpu.core_type<tc>, window_params = [{transform_indices = @transform_0, window_bounds = array<i64: 1, 16, 16, 32>}, {pipeline_mode = #tpu.pipeline_mode<synchronous>, transform_indices = @transform_1, window_bounds = array<i64: 25, 12>}, {pipeline_mode = #tpu.pipeline_mode<synchronous>, transform_indices = @transform_2, window_bounds = array<i64: 1, 12>}, {transform_indices = @transform_3, window_bounds = array<i64: 1, 16, 16, 32>}]} {
    %cst = arith.constant 0.000000e+00 : f32
    %0 = vector.broadcast %cst : f32 to vector<1x5x29x12xf32>
    %c0 = arith.constant 0 : index
    %c0_0 = arith.constant 0 : index
    %c0_1 = arith.constant 0 : index
    %c0_2 = arith.constant 0 : index
    %1 = vector.load %arg5[%c0, %c0_0, %c0_1, %c0_2] : memref<1x26x29x12xf32, #tpu.memory_space<vmem>>, vector<1x5x29x12xf32>
    tpu.vector_store %arg5[%c0, %c0_0, %c0_1, %c0_2], %0 {strides = array<i32>} : memref<1x26x29x12xf32, #tpu.memory_space<vmem>>, vector<1x5x29x12xf32>,
    %cst_3 = arith.constant 0.000000e+00 : f32
    %2 = vector.broadcast %cst_3 : f32 to vector<1x5x29x12xf32>
    %c0_4 = arith.constant 0 : index
    %c21 = arith.constant 21 : index
    %c0_5 = arith.constant 0 : index
    %c0_6 = arith.constant 0 : index
    %3 = vector.load %arg5[%c0_4, %c21, %c0_5, %c0_6] : memref<1x26x29x12xf32, #tpu.memory_space<vmem>>, vector<1x5x29x12xf32>
    tpu.vector_store %arg5[%c0_4, %c21, %c0_5, %c0_6], %2 {strides = array<i32>} : memref<1x26x29x12xf32, #tpu.memory_space<vmem>>, vector<1x5x29x12xf32>,
    %cst_7 = arith.constant 0.000000e+00 : f32
    %4 = vector.broadcast %cst_7 : f32 to vector<1x16x8x12xf32>
    %c0_8 = arith.constant 0 : index
    %c5 = arith.constant 5 : index
    %c0_9 = arith.constant 0 : index
    %c0_10 = arith.constant 0 : index
    %5 = vector.load %arg5[%c0_8, %c5, %c0_9, %c0_10] : memref<1x26x29x12xf32, #tpu.memory_space<vmem>>, vector<1x16x8x12xf32>
    tpu.vector_store %arg5[%c0_8, %c5, %c0_9, %c0_10], %4 {strides = array<i32>} : memref<1x26x29x12xf32, #tpu.memory_space<vmem>>, vector<1x16x8x12xf32>,
    %cst_11 = arith.constant 0.000000e+00 : f32
    %6 = vector.broadcast %cst_11 : f32 to vector<1x16x5x12xf32>
    %c0_12 = arith.constant 0 : index
    %c5_13 = arith.constant 5 : index
    %c24 = arith.constant 24 : index
    %c0_14 = arith.constant 0 : index
    %7 = vector.load %arg5[%c0_12, %c5_13, %c24, %c0_14] : memref<1x26x29x12xf32, #tpu.memory_space<vmem>>, vector<1x16x5x12xf32>
    tpu.vector_store %arg5[%c0_12, %c5_13, %c24, %c0_14], %6 {strides = array<i32>} : memref<1x26x29x12xf32, #tpu.memory_space<vmem>>, vector<1x16x5x12xf32>,
    %c0_i32 = arith.constant 0 : i32
    %c1_i32 = arith.constant 1 : i32
    %8 = arith.muli %c0_i32, %c1_i32 : i32
    %c0_i32_15 = arith.constant 0 : i32
    %9 = arith.addi %c0_i32_15, %8 : i32
    %c8_i32 = arith.constant 8 : i32
    %10 = arith.muli %9, %c8_i32 : i32
    %11 = tpu.assume_multiple %10, 8 : i32
    %c0_16 = arith.constant 0 : index
    %12 = arith.index_cast %11 : i32 to index
    %c0_17 = arith.constant 0 : index
    %c20 = arith.constant 20 : index
    %13 = vector.load %arg1[%c0_16, %12, %c0_17, %c20] : memref<1x16x16x32xf32, #tpu.memory_space<vmem>>, vector<1x8x16x12xf32>
    %c5_i32 = arith.constant 5 : i32
    %14 = arith.addi %c5_i32, %11 : i32
    %c0_18 = arith.constant 0 : index
    %15 = arith.index_cast %14 : i32 to index
    %c8 = arith.constant 8 : index
    %c0_19 = arith.constant 0 : index
    %16 = vector.load %arg5[%c0_18, %15, %c8, %c0_19] : memref<1x26x29x12xf32, #tpu.memory_space<vmem>>, vector<1x8x16x12xf32>
    tpu.vector_store %arg5[%c0_18, %15, %c8, %c0_19], %13 {strides = array<i32>} : memref<1x26x29x12xf32, #tpu.memory_space<vmem>>, vector<1x8x16x12xf32>,
    %c1_i32_20 = arith.constant 1 : i32
    %c1_i32_21 = arith.constant 1 : i32
    %17 = arith.muli %c1_i32_20, %c1_i32_21 : i32
    %c0_i32_22 = arith.constant 0 : i32
    %18 = arith.addi %c0_i32_22, %17 : i32
    %c8_i32_23 = arith.constant 8 : i32
    %19 = arith.muli %18, %c8_i32_23 : i32
    %20 = tpu.assume_multiple %19, 8 : i32
    %c0_24 = arith.constant 0 : index
    %21 = arith.index_cast %20 : i32 to index
    %c0_25 = arith.constant 0 : index
    %c20_26 = arith.constant 20 : index
    %22 = vector.load %arg1[%c0_24, %21, %c0_25, %c20_26] : memref<1x16x16x32xf32, #tpu.memory_space<vmem>>, vector<1x8x16x12xf32>
    %c5_i32_27 = arith.constant 5 : i32
    %23 = arith.addi %c5_i32_27, %20 : i32
    %c0_28 = arith.constant 0 : index
    %24 = arith.index_cast %23 : i32 to index
    %c8_29 = arith.constant 8 : index
    %c0_30 = arith.constant 0 : index
    %25 = vector.load %arg5[%c0_28, %24, %c8_29, %c0_30] : memref<1x26x29x12xf32, #tpu.memory_space<vmem>>, vector<1x8x16x12xf32>
    tpu.vector_store %arg5[%c0_28, %24, %c8_29, %c0_30], %22 {strides = array<i32>} : memref<1x26x29x12xf32, #tpu.memory_space<vmem>>, vector<1x8x16x12xf32>,
    %c2_i32 = arith.constant 2 : i32
    %c0_i32_31 = arith.constant 0 : i32
    %c1_i32_32 = arith.constant 1 : i32
    %26 = arith.muli %c0_i32_31, %c1_i32_32 : i32
    %c0_i32_33 = arith.constant 0 : i32
    %27 = arith.addi %c0_i32_33, %26 : i32
    %c8_i32_34 = arith.constant 8 : i32
    %28 = arith.muli %27, %c8_i32_34 : i32
    %29 = tpu.assume_multiple %28, 8 : i32
    %cst_35 = arith.constant 0.000000e+00 : f32
    %30 = vector.broadcast %cst_35 : f32 to vector<1x8x16x12xf32>
    %c0_i32_36 = arith.constant 0 : i32
    %31 = arith.addi %c0_i32_36, %29 : i32
    %c0_37 = arith.constant 0 : index
    %32 = arith.index_cast %31 : i32 to index
    %c8_38 = arith.constant 8 : index
    %c0_39 = arith.constant 0 : index
    %33 = vector.load %arg5[%c0_37, %32, %c8_38, %c0_39] : memref<1x26x29x12xf32, #tpu.memory_space<vmem>>, vector<1x8x16x12xf32>
    %c0_40 = arith.constant 0 : index
    %c0_41 = arith.constant 0 : index
    %34 = vector.load %arg2[%c0_40, %c0_41] : memref<25x12xf32, #tpu.memory_space<vmem>>, vector<1x12xf32>
    %35 = vector.shape_cast %34 : vector<1x12xf32> to vector<12xf32>
    %36 = vector.shape_cast %35 : vector<12xf32> to vector<1x1x1x12xf32>
    %37 = vector.broadcast %36 : vector<1x1x1x12xf32> to vector<1x8x16x12xf32>
    %38 = arith.mulf %33, %37 : vector<1x8x16x12xf32>
    %39 = arith.addf %30, %38 : vector<1x8x16x12xf32>
    %c1_i32_42 = arith.constant 1 : i32
    %40 = arith.addi %c1_i32_42, %29 : i32
    %c0_43 = arith.constant 0 : index
    %41 = arith.index_cast %40 : i32 to index
    %c8_44 = arith.constant 8 : index
    %c0_45 = arith.constant 0 : index
    %42 = vector.load %arg5[%c0_43, %41, %c8_44, %c0_45] : memref<1x26x29x12xf32, #tpu.memory_space<vmem>>, vector<1x8x16x12xf32>
    %c1 = arith.constant 1 : index
    %c0_46 = arith.constant 0 : index
    %43 = vector.load %arg2[%c1, %c0_46] : memref<25x12xf32, #tpu.memory_space<vmem>>, vector<1x12xf32>
    %44 = vector.shape_cast %43 : vector<1x12xf32> to vector<12xf32>
    %45 = vector.shape_cast %44 : vector<12xf32> to vector<1x1x1x12xf32>
    %46 = vector.broadcast %45 : vector<1x1x1x12xf32> to vector<1x8x16x12xf32>
    %47 = arith.mulf %42, %46 : vector<1x8x16x12xf32>
    %48 = arith.addf %39, %47 : vector<1x8x16x12xf32>
    %c2_i32_47 = arith.constant 2 : i32
    %49 = arith.addi %c2_i32_47, %29 : i32
    %c0_48 = arith.constant 0 : index
    %50 = arith.index_cast %49 : i32 to index
    %c8_49 = arith.constant 8 : index
    %c0_50 = arith.constant 0 : index
    %51 = vector.load %arg5[%c0_48, %50, %c8_49, %c0_50] : memref<1x26x29x12xf32, #tpu.memory_space<vmem>>, vector<1x8x16x12xf32>
    %c2 = arith.constant 2 : index
    %c0_51 = arith.constant 0 : index
    %52 = vector.load %arg2[%c2, %c0_51] : memref<25x12xf32, #tpu.memory_space<vmem>>, vector<1x12xf32>
    %53 = vector.shape_cast %52 : vector<1x12xf32> to vector<12xf32>
    %54 = vector.shape_cast %53 : vector<12xf32> to vector<1x1x1x12xf32>
    %55 = vector.broadcast %54 : vector<1x1x1x12xf32> to vector<1x8x16x12xf32>
    %56 = arith.mulf %51, %55 : vector<1x8x16x12xf32>
    %57 = arith.addf %48, %56 : vector<1x8x16x12xf32>
    %c3_i32 = arith.constant 3 : i32
    %58 = arith.addi %c3_i32, %29 : i32
    %c0_52 = arith.constant 0 : index
    %59 = arith.index_cast %58 : i32 to index
    %c8_53 = arith.constant 8 : index
    %c0_54 = arith.constant 0 : index
    %60 = vector.load %arg5[%c0_52, %59, %c8_53, %c0_54] : memref<1x26x29x12xf32, #tpu.memory_space<vmem>>, vector<1x8x16x12xf32>
    %c3 = arith.constant 3 : index
    %c0_55 = arith.constant 0 : index
    %61 = vector.load %arg2[%c3, %c0_55] : memref<25x12xf32, #tpu.memory_space<vmem>>, vector<1x12xf32>
    %62 = vector.shape_cast %61 : vector<1x12xf32> to vector<12xf32>
    %63 = vector.shape_cast %62 : vector<12xf32> to vector<1x1x1x12xf32>
    %64 = vector.broadcast %63 : vector<1x1x1x12xf32> to vector<1x8x16x12xf32>
    %65 = arith.mulf %60, %64 : vector<1x8x16x12xf32>
    %66 = arith.addf %57, %65 : vector<1x8x16x12xf32>
    %c4_i32 = arith.constant 4 : i32
    %67 = arith.addi %c4_i32, %29 : i32
    %c0_56 = arith.constant 0 : index
    %68 = arith.index_cast %67 : i32 to index
    %c7 = arith.constant 7 : index
    %c0_57 = arith.constant 0 : index
    %69 = vector.load %arg5[%c0_56, %68, %c7, %c0_57] : memref<1x26x29x12xf32, #tpu.memory_space<vmem>>, vector<1x8x16x12xf32>
    %c4 = arith.constant 4 : index
    %c0_58 = arith.constant 0 : index
    %70 = vector.load %arg2[%c4, %c0_58] : memref<25x12xf32, #tpu.memory_space<vmem>>, vector<1x12xf32>
    %71 = vector.shape_cast %70 : vector<1x12xf32> to vector<12xf32>
    %72 = vector.shape_cast %71 : vector<12xf32> to vector<1x1x1x12xf32>
    %73 = vector.broadcast %72 : vector<1x1x1x12xf32> to vector<1x8x16x12xf32>
    %74 = arith.mulf %69, %73 : vector<1x8x16x12xf32>
    %75 = arith.addf %66, %74 : vector<1x8x16x12xf32>
    %c4_i32_59 = arith.constant 4 : i32
    %76 = arith.addi %c4_i32_59, %29 : i32
    %c0_60 = arith.constant 0 : index
    %77 = arith.index_cast %76 : i32 to index
    %c8_61 = arith.constant 8 : index
    %c0_62 = arith.constant 0 : index
    %78 = vector.load %arg5[%c0_60, %77, %c8_61, %c0_62] : memref<1x26x29x12xf32, #tpu.memory_space<vmem>>, vector<1x8x16x12xf32>
    %c5_63 = arith.constant 5 : index
    %c0_64 = arith.constant 0 : index
    %79 = vector.load %arg2[%c5_63, %c0_64] : memref<25x12xf32, #tpu.memory_space<vmem>>, vector<1x12xf32>
    %80 = vector.shape_cast %79 : vector<1x12xf32> to vector<12xf32>
    %81 = vector.shape_cast %80 : vector<12xf32> to vector<1x1x1x12xf32>
    %82 = vector.broadcast %81 : vector<1x1x1x12xf32> to vector<1x8x16x12xf32>
    %83 = arith.mulf %78, %82 : vector<1x8x16x12xf32>
    %84 = arith.addf %75, %83 : vector<1x8x16x12xf32>
    %c4_i32_65 = arith.constant 4 : i32
    %85 = arith.addi %c4_i32_65, %29 : i32
    %c0_66 = arith.constant 0 : index
    %86 = arith.index_cast %85 : i32 to index
    %c9 = arith.constant 9 : index
    %c0_67 = arith.constant 0 : index
    %87 = vector.load %arg5[%c0_66, %86, %c9, %c0_67] : memref<1x26x29x12xf32, #tpu.memory_space<vmem>>, vector<1x8x16x12xf32>
    %c6 = arith.constant 6 : index
    %c0_68 = arith.constant 0 : index
    %88 = vector.load %arg2[%c6, %c0_68] : memref<25x12xf32, #tpu.memory_space<vmem>>, vector<1x12xf32>
    %89 = vector.shape_cast %88 : vector<1x12xf32> to vector<12xf32>
    %90 = vector.shape_cast %89 : vector<12xf32> to vector<1x1x1x12xf32>
    %91 = vector.broadcast %90 : vector<1x1x1x12xf32> to vector<1x8x16x12xf32>
    %92 = arith.mulf %87, %91 : vector<1x8x16x12xf32>
    %93 = arith.addf %84, %92 : vector<1x8x16x12xf32>
    %c5_i32_69 = arith.constant 5 : i32
    %94 = arith.addi %c5_i32_69, %29 : i32
    %c0_70 = arith.constant 0 : index
    %95 = arith.index_cast %94 : i32 to index
    %c3_71 = arith.constant 3 : index
    %c0_72 = arith.constant 0 : index
    %96 = vector.load %arg5[%c0_70, %95, %c3_71, %c0_72] : memref<1x26x29x12xf32, #tpu.memory_space<vmem>>, vector<1x8x16x12xf32>
    %c7_73 = arith.constant 7 : index
    %c0_74 = arith.constant 0 : index
    %97 = vector.load %arg2[%c7_73, %c0_74] : memref<25x12xf32, #tpu.memory_space<vmem>>, vector<1x12xf32>
    %98 = vector.shape_cast %97 : vector<1x12xf32> to vector<12xf32>
    %99 = vector.shape_cast %98 : vector<12xf32> to vector<1x1x1x12xf32>
    %100 = vector.broadcast %99 : vector<1x1x1x12xf32> to vector<1x8x16x12xf32>
    %101 = arith.mulf %96, %100 : vector<1x8x16x12xf32>
    %102 = arith.addf %93, %101 : vector<1x8x16x12xf32>
    %c5_i32_75 = arith.constant 5 : i32
    %103 = arith.addi %c5_i32_75, %29 : i32
    %c0_76 = arith.constant 0 : index
    %104 = arith.index_cast %103 : i32 to index
    %c4_77 = arith.constant 4 : index
    %c0_78 = arith.constant 0 : index
    %105 = vector.load %arg5[%c0_76, %104, %c4_77, %c0_78] : memref<1x26x29x12xf32, #tpu.memory_space<vmem>>, vector<1x8x16x12xf32>
    %c8_79 = arith.constant 8 : index
    %c0_80 = arith.constant 0 : index
    %106 = vector.load %arg2[%c8_79, %c0_80] : memref<25x12xf32, #tpu.memory_space<vmem>>, vector<1x12xf32>
    %107 = vector.shape_cast %106 : vector<1x12xf32> to vector<12xf32>
    %108 = vector.shape_cast %107 : vector<12xf32> to vector<1x1x1x12xf32>
    %109 = vector.broadcast %108 : vector<1x1x1x12xf32> to vector<1x8x16x12xf32>
    %110 = arith.mulf %105, %109 : vector<1x8x16x12xf32>
    %111 = arith.addf %102, %110 : vector<1x8x16x12xf32>
    %c5_i32_81 = arith.constant 5 : i32
    %112 = arith.addi %c5_i32_81, %29 : i32
    %c0_82 = arith.constant 0 : index
    %113 = arith.index_cast %112 : i32 to index
    %c5_83 = arith.constant 5 : index
    %c0_84 = arith.constant 0 : index
    %114 = vector.load %arg5[%c0_82, %113, %c5_83, %c0_84] : memref<1x26x29x12xf32, #tpu.memory_space<vmem>>, vector<1x8x16x12xf32>
    %c9_85 = arith.constant 9 : index
    %c0_86 = arith.constant 0 : index
    %115 = vector.load %arg2[%c9_85, %c0_86] : memref<25x12xf32, #tpu.memory_space<vmem>>, vector<1x12xf32>
    %116 = vector.shape_cast %115 : vector<1x12xf32> to vector<12xf32>
    %117 = vector.shape_cast %116 : vector<12xf32> to vector<1x1x1x12xf32>
    %118 = vector.broadcast %117 : vector<1x1x1x12xf32> to vector<1x8x16x12xf32>
    %119 = arith.mulf %114, %118 : vector<1x8x16x12xf32>
    %120 = arith.addf %111, %119 : vector<1x8x16x12xf32>
    %c5_i32_87 = arith.constant 5 : i32
    %121 = arith.addi %c5_i32_87, %29 : i32
    %c0_88 = arith.constant 0 : index
    %122 = arith.index_cast %121 : i32 to index
    %c6_89 = arith.constant 6 : index
    %c0_90 = arith.constant 0 : index
    %123 = vector.load %arg5[%c0_88, %122, %c6_89, %c0_90] : memref<1x26x29x12xf32, #tpu.memory_space<vmem>>, vector<1x8x16x12xf32>
    %c10 = arith.constant 10 : index
    %c0_91 = arith.constant 0 : index
    %124 = vector.load %arg2[%c10, %c0_91] : memref<25x12xf32, #tpu.memory_space<vmem>>, vector<1x12xf32>
    %125 = vector.shape_cast %124 : vector<1x12xf32> to vector<12xf32>
    %126 = vector.shape_cast %125 : vector<12xf32> to vector<1x1x1x12xf32>
    %127 = vector.broadcast %126 : vector<1x1x1x12xf32> to vector<1x8x16x12xf32>
    %128 = arith.mulf %123, %127 : vector<1x8x16x12xf32>
    %129 = arith.addf %120, %128 : vector<1x8x16x12xf32>
    %c5_i32_92 = arith.constant 5 : i32
    %130 = arith.addi %c5_i32_92, %29 : i32
    %c0_93 = arith.constant 0 : index
    %131 = arith.index_cast %130 : i32 to index
    %c7_94 = arith.constant 7 : index
    %c0_95 = arith.constant 0 : index
    %132 = vector.load %arg5[%c0_93, %131, %c7_94, %c0_95] : memref<1x26x29x12xf32, #tpu.memory_space<vmem>>, vector<1x8x16x12xf32>
    %c11 = arith.constant 11 : index
    %c0_96 = arith.constant 0 : index
    %133 = vector.load %arg2[%c11, %c0_96] : memref<25x12xf32, #tpu.memory_space<vmem>>, vector<1x12xf32>
    %134 = vector.shape_cast %133 : vector<1x12xf32> to vector<12xf32>
    %135 = vector.shape_cast %134 : vector<12xf32> to vector<1x1x1x12xf32>
    %136 = vector.broadcast %135 : vector<1x1x1x12xf32> to vector<1x8x16x12xf32>
    %137 = arith.mulf %132, %136 : vector<1x8x16x12xf32>
    %138 = arith.addf %129, %137 : vector<1x8x16x12xf32>
    %c5_i32_97 = arith.constant 5 : i32
    %139 = arith.addi %c5_i32_97, %29 : i32
    %c0_98 = arith.constant 0 : index
    %140 = arith.index_cast %139 : i32 to index
    %c8_99 = arith.constant 8 : index
    %c0_100 = arith.constant 0 : index
    %141 = vector.load %arg5[%c0_98, %140, %c8_99, %c0_100] : memref<1x26x29x12xf32, #tpu.memory_space<vmem>>, vector<1x8x16x12xf32>
    %c12 = arith.constant 12 : index
    %c0_101 = arith.constant 0 : index
    %142 = vector.load %arg2[%c12, %c0_101] : memref<25x12xf32, #tpu.memory_space<vmem>>, vector<1x12xf32>
    %143 = vector.shape_cast %142 : vector<1x12xf32> to vector<12xf32>
    %144 = vector.shape_cast %143 : vector<12xf32> to vector<1x1x1x12xf32>
    %145 = vector.broadcast %144 : vector<1x1x1x12xf32> to vector<1x8x16x12xf32>
    %146 = arith.mulf %141, %145 : vector<1x8x16x12xf32>
    %147 = arith.addf %138, %146 : vector<1x8x16x12xf32>
    %c5_i32_102 = arith.constant 5 : i32
    %148 = arith.addi %c5_i32_102, %29 : i32
    %c0_103 = arith.constant 0 : index
    %149 = arith.index_cast %148 : i32 to index
    %c9_104 = arith.constant 9 : index
    %c0_105 = arith.constant 0 : index
    %150 = vector.load %arg5[%c0_103, %149, %c9_104, %c0_105] : memref<1x26x29x12xf32, #tpu.memory_space<vmem>>, vector<1x8x16x12xf32>
    %c13 = arith.constant 13 : index
    %c0_106 = arith.constant 0 : index
    %151 = vector.load %arg2[%c13, %c0_106] : memref<25x12xf32, #tpu.memory_space<vmem>>, vector<1x12xf32>
    %152 = vector.shape_cast %151 : vector<1x12xf32> to vector<12xf32>
    %153 = vector.shape_cast %152 : vector<12xf32> to vector<1x1x1x12xf32>
    %154 = vector.broadcast %153 : vector<1x1x1x12xf32> to vector<1x8x16x12xf32>
    %155 = arith.mulf %150, %154 : vector<1x8x16x12xf32>
    %156 = arith.addf %147, %155 : vector<1x8x16x12xf32>
    %c5_i32_107 = arith.constant 5 : i32
    %157 = arith.addi %c5_i32_107, %29 : i32
    %c0_108 = arith.constant 0 : index
    %158 = arith.index_cast %157 : i32 to index
    %c10_109 = arith.constant 10 : index
    %c0_110 = arith.constant 0 : index
    %159 = vector.load %arg5[%c0_108, %158, %c10_109, %c0_110] : memref<1x26x29x12xf32, #tpu.memory_space<vmem>>, vector<1x8x16x12xf32>
    %c14 = arith.constant 14 : index
    %c0_111 = arith.constant 0 : index
    %160 = vector.load %arg2[%c14, %c0_111] : memref<25x12xf32, #tpu.memory_space<vmem>>, vector<1x12xf32>
    %161 = vector.shape_cast %160 : vector<1x12xf32> to vector<12xf32>
    %162 = vector.shape_cast %161 : vector<12xf32> to vector<1x1x1x12xf32>
    %163 = vector.broadcast %162 : vector<1x1x1x12xf32> to vector<1x8x16x12xf32>
    %164 = arith.mulf %159, %163 : vector<1x8x16x12xf32>
    %165 = arith.addf %156, %164 : vector<1x8x16x12xf32>
    %c5_i32_112 = arith.constant 5 : i32
    %166 = arith.addi %c5_i32_112, %29 : i32
    %c0_113 = arith.constant 0 : index
    %167 = arith.index_cast %166 : i32 to index
    %c11_114 = arith.constant 11 : index
    %c0_115 = arith.constant 0 : index
    %168 = vector.load %arg5[%c0_113, %167, %c11_114, %c0_115] : memref<1x26x29x12xf32, #tpu.memory_space<vmem>>, vector<1x8x16x12xf32>
    %c15 = arith.constant 15 : index
    %c0_116 = arith.constant 0 : index
    %169 = vector.load %arg2[%c15, %c0_116] : memref<25x12xf32, #tpu.memory_space<vmem>>, vector<1x12xf32>
    %170 = vector.shape_cast %169 : vector<1x12xf32> to vector<12xf32>
    %171 = vector.shape_cast %170 : vector<12xf32> to vector<1x1x1x12xf32>
    %172 = vector.broadcast %171 : vector<1x1x1x12xf32> to vector<1x8x16x12xf32>
    %173 = arith.mulf %168, %172 : vector<1x8x16x12xf32>
    %174 = arith.addf %165, %173 : vector<1x8x16x12xf32>
    %c5_i32_117 = arith.constant 5 : i32
    %175 = arith.addi %c5_i32_117, %29 : i32
    %c0_118 = arith.constant 0 : index
    %176 = arith.index_cast %175 : i32 to index
    %c12_119 = arith.constant 12 : index
    %c0_120 = arith.constant 0 : index
    %177 = vector.load %arg5[%c0_118, %176, %c12_119, %c0_120] : memref<1x26x29x12xf32, #tpu.memory_space<vmem>>, vector<1x8x16x12xf32>
    %c16 = arith.constant 16 : index
    %c0_121 = arith.constant 0 : index
    %178 = vector.load %arg2[%c16, %c0_121] : memref<25x12xf32, #tpu.memory_space<vmem>>, vector<1x12xf32>
    %179 = vector.shape_cast %178 : vector<1x12xf32> to vector<12xf32>
    %180 = vector.shape_cast %179 : vector<12xf32> to vector<1x1x1x12xf32>
    %181 = vector.broadcast %180 : vector<1x1x1x12xf32> to vector<1x8x16x12xf32>
    %182 = arith.mulf %177, %181 : vector<1x8x16x12xf32>
    %183 = arith.addf %174, %182 : vector<1x8x16x12xf32>
    %c5_i32_122 = arith.constant 5 : i32
    %184 = arith.addi %c5_i32_122, %29 : i32
    %c0_123 = arith.constant 0 : index
    %185 = arith.index_cast %184 : i32 to index
    %c13_124 = arith.constant 13 : index
    %c0_125 = arith.constant 0 : index
    %186 = vector.load %arg5[%c0_123, %185, %c13_124, %c0_125] : memref<1x26x29x12xf32, #tpu.memory_space<vmem>>, vector<1x8x16x12xf32>
    %c17 = arith.constant 17 : index
    %c0_126 = arith.constant 0 : index
    %187 = vector.load %arg2[%c17, %c0_126] : memref<25x12xf32, #tpu.memory_space<vmem>>, vector<1x12xf32>
    %188 = vector.shape_cast %187 : vector<1x12xf32> to vector<12xf32>
    %189 = vector.shape_cast %188 : vector<12xf32> to vector<1x1x1x12xf32>
    %190 = vector.broadcast %189 : vector<1x1x1x12xf32> to vector<1x8x16x12xf32>
    %191 = arith.mulf %186, %190 : vector<1x8x16x12xf32>
    %192 = arith.addf %183, %191 : vector<1x8x16x12xf32>
    %c6_i32 = arith.constant 6 : i32
    %193 = arith.addi %c6_i32, %29 : i32
    %c0_127 = arith.constant 0 : index
    %194 = arith.index_cast %193 : i32 to index
    %c7_128 = arith.constant 7 : index
    %c0_129 = arith.constant 0 : index
    %195 = vector.load %arg5[%c0_127, %194, %c7_128, %c0_129] : memref<1x26x29x12xf32, #tpu.memory_space<vmem>>, vector<1x8x16x12xf32>
    %c18 = arith.constant 18 : index
    %c0_130 = arith.constant 0 : index
    %196 = vector.load %arg2[%c18, %c0_130] : memref<25x12xf32, #tpu.memory_space<vmem>>, vector<1x12xf32>
    %197 = vector.shape_cast %196 : vector<1x12xf32> to vector<12xf32>
    %198 = vector.shape_cast %197 : vector<12xf32> to vector<1x1x1x12xf32>
    %199 = vector.broadcast %198 : vector<1x1x1x12xf32> to vector<1x8x16x12xf32>
    %200 = arith.mulf %195, %199 : vector<1x8x16x12xf32>
    %201 = arith.addf %192, %200 : vector<1x8x16x12xf32>
    %c6_i32_131 = arith.constant 6 : i32
    %202 = arith.addi %c6_i32_131, %29 : i32
    %c0_132 = arith.constant 0 : index
    %203 = arith.index_cast %202 : i32 to index
    %c8_133 = arith.constant 8 : index
    %c0_134 = arith.constant 0 : index
    %204 = vector.load %arg5[%c0_132, %203, %c8_133, %c0_134] : memref<1x26x29x12xf32, #tpu.memory_space<vmem>>, vector<1x8x16x12xf32>
    %c19 = arith.constant 19 : index
    %c0_135 = arith.constant 0 : index
    %205 = vector.load %arg2[%c19, %c0_135] : memref<25x12xf32, #tpu.memory_space<vmem>>, vector<1x12xf32>
    %206 = vector.shape_cast %205 : vector<1x12xf32> to vector<12xf32>
    %207 = vector.shape_cast %206 : vector<12xf32> to vector<1x1x1x12xf32>
    %208 = vector.broadcast %207 : vector<1x1x1x12xf32> to vector<1x8x16x12xf32>
    %209 = arith.mulf %204, %208 : vector<1x8x16x12xf32>
    %210 = arith.addf %201, %209 : vector<1x8x16x12xf32>
    %c6_i32_136 = arith.constant 6 : i32
    %211 = arith.addi %c6_i32_136, %29 : i32
    %c0_137 = arith.constant 0 : index
    %212 = arith.index_cast %211 : i32 to index
    %c9_138 = arith.constant 9 : index
    %c0_139 = arith.constant 0 : index
    %213 = vector.load %arg5[%c0_137, %212, %c9_138, %c0_139] : memref<1x26x29x12xf32, #tpu.memory_space<vmem>>, vector<1x8x16x12xf32>
    %c20_140 = arith.constant 20 : index
    %c0_141 = arith.constant 0 : index
    %214 = vector.load %arg2[%c20_140, %c0_141] : memref<25x12xf32, #tpu.memory_space<vmem>>, vector<1x12xf32>
    %215 = vector.shape_cast %214 : vector<1x12xf32> to vector<12xf32>
    %216 = vector.shape_cast %215 : vector<12xf32> to vector<1x1x1x12xf32>
    %217 = vector.broadcast %216 : vector<1x1x1x12xf32> to vector<1x8x16x12xf32>
    %218 = arith.mulf %213, %217 : vector<1x8x16x12xf32>
    %219 = arith.addf %210, %218 : vector<1x8x16x12xf32>
    %c7_i32 = arith.constant 7 : i32
    %220 = arith.addi %c7_i32, %29 : i32
    %c0_142 = arith.constant 0 : index
    %221 = arith.index_cast %220 : i32 to index
    %c8_143 = arith.constant 8 : index
    %c0_144 = arith.constant 0 : index
    %222 = vector.load %arg5[%c0_142, %221, %c8_143, %c0_144] : memref<1x26x29x12xf32, #tpu.memory_space<vmem>>, vector<1x8x16x12xf32>
    %c21_145 = arith.constant 21 : index
    %c0_146 = arith.constant 0 : index
    %223 = vector.load %arg2[%c21_145, %c0_146] : memref<25x12xf32, #tpu.memory_space<vmem>>, vector<1x12xf32>
    %224 = vector.shape_cast %223 : vector<1x12xf32> to vector<12xf32>
    %225 = vector.shape_cast %224 : vector<12xf32> to vector<1x1x1x12xf32>
    %226 = vector.broadcast %225 : vector<1x1x1x12xf32> to vector<1x8x16x12xf32>
    %227 = arith.mulf %222, %226 : vector<1x8x16x12xf32>
    %228 = arith.addf %219, %227 : vector<1x8x16x12xf32>
    %c8_i32_147 = arith.constant 8 : i32
    %229 = arith.addi %c8_i32_147, %29 : i32
    %c0_148 = arith.constant 0 : index
    %230 = arith.index_cast %229 : i32 to index
    %c8_149 = arith.constant 8 : index
    %c0_150 = arith.constant 0 : index
    %231 = vector.load %arg5[%c0_148, %230, %c8_149, %c0_150] : memref<1x26x29x12xf32, #tpu.memory_space<vmem>>, vector<1x8x16x12xf32>
    %c22 = arith.constant 22 : index
    %c0_151 = arith.constant 0 : index
    %232 = vector.load %arg2[%c22, %c0_151] : memref<25x12xf32, #tpu.memory_space<vmem>>, vector<1x12xf32>
    %233 = vector.shape_cast %232 : vector<1x12xf32> to vector<12xf32>
    %234 = vector.shape_cast %233 : vector<12xf32> to vector<1x1x1x12xf32>
    %235 = vector.broadcast %234 : vector<1x1x1x12xf32> to vector<1x8x16x12xf32>
    %236 = arith.mulf %231, %235 : vector<1x8x16x12xf32>
    %237 = arith.addf %228, %236 : vector<1x8x16x12xf32>
    %c9_i32 = arith.constant 9 : i32
    %238 = arith.addi %c9_i32, %29 : i32
    %c0_152 = arith.constant 0 : index
    %239 = arith.index_cast %238 : i32 to index
    %c8_153 = arith.constant 8 : index
    %c0_154 = arith.constant 0 : index
    %240 = vector.load %arg5[%c0_152, %239, %c8_153, %c0_154] : memref<1x26x29x12xf32, #tpu.memory_space<vmem>>, vector<1x8x16x12xf32>
    %c23 = arith.constant 23 : index
    %c0_155 = arith.constant 0 : index
    %241 = vector.load %arg2[%c23, %c0_155] : memref<25x12xf32, #tpu.memory_space<vmem>>, vector<1x12xf32>
    %242 = vector.shape_cast %241 : vector<1x12xf32> to vector<12xf32>
    %243 = vector.shape_cast %242 : vector<12xf32> to vector<1x1x1x12xf32>
    %244 = vector.broadcast %243 : vector<1x1x1x12xf32> to vector<1x8x16x12xf32>
    %245 = arith.mulf %240, %244 : vector<1x8x16x12xf32>
    %246 = arith.addf %237, %245 : vector<1x8x16x12xf32>
    %c10_i32 = arith.constant 10 : i32
    %247 = arith.addi %c10_i32, %29 : i32
    %c0_156 = arith.constant 0 : index
    %248 = arith.index_cast %247 : i32 to index
    %c8_157 = arith.constant 8 : index
    %c0_158 = arith.constant 0 : index
    %249 = vector.load %arg5[%c0_156, %248, %c8_157, %c0_158] : memref<1x26x29x12xf32, #tpu.memory_space<vmem>>, vector<1x8x16x12xf32>
    %c24_159 = arith.constant 24 : index
    %c0_160 = arith.constant 0 : index
    %250 = vector.load %arg2[%c24_159, %c0_160] : memref<25x12xf32, #tpu.memory_space<vmem>>, vector<1x12xf32>
    %251 = vector.shape_cast %250 : vector<1x12xf32> to vector<12xf32>
    %252 = vector.shape_cast %251 : vector<12xf32> to vector<1x1x1x12xf32>
    %253 = vector.broadcast %252 : vector<1x1x1x12xf32> to vector<1x8x16x12xf32>
    %254 = arith.mulf %249, %253 : vector<1x8x16x12xf32>
    %255 = arith.addf %246, %254 : vector<1x8x16x12xf32>
    %c0_161 = arith.constant 0 : index
    %c0_162 = arith.constant 0 : index
    %256 = vector.load %arg3[%c0_161, %c0_162] : memref<1x12xf32, #tpu.memory_space<vmem>>, vector<1x12xf32>
    %257 = vector.shape_cast %256 : vector<1x12xf32> to vector<1x1x1x12xf32>
    %258 = vector.broadcast %257 : vector<1x1x1x12xf32> to vector<1x8x16x12xf32>
    %259 = arith.addf %255, %258 : vector<1x8x16x12xf32>
    %c0_163 = arith.constant 0 : index
    %260 = arith.index_cast %29 : i32 to index
    %c0_164 = arith.constant 0 : index
    %c0_165 = arith.constant 0 : index
    %261 = vector.load %arg1[%c0_163, %260, %c0_164, %c0_165] : memref<1x16x16x32xf32, #tpu.memory_space<vmem>>, vector<1x8x16x20xf32>
    %262 = tpu.concatenate %261, %259 in 3 : vector<1x8x16x20xf32>, vector<1x8x16x12xf32> -> vector<1x8x16x32xf32>
    %c0_166 = arith.constant 0 : index
    %263 = arith.index_cast %29 : i32 to index
    %c0_167 = arith.constant 0 : index
    %c0_168 = arith.constant 0 : index
    %264 = vector.load %arg4[%c0_166, %263, %c0_167, %c0_168] : memref<1x16x16x32xf32, #tpu.memory_space<vmem>>, vector<1x8x16x32xf32>
    tpu.vector_store %arg4[%c0_166, %263, %c0_167, %c0_168], %262 {strides = array<i32>} : memref<1x16x16x32xf32, #tpu.memory_space<vmem>>, vector<1x8x16x32xf32>,
    %c1_i32_169 = arith.constant 1 : i32
    %c1_i32_170 = arith.constant 1 : i32
    %265 = arith.muli %c1_i32_169, %c1_i32_170 : i32
    %c0_i32_171 = arith.constant 0 : i32
    %266 = arith.addi %c0_i32_171, %265 : i32
    %c8_i32_172 = arith.constant 8 : i32
    %267 = arith.muli %266, %c8_i32_172 : i32
    %268 = tpu.assume_multiple %267, 8 : i32
    %cst_173 = arith.constant 0.000000e+00 : f32
    %269 = vector.broadcast %cst_173 : f32 to vector<1x8x16x12xf32>
    %c0_i32_174 = arith.constant 0 : i32
    %270 = arith.addi %c0_i32_174, %268 : i32
    %c0_175 = arith.constant 0 : index
    %271 = arith.index_cast %270 : i32 to index
    %c8_176 = arith.constant 8 : index
    %c0_177 = arith.constant 0 : index
    %272 = vector.load %arg5[%c0_175, %271, %c8_176, %c0_177] : memref<1x26x29x12xf32, #tpu.memory_space<vmem>>, vector<1x8x16x12xf32>
    %c0_178 = arith.constant 0 : index
    %c0_179 = arith.constant 0 : index
    %273 = vector.load %arg2[%c0_178, %c0_179] : memref<25x12xf32, #tpu.memory_space<vmem>>, vector<1x12xf32>
    %274 = vector.shape_cast %273 : vector<1x12xf32> to vector<12xf32>
    %275 = vector.shape_cast %274 : vector<12xf32> to vector<1x1x1x12xf32>
    %276 = vector.broadcast %275 : vector<1x1x1x12xf32> to vector<1x8x16x12xf32>
    %277 = arith.mulf %272, %276 : vector<1x8x16x12xf32>
    %278 = arith.addf %269, %277 : vector<1x8x16x12xf32>
    %c1_i32_180 = arith.constant 1 : i32
    %279 = arith.addi %c1_i32_180, %268 : i32
    %c0_181 = arith.constant 0 : index
    %280 = arith.index_cast %279 : i32 to index
    %c8_182 = arith.constant 8 : index
    %c0_183 = arith.constant 0 : index
    %281 = vector.load %arg5[%c0_181, %280, %c8_182, %c0_183] : memref<1x26x29x12xf32, #tpu.memory_space<vmem>>, vector<1x8x16x12xf32>
    %c1_184 = arith.constant 1 : index
    %c0_185 = arith.constant 0 : index
    %282 = vector.load %arg2[%c1_184, %c0_185] : memref<25x12xf32, #tpu.memory_space<vmem>>, vector<1x12xf32>
    %283 = vector.shape_cast %282 : vector<1x12xf32> to vector<12xf32>
    %284 = vector.shape_cast %283 : vector<12xf32> to vector<1x1x1x12xf32>
    %285 = vector.broadcast %284 : vector<1x1x1x12xf32> to vector<1x8x16x12xf32>
    %286 = arith.mulf %281, %285 : vector<1x8x16x12xf32>
    %287 = arith.addf %278, %286 : vector<1x8x16x12xf32>
    %c2_i32_186 = arith.constant 2 : i32
    %288 = arith.addi %c2_i32_186, %268 : i32
    %c0_187 = arith.constant 0 : index
    %289 = arith.index_cast %288 : i32 to index
    %c8_188 = arith.constant 8 : index
    %c0_189 = arith.constant 0 : index
    %290 = vector.load %arg5[%c0_187, %289, %c8_188, %c0_189] : memref<1x26x29x12xf32, #tpu.memory_space<vmem>>, vector<1x8x16x12xf32>
    %c2_190 = arith.constant 2 : index
    %c0_191 = arith.constant 0 : index
    %291 = vector.load %arg2[%c2_190, %c0_191] : memref<25x12xf32, #tpu.memory_space<vmem>>, vector<1x12xf32>
    %292 = vector.shape_cast %291 : vector<1x12xf32> to vector<12xf32>
    %293 = vector.shape_cast %292 : vector<12xf32> to vector<1x1x1x12xf32>
    %294 = vector.broadcast %293 : vector<1x1x1x12xf32> to vector<1x8x16x12xf32>
    %295 = arith.mulf %290, %294 : vector<1x8x16x12xf32>
    %296 = arith.addf %287, %295 : vector<1x8x16x12xf32>
    %c3_i32_192 = arith.constant 3 : i32
    %297 = arith.addi %c3_i32_192, %268 : i32
    %c0_193 = arith.constant 0 : index
    %298 = arith.index_cast %297 : i32 to index
    %c8_194 = arith.constant 8 : index
    %c0_195 = arith.constant 0 : index
    %299 = vector.load %arg5[%c0_193, %298, %c8_194, %c0_195] : memref<1x26x29x12xf32, #tpu.memory_space<vmem>>, vector<1x8x16x12xf32>
    %c3_196 = arith.constant 3 : index
    %c0_197 = arith.constant 0 : index
    %300 = vector.load %arg2[%c3_196, %c0_197] : memref<25x12xf32, #tpu.memory_space<vmem>>, vector<1x12xf32>
    %301 = vector.shape_cast %300 : vector<1x12xf32> to vector<12xf32>
    %302 = vector.shape_cast %301 : vector<12xf32> to vector<1x1x1x12xf32>
    %303 = vector.broadcast %302 : vector<1x1x1x12xf32> to vector<1x8x16x12xf32>
    %304 = arith.mulf %299, %303 : vector<1x8x16x12xf32>
    %305 = arith.addf %296, %304 : vector<1x8x16x12xf32>
    %c4_i32_198 = arith.constant 4 : i32
    %306 = arith.addi %c4_i32_198, %268 : i32
    %c0_199 = arith.constant 0 : index
    %307 = arith.index_cast %306 : i32 to index
    %c7_200 = arith.constant 7 : index
    %c0_201 = arith.constant 0 : index
    %308 = vector.load %arg5[%c0_199, %307, %c7_200, %c0_201] : memref<1x26x29x12xf32, #tpu.memory_space<vmem>>, vector<1x8x16x12xf32>
    %c4_202 = arith.constant 4 : index
    %c0_203 = arith.constant 0 : index
    %309 = vector.load %arg2[%c4_202, %c0_203] : memref<25x12xf32, #tpu.memory_space<vmem>>, vector<1x12xf32>
    %310 = vector.shape_cast %309 : vector<1x12xf32> to vector<12xf32>
    %311 = vector.shape_cast %310 : vector<12xf32> to vector<1x1x1x12xf32>
    %312 = vector.broadcast %311 : vector<1x1x1x12xf32> to vector<1x8x16x12xf32>
    %313 = arith.mulf %308, %312 : vector<1x8x16x12xf32>
    %314 = arith.addf %305, %313 : vector<1x8x16x12xf32>
    %c4_i32_204 = arith.constant 4 : i32
    %315 = arith.addi %c4_i32_204, %268 : i32
    %c0_205 = arith.constant 0 : index
    %316 = arith.index_cast %315 : i32 to index
    %c8_206 = arith.constant 8 : index
    %c0_207 = arith.constant 0 : index
    %317 = vector.load %arg5[%c0_205, %316, %c8_206, %c0_207] : memref<1x26x29x12xf32, #tpu.memory_space<vmem>>, vector<1x8x16x12xf32>
    %c5_208 = arith.constant 5 : index
    %c0_209 = arith.constant 0 : index
    %318 = vector.load %arg2[%c5_208, %c0_209] : memref<25x12xf32, #tpu.memory_space<vmem>>, vector<1x12xf32>
    %319 = vector.shape_cast %318 : vector<1x12xf32> to vector<12xf32>
    %320 = vector.shape_cast %319 : vector<12xf32> to vector<1x1x1x12xf32>
    %321 = vector.broadcast %320 : vector<1x1x1x12xf32> to vector<1x8x16x12xf32>
    %322 = arith.mulf %317, %321 : vector<1x8x16x12xf32>
    %323 = arith.addf %314, %322 : vector<1x8x16x12xf32>
    %c4_i32_210 = arith.constant 4 : i32
    %324 = arith.addi %c4_i32_210, %268 : i32
    %c0_211 = arith.constant 0 : index
    %325 = arith.index_cast %324 : i32 to index
    %c9_212 = arith.constant 9 : index
    %c0_213 = arith.constant 0 : index
    %326 = vector.load %arg5[%c0_211, %325, %c9_212, %c0_213] : memref<1x26x29x12xf32, #tpu.memory_space<vmem>>, vector<1x8x16x12xf32>
    %c6_214 = arith.constant 6 : index
    %c0_215 = arith.constant 0 : index
    %327 = vector.load %arg2[%c6_214, %c0_215] : memref<25x12xf32, #tpu.memory_space<vmem>>, vector<1x12xf32>
    %328 = vector.shape_cast %327 : vector<1x12xf32> to vector<12xf32>
    %329 = vector.shape_cast %328 : vector<12xf32> to vector<1x1x1x12xf32>
    %330 = vector.broadcast %329 : vector<1x1x1x12xf32> to vector<1x8x16x12xf32>
    %331 = arith.mulf %326, %330 : vector<1x8x16x12xf32>
    %332 = arith.addf %323, %331 : vector<1x8x16x12xf32>
    %c5_i32_216 = arith.constant 5 : i32
    %333 = arith.addi %c5_i32_216, %268 : i32
    %c0_217 = arith.constant 0 : index
    %334 = arith.index_cast %333 : i32 to index
    %c3_218 = arith.constant 3 : index
    %c0_219 = arith.constant 0 : index
    %335 = vector.load %arg5[%c0_217, %334, %c3_218, %c0_219] : memref<1x26x29x12xf32, #tpu.memory_space<vmem>>, vector<1x8x16x12xf32>
    %c7_220 = arith.constant 7 : index
    %c0_221 = arith.constant 0 : index
    %336 = vector.load %arg2[%c7_220, %c0_221] : memref<25x12xf32, #tpu.memory_space<vmem>>, vector<1x12xf32>
    %337 = vector.shape_cast %336 : vector<1x12xf32> to vector<12xf32>
    %338 = vector.shape_cast %337 : vector<12xf32> to vector<1x1x1x12xf32>
    %339 = vector.broadcast %338 : vector<1x1x1x12xf32> to vector<1x8x16x12xf32>
    %340 = arith.mulf %335, %339 : vector<1x8x16x12xf32>
    %341 = arith.addf %332, %340 : vector<1x8x16x12xf32>
    %c5_i32_222 = arith.constant 5 : i32
    %342 = arith.addi %c5_i32_222, %268 : i32
    %c0_223 = arith.constant 0 : index
    %343 = arith.index_cast %342 : i32 to index
    %c4_224 = arith.constant 4 : index
    %c0_225 = arith.constant 0 : index
    %344 = vector.load %arg5[%c0_223, %343, %c4_224, %c0_225] : memref<1x26x29x12xf32, #tpu.memory_space<vmem>>, vector<1x8x16x12xf32>
    %c8_226 = arith.constant 8 : index
    %c0_227 = arith.constant 0 : index
    %345 = vector.load %arg2[%c8_226, %c0_227] : memref<25x12xf32, #tpu.memory_space<vmem>>, vector<1x12xf32>
    %346 = vector.shape_cast %345 : vector<1x12xf32> to vector<12xf32>
    %347 = vector.shape_cast %346 : vector<12xf32> to vector<1x1x1x12xf32>
    %348 = vector.broadcast %347 : vector<1x1x1x12xf32> to vector<1x8x16x12xf32>
    %349 = arith.mulf %344, %348 : vector<1x8x16x12xf32>
    %350 = arith.addf %341, %349 : vector<1x8x16x12xf32>
    %c5_i32_228 = arith.constant 5 : i32
    %351 = arith.addi %c5_i32_228, %268 : i32
    %c0_229 = arith.constant 0 : index
    %352 = arith.index_cast %351 : i32 to index
    %c5_230 = arith.constant 5 : index
    %c0_231 = arith.constant 0 : index
    %353 = vector.load %arg5[%c0_229, %352, %c5_230, %c0_231] : memref<1x26x29x12xf32, #tpu.memory_space<vmem>>, vector<1x8x16x12xf32>
    %c9_232 = arith.constant 9 : index
    %c0_233 = arith.constant 0 : index
    %354 = vector.load %arg2[%c9_232, %c0_233] : memref<25x12xf32, #tpu.memory_space<vmem>>, vector<1x12xf32>
    %355 = vector.shape_cast %354 : vector<1x12xf32> to vector<12xf32>
    %356 = vector.shape_cast %355 : vector<12xf32> to vector<1x1x1x12xf32>
    %357 = vector.broadcast %356 : vector<1x1x1x12xf32> to vector<1x8x16x12xf32>
    %358 = arith.mulf %353, %357 : vector<1x8x16x12xf32>
    %359 = arith.addf %350, %358 : vector<1x8x16x12xf32>
    %c5_i32_234 = arith.constant 5 : i32
    %360 = arith.addi %c5_i32_234, %268 : i32
    %c0_235 = arith.constant 0 : index
    %361 = arith.index_cast %360 : i32 to index
    %c6_236 = arith.constant 6 : index
    %c0_237 = arith.constant 0 : index
    %362 = vector.load %arg5[%c0_235, %361, %c6_236, %c0_237] : memref<1x26x29x12xf32, #tpu.memory_space<vmem>>, vector<1x8x16x12xf32>
    %c10_238 = arith.constant 10 : index
    %c0_239 = arith.constant 0 : index
    %363 = vector.load %arg2[%c10_238, %c0_239] : memref<25x12xf32, #tpu.memory_space<vmem>>, vector<1x12xf32>
    %364 = vector.shape_cast %363 : vector<1x12xf32> to vector<12xf32>
    %365 = vector.shape_cast %364 : vector<12xf32> to vector<1x1x1x12xf32>
    %366 = vector.broadcast %365 : vector<1x1x1x12xf32> to vector<1x8x16x12xf32>
    %367 = arith.mulf %362, %366 : vector<1x8x16x12xf32>
    %368 = arith.addf %359, %367 : vector<1x8x16x12xf32>
    %c5_i32_240 = arith.constant 5 : i32
    %369 = arith.addi %c5_i32_240, %268 : i32
    %c0_241 = arith.constant 0 : index
    %370 = arith.index_cast %369 : i32 to index
    %c7_242 = arith.constant 7 : index
    %c0_243 = arith.constant 0 : index
    %371 = vector.load %arg5[%c0_241, %370, %c7_242, %c0_243] : memref<1x26x29x12xf32, #tpu.memory_space<vmem>>, vector<1x8x16x12xf32>
    %c11_244 = arith.constant 11 : index
    %c0_245 = arith.constant 0 : index
    %372 = vector.load %arg2[%c11_244, %c0_245] : memref<25x12xf32, #tpu.memory_space<vmem>>, vector<1x12xf32>
    %373 = vector.shape_cast %372 : vector<1x12xf32> to vector<12xf32>
    %374 = vector.shape_cast %373 : vector<12xf32> to vector<1x1x1x12xf32>
    %375 = vector.broadcast %374 : vector<1x1x1x12xf32> to vector<1x8x16x12xf32>
    %376 = arith.mulf %371, %375 : vector<1x8x16x12xf32>
    %377 = arith.addf %368, %376 : vector<1x8x16x12xf32>
    %c5_i32_246 = arith.constant 5 : i32
    %378 = arith.addi %c5_i32_246, %268 : i32
    %c0_247 = arith.constant 0 : index
    %379 = arith.index_cast %378 : i32 to index
    %c8_248 = arith.constant 8 : index
    %c0_249 = arith.constant 0 : index
    %380 = vector.load %arg5[%c0_247, %379, %c8_248, %c0_249] : memref<1x26x29x12xf32, #tpu.memory_space<vmem>>, vector<1x8x16x12xf32>
    %c12_250 = arith.constant 12 : index
    %c0_251 = arith.constant 0 : index
    %381 = vector.load %arg2[%c12_250, %c0_251] : memref<25x12xf32, #tpu.memory_space<vmem>>, vector<1x12xf32>
    %382 = vector.shape_cast %381 : vector<1x12xf32> to vector<12xf32>
    %383 = vector.shape_cast %382 : vector<12xf32> to vector<1x1x1x12xf32>
    %384 = vector.broadcast %383 : vector<1x1x1x12xf32> to vector<1x8x16x12xf32>
    %385 = arith.mulf %380, %384 : vector<1x8x16x12xf32>
    %386 = arith.addf %377, %385 : vector<1x8x16x12xf32>
    %c5_i32_252 = arith.constant 5 : i32
    %387 = arith.addi %c5_i32_252, %268 : i32
    %c0_253 = arith.constant 0 : index
    %388 = arith.index_cast %387 : i32 to index
    %c9_254 = arith.constant 9 : index
    %c0_255 = arith.constant 0 : index
    %389 = vector.load %arg5[%c0_253, %388, %c9_254, %c0_255] : memref<1x26x29x12xf32, #tpu.memory_space<vmem>>, vector<1x8x16x12xf32>
    %c13_256 = arith.constant 13 : index
    %c0_257 = arith.constant 0 : index
    %390 = vector.load %arg2[%c13_256, %c0_257] : memref<25x12xf32, #tpu.memory_space<vmem>>, vector<1x12xf32>
    %391 = vector.shape_cast %390 : vector<1x12xf32> to vector<12xf32>
    %392 = vector.shape_cast %391 : vector<12xf32> to vector<1x1x1x12xf32>
    %393 = vector.broadcast %392 : vector<1x1x1x12xf32> to vector<1x8x16x12xf32>
    %394 = arith.mulf %389, %393 : vector<1x8x16x12xf32>
    %395 = arith.addf %386, %394 : vector<1x8x16x12xf32>
    %c5_i32_258 = arith.constant 5 : i32
    %396 = arith.addi %c5_i32_258, %268 : i32
    %c0_259 = arith.constant 0 : index
    %397 = arith.index_cast %396 : i32 to index
    %c10_260 = arith.constant 10 : index
    %c0_261 = arith.constant 0 : index
    %398 = vector.load %arg5[%c0_259, %397, %c10_260, %c0_261] : memref<1x26x29x12xf32, #tpu.memory_space<vmem>>, vector<1x8x16x12xf32>
    %c14_262 = arith.constant 14 : index
    %c0_263 = arith.constant 0 : index
    %399 = vector.load %arg2[%c14_262, %c0_263] : memref<25x12xf32, #tpu.memory_space<vmem>>, vector<1x12xf32>
    %400 = vector.shape_cast %399 : vector<1x12xf32> to vector<12xf32>
    %401 = vector.shape_cast %400 : vector<12xf32> to vector<1x1x1x12xf32>
    %402 = vector.broadcast %401 : vector<1x1x1x12xf32> to vector<1x8x16x12xf32>
    %403 = arith.mulf %398, %402 : vector<1x8x16x12xf32>
    %404 = arith.addf %395, %403 : vector<1x8x16x12xf32>
    %c5_i32_264 = arith.constant 5 : i32
    %405 = arith.addi %c5_i32_264, %268 : i32
    %c0_265 = arith.constant 0 : index
    %406 = arith.index_cast %405 : i32 to index
    %c11_266 = arith.constant 11 : index
    %c0_267 = arith.constant 0 : index
    %407 = vector.load %arg5[%c0_265, %406, %c11_266, %c0_267] : memref<1x26x29x12xf32, #tpu.memory_space<vmem>>, vector<1x8x16x12xf32>
    %c15_268 = arith.constant 15 : index
    %c0_269 = arith.constant 0 : index
    %408 = vector.load %arg2[%c15_268, %c0_269] : memref<25x12xf32, #tpu.memory_space<vmem>>, vector<1x12xf32>
    %409 = vector.shape_cast %408 : vector<1x12xf32> to vector<12xf32>
    %410 = vector.shape_cast %409 : vector<12xf32> to vector<1x1x1x12xf32>
    %411 = vector.broadcast %410 : vector<1x1x1x12xf32> to vector<1x8x16x12xf32>
    %412 = arith.mulf %407, %411 : vector<1x8x16x12xf32>
    %413 = arith.addf %404, %412 : vector<1x8x16x12xf32>
    %c5_i32_270 = arith.constant 5 : i32
    %414 = arith.addi %c5_i32_270, %268 : i32
    %c0_271 = arith.constant 0 : index
    %415 = arith.index_cast %414 : i32 to index
    %c12_272 = arith.constant 12 : index
    %c0_273 = arith.constant 0 : index
    %416 = vector.load %arg5[%c0_271, %415, %c12_272, %c0_273] : memref<1x26x29x12xf32, #tpu.memory_space<vmem>>, vector<1x8x16x12xf32>
    %c16_274 = arith.constant 16 : index
    %c0_275 = arith.constant 0 : index
    %417 = vector.load %arg2[%c16_274, %c0_275] : memref<25x12xf32, #tpu.memory_space<vmem>>, vector<1x12xf32>
    %418 = vector.shape_cast %417 : vector<1x12xf32> to vector<12xf32>
    %419 = vector.shape_cast %418 : vector<12xf32> to vector<1x1x1x12xf32>
    %420 = vector.broadcast %419 : vector<1x1x1x12xf32> to vector<1x8x16x12xf32>
    %421 = arith.mulf %416, %420 : vector<1x8x16x12xf32>
    %422 = arith.addf %413, %421 : vector<1x8x16x12xf32>
    %c5_i32_276 = arith.constant 5 : i32
    %423 = arith.addi %c5_i32_276, %268 : i32
    %c0_277 = arith.constant 0 : index
    %424 = arith.index_cast %423 : i32 to index
    %c13_278 = arith.constant 13 : index
    %c0_279 = arith.constant 0 : index
    %425 = vector.load %arg5[%c0_277, %424, %c13_278, %c0_279] : memref<1x26x29x12xf32, #tpu.memory_space<vmem>>, vector<1x8x16x12xf32>
    %c17_280 = arith.constant 17 : index
    %c0_281 = arith.constant 0 : index
    %426 = vector.load %arg2[%c17_280, %c0_281] : memref<25x12xf32, #tpu.memory_space<vmem>>, vector<1x12xf32>
    %427 = vector.shape_cast %426 : vector<1x12xf32> to vector<12xf32>
    %428 = vector.shape_cast %427 : vector<12xf32> to vector<1x1x1x12xf32>
    %429 = vector.broadcast %428 : vector<1x1x1x12xf32> to vector<1x8x16x12xf32>
    %430 = arith.mulf %425, %429 : vector<1x8x16x12xf32>
    %431 = arith.addf %422, %430 : vector<1x8x16x12xf32>
    %c6_i32_282 = arith.constant 6 : i32
    %432 = arith.addi %c6_i32_282, %268 : i32
    %c0_283 = arith.constant 0 : index
    %433 = arith.index_cast %432 : i32 to index
    %c7_284 = arith.constant 7 : index
    %c0_285 = arith.constant 0 : index
    %434 = vector.load %arg5[%c0_283, %433, %c7_284, %c0_285] : memref<1x26x29x12xf32, #tpu.memory_space<vmem>>, vector<1x8x16x12xf32>
    %c18_286 = arith.constant 18 : index
    %c0_287 = arith.constant 0 : index
    %435 = vector.load %arg2[%c18_286, %c0_287] : memref<25x12xf32, #tpu.memory_space<vmem>>, vector<1x12xf32>
    %436 = vector.shape_cast %435 : vector<1x12xf32> to vector<12xf32>
    %437 = vector.shape_cast %436 : vector<12xf32> to vector<1x1x1x12xf32>
    %438 = vector.broadcast %437 : vector<1x1x1x12xf32> to vector<1x8x16x12xf32>
    %439 = arith.mulf %434, %438 : vector<1x8x16x12xf32>
    %440 = arith.addf %431, %439 : vector<1x8x16x12xf32>
    %c6_i32_288 = arith.constant 6 : i32
    %441 = arith.addi %c6_i32_288, %268 : i32
    %c0_289 = arith.constant 0 : index
    %442 = arith.index_cast %441 : i32 to index
    %c8_290 = arith.constant 8 : index
    %c0_291 = arith.constant 0 : index
    %443 = vector.load %arg5[%c0_289, %442, %c8_290, %c0_291] : memref<1x26x29x12xf32, #tpu.memory_space<vmem>>, vector<1x8x16x12xf32>
    %c19_292 = arith.constant 19 : index
    %c0_293 = arith.constant 0 : index
    %444 = vector.load %arg2[%c19_292, %c0_293] : memref<25x12xf32, #tpu.memory_space<vmem>>, vector<1x12xf32>
    %445 = vector.shape_cast %444 : vector<1x12xf32> to vector<12xf32>
    %446 = vector.shape_cast %445 : vector<12xf32> to vector<1x1x1x12xf32>
    %447 = vector.broadcast %446 : vector<1x1x1x12xf32> to vector<1x8x16x12xf32>
    %448 = arith.mulf %443, %447 : vector<1x8x16x12xf32>
    %449 = arith.addf %440, %448 : vector<1x8x16x12xf32>
    %c6_i32_294 = arith.constant 6 : i32
    %450 = arith.addi %c6_i32_294, %268 : i32
    %c0_295 = arith.constant 0 : index
    %451 = arith.index_cast %450 : i32 to index
    %c9_296 = arith.constant 9 : index
    %c0_297 = arith.constant 0 : index
    %452 = vector.load %arg5[%c0_295, %451, %c9_296, %c0_297] : memref<1x26x29x12xf32, #tpu.memory_space<vmem>>, vector<1x8x16x12xf32>
    %c20_298 = arith.constant 20 : index
    %c0_299 = arith.constant 0 : index
    %453 = vector.load %arg2[%c20_298, %c0_299] : memref<25x12xf32, #tpu.memory_space<vmem>>, vector<1x12xf32>
    %454 = vector.shape_cast %453 : vector<1x12xf32> to vector<12xf32>
    %455 = vector.shape_cast %454 : vector<12xf32> to vector<1x1x1x12xf32>
    %456 = vector.broadcast %455 : vector<1x1x1x12xf32> to vector<1x8x16x12xf32>
    %457 = arith.mulf %452, %456 : vector<1x8x16x12xf32>
    %458 = arith.addf %449, %457 : vector<1x8x16x12xf32>
    %c7_i32_300 = arith.constant 7 : i32
    %459 = arith.addi %c7_i32_300, %268 : i32
    %c0_301 = arith.constant 0 : index
    %460 = arith.index_cast %459 : i32 to index
    %c8_302 = arith.constant 8 : index
    %c0_303 = arith.constant 0 : index
    %461 = vector.load %arg5[%c0_301, %460, %c8_302, %c0_303] : memref<1x26x29x12xf32, #tpu.memory_space<vmem>>, vector<1x8x16x12xf32>
    %c21_304 = arith.constant 21 : index
    %c0_305 = arith.constant 0 : index
    %462 = vector.load %arg2[%c21_304, %c0_305] : memref<25x12xf32, #tpu.memory_space<vmem>>, vector<1x12xf32>
    %463 = vector.shape_cast %462 : vector<1x12xf32> to vector<12xf32>
    %464 = vector.shape_cast %463 : vector<12xf32> to vector<1x1x1x12xf32>
    %465 = vector.broadcast %464 : vector<1x1x1x12xf32> to vector<1x8x16x12xf32>
    %466 = arith.mulf %461, %465 : vector<1x8x16x12xf32>
    %467 = arith.addf %458, %466 : vector<1x8x16x12xf32>
    %c8_i32_306 = arith.constant 8 : i32
    %468 = arith.addi %c8_i32_306, %268 : i32
    %c0_307 = arith.constant 0 : index
    %469 = arith.index_cast %468 : i32 to index
    %c8_308 = arith.constant 8 : index
    %c0_309 = arith.constant 0 : index
    %470 = vector.load %arg5[%c0_307, %469, %c8_308, %c0_309] : memref<1x26x29x12xf32, #tpu.memory_space<vmem>>, vector<1x8x16x12xf32>
    %c22_310 = arith.constant 22 : index
    %c0_311 = arith.constant 0 : index
    %471 = vector.load %arg2[%c22_310, %c0_311] : memref<25x12xf32, #tpu.memory_space<vmem>>, vector<1x12xf32>
    %472 = vector.shape_cast %471 : vector<1x12xf32> to vector<12xf32>
    %473 = vector.shape_cast %472 : vector<12xf32> to vector<1x1x1x12xf32>
    %474 = vector.broadcast %473 : vector<1x1x1x12xf32> to vector<1x8x16x12xf32>
    %475 = arith.mulf %470, %474 : vector<1x8x16x12xf32>
    %476 = arith.addf %467, %475 : vector<1x8x16x12xf32>
    %c9_i32_312 = arith.constant 9 : i32
    %477 = arith.addi %c9_i32_312, %268 : i32
    %c0_313 = arith.constant 0 : index
    %478 = arith.index_cast %477 : i32 to index
    %c8_314 = arith.constant 8 : index
    %c0_315 = arith.constant 0 : index
    %479 = vector.load %arg5[%c0_313, %478, %c8_314, %c0_315] : memref<1x26x29x12xf32, #tpu.memory_space<vmem>>, vector<1x8x16x12xf32>
    %c23_316 = arith.constant 23 : index
    %c0_317 = arith.constant 0 : index
    %480 = vector.load %arg2[%c23_316, %c0_317] : memref<25x12xf32, #tpu.memory_space<vmem>>, vector<1x12xf32>
    %481 = vector.shape_cast %480 : vector<1x12xf32> to vector<12xf32>
    %482 = vector.shape_cast %481 : vector<12xf32> to vector<1x1x1x12xf32>
    %483 = vector.broadcast %482 : vector<1x1x1x12xf32> to vector<1x8x16x12xf32>
    %484 = arith.mulf %479, %483 : vector<1x8x16x12xf32>
    %485 = arith.addf %476, %484 : vector<1x8x16x12xf32>
    %c10_i32_318 = arith.constant 10 : i32
    %486 = arith.addi %c10_i32_318, %268 : i32
    %c0_319 = arith.constant 0 : index
    %487 = arith.index_cast %486 : i32 to index
    %c8_320 = arith.constant 8 : index
    %c0_321 = arith.constant 0 : index
    %488 = vector.load %arg5[%c0_319, %487, %c8_320, %c0_321] : memref<1x26x29x12xf32, #tpu.memory_space<vmem>>, vector<1x8x16x12xf32>
    %c24_322 = arith.constant 24 : index
    %c0_323 = arith.constant 0 : index
    %489 = vector.load %arg2[%c24_322, %c0_323] : memref<25x12xf32, #tpu.memory_space<vmem>>, vector<1x12xf32>
    %490 = vector.shape_cast %489 : vector<1x12xf32> to vector<12xf32>
    %491 = vector.shape_cast %490 : vector<12xf32> to vector<1x1x1x12xf32>
    %492 = vector.broadcast %491 : vector<1x1x1x12xf32> to vector<1x8x16x12xf32>
    %493 = arith.mulf %488, %492 : vector<1x8x16x12xf32>
    %494 = arith.addf %485, %493 : vector<1x8x16x12xf32>
    %c0_324 = arith.constant 0 : index
    %c0_325 = arith.constant 0 : index
    %495 = vector.load %arg3[%c0_324, %c0_325] : memref<1x12xf32, #tpu.memory_space<vmem>>, vector<1x12xf32>
    %496 = vector.shape_cast %495 : vector<1x12xf32> to vector<1x1x1x12xf32>
    %497 = vector.broadcast %496 : vector<1x1x1x12xf32> to vector<1x8x16x12xf32>
    %498 = arith.addf %494, %497 : vector<1x8x16x12xf32>
    %c0_326 = arith.constant 0 : index
    %499 = arith.index_cast %268 : i32 to index
    %c0_327 = arith.constant 0 : index
    %c0_328 = arith.constant 0 : index
    %500 = vector.load %arg1[%c0_326, %499, %c0_327, %c0_328] : memref<1x16x16x32xf32, #tpu.memory_space<vmem>>, vector<1x8x16x20xf32>
    %501 = tpu.concatenate %500, %498 in 3 : vector<1x8x16x20xf32>, vector<1x8x16x12xf32> -> vector<1x8x16x32xf32>
    %c0_329 = arith.constant 0 : index
    %502 = arith.index_cast %268 : i32 to index
    %c0_330 = arith.constant 0 : index
    %c0_331 = arith.constant 0 : index
    %503 = vector.load %arg4[%c0_329, %502, %c0_330, %c0_331] : memref<1x16x16x32xf32, #tpu.memory_space<vmem>>, vector<1x8x16x32xf32>
    tpu.vector_store %arg4[%c0_329, %502, %c0_330, %c0_331], %501 {strides = array<i32>} : memref<1x16x16x32xf32, #tpu.memory_space<vmem>>, vector<1x8x16x32xf32>,
    %c2_i32_332 = arith.constant 2 : i32
    return
  }
  func.func @transform_0(%arg0: i32) -> (i32, i32, i32, i32) {
    %c0_i32 = arith.constant 0 : i32
    %c0_i32_0 = arith.constant 0 : i32
    %c0_i32_1 = arith.constant 0 : i32
    %c0_i32_2 = arith.constant 0 : i32
    return %arg0, %c0_i32, %c0_i32_0, %c0_i32_1 : i32, i32, i32, i32
  }
  func.func @transform_1(%arg0: i32) -> (i32, i32) {
    %c0_i32 = arith.constant 0 : i32
    %c0_i32_0 = arith.constant 0 : i32
    %c0_i32_1 = arith.constant 0 : i32
    return %c0_i32, %c0_i32_0 : i32, i32
  }
  func.func @transform_2(%arg0: i32) -> (i32, i32) {
    %c0_i32 = arith.constant 0 : i32
    %c0_i32_0 = arith.constant 0 : i32
    %c0_i32_1 = arith.constant 0 : i32
    return %c0_i32, %c0_i32_0 : i32, i32
  }
  func.func @transform_3(%arg0: i32) -> (i32, i32, i32, i32) {
    %c0_i32 = arith.constant 0 : i32
    %c0_i32_0 = arith.constant 0 : i32
    %c0_i32_1 = arith.constant 0 : i32
    %c0_i32_2 = arith.constant 0 : i32
    return %arg0, %c0_i32, %c0_i32_0, %c0_i32_1 : i32, i32, i32, i32
  }
}

</mosaic_0001>

<bundles_post_ra>
// kernel: inception_dwconv2d_nhwc.1
= control target key start
LH: loop header
LB: loop body
LE: loop exit
PB: predicated region body
PF: predicated region fallthrough
CT: control target
= control target key end

     0   :  { %8 = vsyncpa [#allocation4], 0  ;;  %s6798_s0 = inlined_call_operand.hbm [shape: f32[2,16,16,32], index: 0, kind: input, shape index: {}]   ;;  %s6799_s1 = inlined_call_operand.vmem [shape: f32[25,12], index: 1, kind: input, shape index: {}]   ;;  %s6800_s2 = inlined_call_operand.vmem [shape: f32[1,12], index: 2, kind: input, shape index: {}]   ;;  %s6801_s3 = inlined_call_operand.hbm [shape: f32[2,16,16,32], index: 3, kind: output, shape index: {}]  }
   0x1   :  { %10 = vsyncpa [#allocation4 + $0x1], 0 }
   0x2   :  { %11 = vsyncpa [#allocation5], 0 }
   0x3   :  { %13 = vsyncpa [#allocation5 + $0x1], 0  ;;  %s3873_s12 = smov 0   ;;  %s3875_s13 = smov 0  }
   0x4   :  { %s3877_s14 = smov 0   ;;  %s3879_s15 = smov 0  }
   0x5 LB: > { %s3894_s16 = sadd.s32 4294967295, %s3842_s15   ;;  %s3511_s17 = sadd.s32 4294967294, %s3842_s15   ;;  %s3842_s15 = sphi %s3879_s15, %s7128_s15   ;;  %s3838_s14 = sphi %s3877_s14, %s7127_s14   ;;  %s3834_s13 = sphi %s3875_s13, %s7126_s13   ;;  %s3830_s12 = sphi %s3873_s12, %s7125_s12  }
   0x6   : > { %s3898_s18 = sadd.s32 1, %s3842_s15   ;;  %s26_s19 = sadd.s32 1, %s3838_s14 }
   0x7   : > { %s23_s20 = ssub.s32 %s3842_s15, %s3898_s18  ;;  %p33_p0 = scmp.ne.s32.totalorder %s3838_s14, %s3834_s13 }
   0x8   : > { %p24_p1 = scmp.eq.s32.totalorder %s23_s20, 0  ;;  %p34_p2 = scmp.eq.s32.totalorder %s3842_s15, 0 }
   0x9   : > { %p39_p3 = scmp.ne.s32.totalorder %s3834_s13, %s3830_s12  ;;  %p40_p4 = scmp.eq.s32.totalorder %s3894_s16, 0 }
   0xa   : > { %s3910_s21 = scalar_select %p24_p1, %s3838_s14, %s26_s19  }
   0xb   : > { %p3912_p5 = por %p34_p2, %p33_p0  ;;  %p3916_p6 = por %p40_p4, %p39_p3 }
   0xc   : > { %p105_p7 = scmp.eq.s32.totalorder %s3894_s16, 1  ;;  %p111_p8 = scmp.eq.s32.totalorder %s3511_s17, 1 }
   0xd   : > { %p3639_p10 = scmp.lt.s32.totalorder %s3842_s15, 2  ;;  %s137_s26 = sand.u32 1, %s3838_s14  }
   0xe   : > { %p3923_p11 = por %p105_p7, %p33_p0  ;;  %p3927_p12 = por %p111_p8, %p39_p3 }
   0xf   : > { %s3625_s27 = sshll.u32 %s3842_s15, 12  ;;  %s3514_s28 = sshll.u32 %s137_s26, 8 }
  0x10   : > { %s6858_s24 = scalar_select %p3923_p11, 1, 0 }
  0x11   : > { %s6859_s25 = scalar_select %p3927_p12, 1, 0 }
  0x12   : > { %s3936_s4 = scalar_lea.hbm %s6798_s0, %s3625_s27  ;;  %s141_s5 = scalar_lea.vmem [#allocation3], %s3514_s28 }
  0x13   : > { %s148_s6 = sshll.u32 %s141_s5, 4  ;;  %p3940_p13 = pnand %p3639_p10, %p3912_p5  ;;  %s3944_s6 = int_to_ptr.vmem [resolvable:$true] %s148_s6 }
  0x14   : > { %s3946_s8 = scalar_lea.sflag [#allocation4], %s137_s26  ;;  %s3746_s9 = scalar_lea.hbm %s3936_s4, 4096 }
  0x15   : > { %p3747_p0 = scmp.ne.s32.totalorder %s3936_s4, %s3746_s9  ;;  %p3748_p1 = pneg %p3940_p13 }
  0x16   : > { %s3751_s17 = scalar_lea.hbm %s6798_s0, 8192  ;;  %p3752_p4 = scmp.lt.u32.totalorder %s3936_s4, %s6798_s0 }
  0x17   : > { %p3749_p2 = pnand %p3748_p1, %p3747_p0  ;;  %p3753_p5 = scmp.lt.u32.totalorder %s3751_s17, %s3746_s9 }
  0x18   : > { %p3755_p8 = scmp.lt.u32.totalorder %s3746_s9, %s3936_s4 }
  0x19   : > { %p3750_p3 = pneg %p3749_p2  ;;  %p3754_p7 = por %p3753_p5, %p3752_p4 }
  0x1b   : > { %p3756_p10 = por %p3755_p8, %p3754_p7 }
  0x1d   : > { %p3757_p9 = pnand %p3756_p10, %p3750_p3 }
  0x1f   : > { %3760 = shalt.err (!%p3757_p9)
}
  0x20   : > { %s3761_s22 = scalar_lea.vmem %s3944_s6, 4096  ;;  %s3844_s26 = smov [#allocation3]  }
  0x21   : > { %p3762_p0 = scmp.ne.s32.totalorder %s3944_s6, %s3761_s22  ;;  %s3766_s27 = sshll.u32 %s3844_s26, 4  ;;  %s3767_s27 = int_to_ptr.vmem [resolvable:$false] %s3766_s27 }
  0x22   : > { %s3768_s28 = scalar_lea.vmem %s3767_s27, 8192  ;;  %p3769_p11 = scmp.lt.s32.totalorder %s3944_s6, %s3767_s27 }
  0x23   : > { %p3764_p2 = pnand %p3762_p0, %p3748_p1  ;;  %p3770_p4 = scmp.lt.s32.totalorder %s3768_s28, %s3761_s22 }
  0x25   : > { %p3765_p12 = pneg %p3764_p2  ;;  %p3771_p5 = por %p3770_p4, %p3769_p11 }
  0x27   : > { %p3772_p7 = pnand %p3771_p5, %p3765_p12 }
  0x29   : > { %3775 = shalt.err (!%p3772_p7)
}
  0x2a   : > { %s3845_s29 = smov 128   ;;  %s3846_s30 = smov 8  }
  0x2b   : > { %3634 = dma.hbm_to_vmem [thread:$0]  (!%p3940_p13), %s3936_s4, 4096, %s3944_s6, %s3946_s8, %s3845_s29, %s3845_s29, %s3846_s30  }
  0x2c   : > { %p3517_p9 = scmp.ge.s32.totalorder %s3842_s15, 1  ;;  %p156_p1 = scmp.lt.s32.totalorder %s3842_s15, 3 }
  0x2e   : > { %p157_p3 = pnand %p3517_p9, %p156_p1 }
  0x30   : > { %160 = sbr.rel (%p157_p3) target bundleno = 736 (0x2e0), region = 32 }
  0x37   : > { %s3977_s5 = sand.u32 1, %s3834_s13  }
  0x38   : > { %s3518_s9 = sshll.u32 %s3977_s5, 8  ;;  %s163_s10 = scalar_lea.sflag [#allocation4], %s3977_s5 }
  0x39   : > { %s3983_s11 = scalar_lea.vmem [#allocation3], %s3518_s9 }
  0x3a   : > { %3821 = dma.done.wait (%p3916_p6), %s163_s10, 4096  }
  0x3b   : > { %3823 = vsyncadd (%p3916_p6), %s163_s10, 4294963200  ;;  %vm189_vm0 = vcmask 97280   ;;  %vm193_vm1 = vcmask 94208   ;;  %v3847_v0 = vmov 0.0   ;;  %v269_v1 = vld [vmem:[%s3983_s11 + $0x10] sm:$0xff]  ;;  %v267_v2 = vld [vmem:[%s3983_s11] sm:$0xff] }
  0x3c   : > { %191 = vst.msk [vmem:[#allocation2 + $0x8] sm:$0xff] %vm189_vm0, %v3847_v0  ;;  %192 = vst.msk [vmem:[#allocation2 + $0x10] sm:$0xff] %vm189_vm0, %v3847_v0  ;;  %s3848_s23 = smov 108   ;;  %v270_v3 = vld [vmem:[%s3983_s11 + $0x18] sm:$0xff]  ;;  %v268_v4 = vld [vmem:[%s3983_s11 + $0x8] sm:$0xff]  ;;  %vm1900_vm2 = vcmask 162816  }
  0x3d   : > { %196 = vst.msk [vmem:[#allocation2 + $0x28] sm:$0xff] %vm189_vm0, %v3847_v0  ;;  %197 = vst.msk [vmem:[#allocation2 + $0x30] sm:$0xff] %vm189_vm0, %v3847_v0  ;;  %304 = vrot.lane.b32.xlu1 %v269_v1, %s3848_s23  ;;  %300 = vrot.lane.b32.xlu0 %v267_v2, %s3848_s23  ;;  %v272_v5 = vld [vmem:[%s3983_s11 + $0x28] sm:$0xff]  ;;  %v271_v6 = vld [vmem:[%s3983_s11 + $0x20] sm:$0xff]  ;;  %vm1918_vm3 = vcmask 261120   ;;  %s6593_s30 = scalar_lea.vmem [#allocation6], %s3518_s9 }
  0x3e   : > { %200 = vst.msk [vmem:[#allocation2 + $0x48] sm:$0xff] %vm189_vm0, %v3847_v0  ;;  %201 = vst.msk [vmem:[#allocation2 + $0x50] sm:$0xff] %vm189_vm0, %v3847_v0  ;;  %v274_v7 = vld [vmem:[%s3983_s11 + $0x38] sm:$0xff]  ;;  %v273_v8 = vld [vmem:[%s3983_s11 + $0x30] sm:$0xff]  ;;  %s3626_s9 = sshll.u32 %s3894_s16, 12  ;;  %s3402_s7 = scalar_lea.sflag [#allocation5], %s3977_s5 }
  0x3f   : > { %204 = vst.msk [vmem:[#allocation2 + $0x68] sm:$0xff] %vm189_vm0, %v3847_v0  ;;  %205 = vst.msk [vmem:[#allocation2 + $0x70] sm:$0xff] %vm189_vm0, %v3847_v0  ;;  %v276_v9 = vld [vmem:[%s3983_s11 + $0x48] sm:$0xff]  ;;  %v275_v10 = vld [vmem:[%s3983_s11 + $0x40] sm:$0xff]  ;;  %s6749_s6 = scalar_lea.hbm %s6801_s3, %s3626_s9  ;;  %p7122_p11 = scmp.ne.s32.totalorder %s6858_s24, 0 }
  0x40   : > { %207 = vst.msk [vmem:[#allocation2 + $0x80] sm:$0xff] %vm189_vm0, %v3847_v0  ;;  %208 = vst.msk [vmem:[#allocation2 + $0x88] sm:$0xff] %vm189_vm0, %v3847_v0  ;;  %v278_v11 = vld [vmem:[%s3983_s11 + $0x58] sm:$0xff]  ;;  %v277_v12 = vld [vmem:[%s3983_s11 + $0x50] sm:$0xff]  ;;  %s3850_s16 = smov [#allocation6]  }
  0x41   : > { %209 = vst.msk [vmem:[#allocation2 + $0x90] sm:$0xff] %vm189_vm0, %v3847_v0  ;;  %212 = vst.msk [vmem:[#allocation2 + $0x2a0] sm:$0xff] %vm189_vm0, %v3847_v0  ;;  %306 = vrot.lane.b32.xlu1 %v270_v3, %s3848_s23  ;;  %302 = vrot.lane.b32.xlu0 %v268_v4, %s3848_s23  ;;  %v280_v13 = vld [vmem:[%s3983_s11 + $0x68] sm:$0xff]  ;;  %v279_v14 = vld [vmem:[%s3983_s11 + $0x60] sm:$0xff] }
  0x42   : > { %210 = vst.msk [vmem:[#allocation2 + $0x98] sm:$0x1f] %vm193_vm1, %v3847_v0  ;;  %215 = vst.msk [vmem:[#allocation2 + $0x2b8] sm:$0x1f] %vm193_vm1, %v3847_v0  ;;  %v282_v15 = vld [vmem:[%s3983_s11 + $0x78] sm:$0xff]  ;;  %v281_v16 = vld [vmem:[%s3983_s11 + $0x70] sm:$0xff] }
  0x43   : > { %213 = vst.msk [vmem:[#allocation2 + $0x2a8] sm:$0xff] %vm189_vm0, %v3847_v0  ;;  %214 = vst.msk [vmem:[#allocation2 + $0x2b0] sm:$0xff] %vm189_vm0, %v3847_v0  ;;  %v3521_v17 = vld [vmem:[%s3983_s11 + $0x88] sm:$0xff]  ;;  %v3520_v18 = vld [vmem:[%s3983_s11 + $0x80] sm:$0xff] }
  0x44   : > { %217 = vst.msk [vmem:[#allocation2 + $0x2c8] sm:$0xff] %vm189_vm0, %v3847_v0  ;;  %218 = vst.msk [vmem:[#allocation2 + $0x2d0] sm:$0xff] %vm189_vm0, %v3847_v0  ;;  %v3523_v19 = vld [vmem:[%s3983_s11 + $0x98] sm:$0xff]  ;;  %v3522_v20 = vld [vmem:[%s3983_s11 + $0x90] sm:$0xff] }
  0x45   : > { %221 = vst.msk [vmem:[#allocation2 + $0x2e8] sm:$0xff] %vm189_vm0, %v3847_v0  ;;  %222 = vst.msk [vmem:[#allocation2 + $0x2f0] sm:$0xff] %vm189_vm0, %v3847_v0  ;;  %310 = vrot.lane.b32.xlu1 %v272_v5, %s3848_s23  ;;  %308 = vrot.lane.b32.xlu0 %v271_v6, %s3848_s23  ;;  %v3525_v21 = vld [vmem:[%s3983_s11 + $0xa8] sm:$0xff]  ;;  %v3524_v22 = vld [vmem:[%s3983_s11 + $0xa0] sm:$0xff] }
  0x46   : > { %225 = vst.msk [vmem:[#allocation2 + $0x308] sm:$0xff] %vm189_vm0, %v3847_v0  ;;  %226 = vst.msk [vmem:[#allocation2 + $0x310] sm:$0xff] %vm189_vm0, %v3847_v0  ;;  %v3527_v23 = vld [vmem:[%s3983_s11 + $0xb8] sm:$0xff]  ;;  %v3526_v24 = vld [vmem:[%s3983_s11 + $0xb0] sm:$0xff] }
  0x47   : > { %229 = vst.msk [vmem:[#allocation2 + $0x328] sm:$0xff] %vm189_vm0, %v3847_v0  ;;  %230 = vst.msk [vmem:[#allocation2 + $0x330] sm:$0xff] %vm189_vm0, %v3847_v0  ;;  %v3529_v25 = vld [vmem:[%s3983_s11 + $0xc8] sm:$0xff]  ;;  %v3528_v26 = vld [vmem:[%s3983_s11 + $0xc0] sm:$0xff] }
  0x48   : > { %233 = vst.msk [vmem:[#allocation2 + $0xa0] sm:$0xff] %vm189_vm0, %v3847_v0  ;;  %234 = vst.msk [vmem:[#allocation2 + $0xc0] sm:$0xff] %vm189_vm0, %v3847_v0  ;;  %v3531_v27 = vld [vmem:[%s3983_s11 + $0xd8] sm:$0xff]  ;;  %v3530_v28 = vld [vmem:[%s3983_s11 + $0xd0] sm:$0xff] }
  0x49   : > { %235 = vst.msk [vmem:[#allocation2 + $0xe0] sm:$0xff] %vm189_vm0, %v3847_v0  ;;  %236 = vst.msk [vmem:[#allocation2 + $0x100] sm:$0xff] %vm189_vm0, %v3847_v0  ;;  %314 = vrot.lane.b32.xlu1 %v274_v7, %s3848_s23  ;;  %312 = vrot.lane.b32.xlu0 %v273_v8, %s3848_s23  ;;  %v3533_v29 = vld [vmem:[%s3983_s11 + $0xe8] sm:$0xff]  ;;  %v3532_v30 = vld [vmem:[%s3983_s11 + $0xe0] sm:$0xff] }
  0x4a   : > { %237 = vst.msk [vmem:[#allocation2 + $0x120] sm:$0xff] %vm189_vm0, %v3847_v0  ;;  %238 = vst.msk [vmem:[#allocation2 + $0x140] sm:$0xff] %vm189_vm0, %v3847_v0  ;;  %v3535_v31 = vld [vmem:[%s3983_s11 + $0xf8] sm:$0xff]  ;;  %v3534_v32 = vld [vmem:[%s3983_s11 + $0xf0] sm:$0xff] }
  0x4b   : > { %239 = vst.msk [vmem:[#allocation2 + $0x160] sm:$0xff] %vm189_vm0, %v3847_v0  ;;  %240 = vst.msk [vmem:[#allocation2 + $0x180] sm:$0xff] %vm189_vm0, %v3847_v0  ;;  %v469_v33 = vld [vmem:[#allocation2 + $0x8] sm:$0xff]  ;;  %v4112_v34 = vld [vmem:[%s6799_s1] ss:$0 sm:$0xff] }
  0x4c   : > { %241 = vst.msk [vmem:[#allocation2 + $0x1a0] sm:$0xff] %vm189_vm0, %v3847_v0  ;;  %242 = vst.msk [vmem:[#allocation2 + $0x1c0] sm:$0xff] %vm189_vm0, %v3847_v0  ;;  %v4117_v35 = vld [vmem:[%s6799_s1 + $0x1] ss:$0 sm:$0xff]  ;;  %v471_v36 = vld [vmem:[#allocation2 + $0x28] sm:$0xff]  ;;  %v490_v39 = vmul.f32 %v4112_v34, %v469_v33 }
  0x4d   : > { %243 = vst.msk [vmem:[#allocation2 + $0x1e0] sm:$0xff] %vm189_vm0, %v3847_v0  ;;  %244 = vst.msk [vmem:[#allocation2 + $0x200] sm:$0xff] %vm189_vm0, %v3847_v0  ;;  %318 = vrot.lane.b32.xlu1 %v276_v9, %s3848_s23  ;;  %316 = vrot.lane.b32.xlu0 %v275_v10, %s3848_s23  ;;  %v470_v37 = vld [vmem:[#allocation2 + $0x10] sm:$0xff]  ;;  %v546_v40 = vmul.f32 %v4117_v35, %v471_v36  ;;  %v4124_v41 = vld [vmem:[%s6799_s1 + $0x2] ss:$0 sm:$0xff]  ;;  %v492_v60 = vmul.f32 %v4112_v34, %v471_v36 }
  0x4e   : > { %245 = vst.msk [vmem:[#allocation2 + $0x220] sm:$0xff] %vm189_vm0, %v3847_v0  ;;  %246 = vst.msk [vmem:[#allocation2 + $0x240] sm:$0xff] %vm189_vm0, %v3847_v0  ;;  %v526_v38 = vld [vmem:[#allocation2 + $0x30] sm:$0xff]  ;;  %v473_v42 = vld [vmem:[#allocation2 + $0x48] sm:$0xff]  ;;  %v491_v43 = vmul.f32 %v4112_v34, %v470_v37 }
  0x4f   : > { %247 = vst.msk [vmem:[#allocation2 + $0x260] sm:$0xff] %vm189_vm0, %v3847_v0  ;;  %248 = vst.msk [vmem:[#allocation2 + $0x280] sm:$0xff] %vm189_vm0, %v3847_v0  ;;  %v547_v44 = vmul.f32 %v4117_v35, %v526_v38  ;;  %v582_v45 = vld [vmem:[#allocation2 + $0x50] sm:$0xff]  ;;  %v562_v46 = vadd.f32 %v546_v40, %v490_v39  ;;  %v602_v47 = vmul.f32 %v4124_v41, %v473_v42  ;;  %v4132_v48 = vld [vmem:[%s6799_s1 + $0x3] ss:$0 sm:$0xff] }
  0x50   : > { %249 = vst.msk [vmem:[#allocation2 + $0xb8] sm:$0x1f] %vm193_vm1, %v3847_v0  ;;  %250 = vst.msk [vmem:[#allocation2 + $0xd8] sm:$0x1f] %vm193_vm1, %v3847_v0  ;;  %v475_v49 = vld [vmem:[#allocation2 + $0x68] sm:$0xff]  ;;  %v603_v51 = vmul.f32 %v4124_v41, %v582_v45  ;;  %v638_v52 = vld [vmem:[#allocation2 + $0x70] sm:$0xff]  ;;  %v548_v61 = vmul.f32 %v4117_v35, %v473_v42  ;;  %v493_v6 = vmul.f32 %v4112_v34, %v526_v38 }
  0x51   : > { %251 = vst.msk [vmem:[#allocation2 + $0xf8] sm:$0x1f] %vm193_vm1, %v3847_v0  ;;  %252 = vst.msk [vmem:[#allocation2 + $0x118] sm:$0x1f] %vm193_vm1, %v3847_v0  ;;  %322 = vrot.lane.b32.xlu1 %v278_v11, %s3848_s23  ;;  %320 = vrot.lane.b32.xlu0 %v277_v12, %s3848_s23  ;;  %v563_v50 = vadd.f32 %v547_v44, %v491_v43  ;;  %v618_v53 = vadd.f32 %v602_v47, %v562_v46  ;;  %v4139_v55 = vld [vmem:[%s6799_s1 + $0x4] ss:$0 sm:$0xff] }
  0x52   : > { %253 = vst.msk [vmem:[#allocation2 + $0x138] sm:$0x1f] %vm193_vm1, %v3847_v0  ;;  %254 = vst.msk [vmem:[#allocation2 + $0x158] sm:$0x1f] %vm193_vm1, %v3847_v0  ;;  %v658_v54 = vmul.f32 %v4132_v48, %v475_v49  ;;  %v693_v56 = vld [vmem:[#allocation2 + $0x87] sm:$0xff]  ;;  %v659_v58 = vmul.f32 %v4132_v48, %v638_v52  ;;  %v694_v59 = vld [vmem:[#allocation2 + $0x8f] sm:$0xff]  ;;  %v549_v7 = vmul.f32 %v4117_v35, %v582_v45 }
  0x53   : > { %255 = vst.msk [vmem:[#allocation2 + $0x178] sm:$0x1f] %vm193_vm1, %v3847_v0  ;;  %256 = vst.msk [vmem:[#allocation2 + $0x198] sm:$0x1f] %vm193_vm1, %v3847_v0  ;;  %v619_v57 = vadd.f32 %v603_v51, %v563_v50  ;;  %v4147_v62 = vld [vmem:[%s6799_s1 + $0x5] ss:$0 sm:$0xff]  ;;  %v715_v5 = vmul.f32 %v4139_v55, %v694_v59  ;;  %v494_v8 = vmul.f32 %v4112_v34, %v473_v42 }
  0x54   : > { %257 = vst.msk [vmem:[#allocation2 + $0x1b8] sm:$0x1f] %vm193_vm1, %v3847_v0  ;;  %258 = vst.msk [vmem:[#allocation2 + $0x1d8] sm:$0x1f] %vm193_vm1, %v3847_v0  ;;  %v674_v63 = vadd.f32 %v658_v54, %v618_v53  ;;  %v477_v1 = vld [vmem:[#allocation2 + $0x88] sm:$0xff]  ;;  %v474_v2 = vld [vmem:[#allocation2 + $0x50] sm:$0xff]  ;;  %v550_v9 = vmul.f32 %v4117_v35, %v475_v49 }
  0x55   : > { %259 = vst.msk [vmem:[#allocation2 + $0x1f8] sm:$0x1f] %vm193_vm1, %v3847_v0  ;;  %260 = vst.msk [vmem:[#allocation2 + $0x218] sm:$0x1f] %vm193_vm1, %v3847_v0  ;;  %326 = vrot.lane.b32.xlu1 %v280_v13, %s3848_s23  ;;  %324 = vrot.lane.b32.xlu0 %v279_v14, %s3848_s23  ;;  %v476_v3 = vld [vmem:[#allocation2 + $0x70] sm:$0xff]  ;;  %v675_v4 = vadd.f32 %v659_v58, %v619_v57  ;;  %v564_v13 = vadd.f32 %v548_v61, %v492_v60 }
  0x56   : > { %261 = vst.msk [vmem:[#allocation2 + $0x238] sm:$0x1f] %vm193_vm1, %v3847_v0  ;;  %262 = vst.msk [vmem:[#allocation2 + $0x258] sm:$0x1f] %vm193_vm1, %v3847_v0  ;;  %v747_v10 = vld [vmem:[#allocation2 + $0x90] sm:$0xff]  ;;  %v604_v14 = vmul.f32 %v4124_v41, %v475_v49  ;;  %v497_v38 = vmul.f32 %v4112_v34, %v476_v3  ;;  %v498_v51 = vmul.f32 %v4112_v34, %v477_v1 }
  0x57   : > { %263 = vst.msk [vmem:[#allocation2 + $0x278] sm:$0x1f] %vm193_vm1, %v3847_v0  ;;  %264 = vst.msk [vmem:[#allocation2 + $0x298] sm:$0x1f] %vm193_vm1, %v3847_v0  ;;  %v714_v0 = vmul.f32 %v4139_v55, %v693_v56  ;;  %v661_v47 = vmul.f32 %v4132_v48, %v747_v10  ;;  %v4184_v56 = vld [vmem:[%s6799_s1 + $0x7] ss:$0 sm:$0xff] }
  0x59   : > { %330 = vrot.lane.b32.xlu1 %v282_v15, %s3848_s23  ;;  %328 = vrot.lane.b32.xlu0 %v281_v16, %s3848_s23  ;;  %v4160_v15 = vld [vmem:[%s6799_s1 + $0x6] ss:$0 sm:$0xff]  ;;  %v730_v16 = vadd.f32 %v714_v0, %v674_v63 }
  0x5d   : > { %403 = vrot.lane.b32.xlu1 %v3521_v17, %s3848_s23  ;;  %401 = vrot.lane.b32.xlu0 %v3520_v18, %s3848_s23  ;;  %v767_v17 = vmul.f32 %v4147_v62, %v477_v1  ;;  %v799_v18 = vld [vmem:[#allocation2 + $0x89] sm:$0xff] }
  0x5e   : > { %v820_v33 = vmul.f32 %v4160_v15, %v799_v18 }
  0x5f   : > { %v783_v39 = vadd.f32 %v767_v17, %v730_v16 }
  0x61   : > { %407 = vrot.lane.b32.xlu1 %v3523_v19, %s3848_s23  ;;  %405 = vrot.lane.b32.xlu0 %v3522_v20, %s3848_s23  ;;  %v495_v19 = vmul.f32 %v4112_v34, %v474_v2  ;;  %v551_v20 = vmul.f32 %v4117_v35, %v476_v3  ;;  %v836_v0 = vadd.f32 %v820_v33, %v783_v39 }
  0x63   : > { %v567_v42 = vadd.f32 %v551_v20, %v495_v19  ;;  %v4212_v20 = vld [vmem:[%s6799_s1 + $0x8] ss:$0 sm:$0xff] }
  0x65   : > { %411 = vrot.lane.b32.xlu1 %v3525_v21, %s3848_s23  ;;  %409 = vrot.lane.b32.xlu0 %v3524_v22, %s3848_s23  ;;  %v478_v21 = vld [vmem:[#allocation2 + $0x90] sm:$0xff]  ;;  %v731_v22 = vadd.f32 %v715_v5, %v675_v4 }
  0x66   : > { %v553_v40 = vmul.f32 %v4117_v35, %v478_v21  ;;  %v607_v43 = vmul.f32 %v4124_v41, %v478_v21  ;;  %v4187_v59 = vmul.f32 %v4112_v34, %v478_v21  ;;  %v4217_v21 = vld [vmem:[%s6799_s1 + $0x9] ss:$0 sm:$0xff] }
  0x68   : > { %v4189_v60 = vadd.f32 %v553_v40, %v497_v38  ;;  %v4193_v2 = vadd.f32 %v607_v43, %v567_v42 }
  0x69   : > { %415 = vrot.lane.b32.xlu1 %v3527_v23, %s3848_s23  ;;  %413 = vrot.lane.b32.xlu0 %v3526_v24, %s3848_s23  ;;  %v768_v23 = vmul.f32 %v4147_v62, %v747_v10  ;;  %v565_v24 = vadd.f32 %v549_v7, %v493_v6 }
  0x6b   : > { %v784_v44 = vadd.f32 %v768_v23, %v731_v22 }
  0x6d   : > { %419 = vrot.lane.b32.xlu1 %v3529_v25, %s3848_s23  ;;  %417 = vrot.lane.b32.xlu0 %v3528_v26, %s3848_s23  ;;  %v605_v25 = vmul.f32 %v4124_v41, %v638_v52  ;;  %v496_v26 = vmul.f32 %v4112_v34, %v475_v49 }
  0x6f   : > { %v621_v46 = vadd.f32 %v605_v25, %v565_v24 }
  0x71   : > { %423 = vrot.lane.b32.xlu1 %v3531_v27, %s3848_s23  ;;  %421 = vrot.lane.b32.xlu0 %v3530_v28, %s3848_s23  ;;  %v552_v27 = vmul.f32 %v4117_v35, %v477_v1  ;;  %v566_v28 = vadd.f32 %v550_v9, %v494_v8  ;;  %v4197_v4 = vadd.f32 %v661_v47, %v621_v46 }
  0x73   : > { %v568_v52 = vadd.f32 %v552_v27, %v496_v26  ;;  %v4232_v27 = vld [vmem:[%s6799_s1 + $0xa] ss:$0 sm:$0xff] }
  0x75   : > { %427 = vrot.lane.b32.xlu1 %v3533_v29, %s3848_s23  ;;  %425 = vrot.lane.b32.xlu0 %v3532_v30, %s3848_s23  ;;  %v606_v29 = vmul.f32 %v4124_v41, %v477_v1  ;;  %v800_v30 = vld [vmem:[#allocation2 + $0x91] sm:$0xff] }
  0x76   : > { %v821_v45 = vmul.f32 %v4160_v15, %v800_v30 }
  0x77   : > { %v622_v57 = vadd.f32 %v606_v29, %v566_v28 }
  0x78   : > { %v4195_v3 = vadd.f32 %v821_v45, %v784_v44 }
  0x79   : > { %431 = vrot.lane.b32.xlu1 %v3535_v31, %s3848_s23  ;;  %429 = vrot.lane.b32.xlu0 %v3534_v32, %s3848_s23  ;;  %v620_v31 = vadd.f32 %v604_v14, %v564_v13  ;;  %v660_v32 = vmul.f32 %v4132_v48, %v477_v1  ;;  %s3849_s23 = smov 20  }
  0x7b   : > { %v676_v58 = vadd.f32 %v660_v32, %v620_v31 }
  0xaf   : > { %v305_v11 = vpop.permute.xlu1 %304  ;;  %v301_v12 = vpop.permute.xlu0 %300 }
  0xb0   : > { %352 = vst.msk [vmem:[#allocation2 + $0xc8] sm:$0xff] %vm189_vm0, %v305_v11  ;;  %350 = vst.msk [vmem:[#allocation2 + $0xa8] sm:$0xff] %vm189_vm0, %v301_v12 }
  0xb3   : > { %v307_v36 = vpop.permute.xlu1 %306  ;;  %v303_v37 = vpop.permute.xlu0 %302 }
  0xb4   : > { %353 = vst.msk [vmem:[#allocation2 + $0xd0] sm:$0xff] %vm189_vm0, %v307_v36  ;;  %351 = vst.msk [vmem:[#allocation2 + $0xb0] sm:$0xff] %vm189_vm0, %v303_v37 }
  0xb7   : > { %v481_v49 = vld [vmem:[#allocation2 + $0xc8] sm:$0xff]  ;;  %v311_v53 = vpop.permute.xlu1 %310  ;;  %v309_v54 = vpop.permute.xlu0 %308 }
  0xb8   : > { %v697_v50 = vld [vmem:[#allocation2 + $0xc7] sm:$0xff]  ;;  %355 = vst.msk [vmem:[#allocation2 + $0xf0] sm:$0xff] %vm189_vm0, %v311_v53  ;;  %354 = vst.msk [vmem:[#allocation2 + $0xe8] sm:$0xff] %vm189_vm0, %v309_v54  ;;  %v4200_v5 = vmul.f32 %v4112_v34, %v481_v49  ;;  %v556_v6 = vmul.f32 %v4117_v35, %v481_v49  ;;  %v4220_v22 = vmul.f32 %v4124_v41, %v481_v49 }
  0xb9   : > { %v479_v61 = vld [vmem:[#allocation2 + $0xa8] sm:$0xff]  ;;  %v718_v7 = vmul.f32 %v4139_v55, %v697_v50  ;;  %v4223_v23 = vmul.f32 %v4132_v48, %v481_v49  ;;  %v771_v24 = vmul.f32 %v4147_v62, %v481_v49 }
  0xba   : > { %v695_v63 = vld [vmem:[#allocation2 + $0xa7] sm:$0xff]  ;;  %v554_v10 = vmul.f32 %v4117_v35, %v479_v61  ;;  %v500_v13 = vmul.f32 %v4112_v34, %v479_v61  ;;  %v608_v14 = vmul.f32 %v4124_v41, %v479_v61  ;;  %v662_v16 = vmul.f32 %v4132_v48, %v479_v61 }
  0xbb   : > { %v852_v1 = vld [vmem:[#allocation2 + $0xa3] sm:$0xff]  ;;  %v716_v17 = vmul.f32 %v4139_v55, %v695_v63  ;;  %v315_v18 = vpop.permute.xlu1 %314  ;;  %v313_v19 = vpop.permute.xlu0 %312  ;;  %v769_v39 = vmul.f32 %v4147_v62, %v479_v61  ;;  %v482_v40 = vld [vmem:[#allocation2 + $0xd0] sm:$0xff] }
  0xbc   : > { %v854_v8 = vld [vmem:[#allocation2 + $0xc3] sm:$0xff]  ;;  %v873_v25 = vmul.f32 %v4184_v56, %v852_v1  ;;  %357 = vst.msk [vmem:[#allocation2 + $0x110] sm:$0xff] %vm189_vm0, %v315_v18  ;;  %356 = vst.msk [vmem:[#allocation2 + $0x108] sm:$0xff] %vm189_vm0, %v313_v19  ;;  %v678_v30 = vadd.f32 %v662_v16, %v622_v57  ;;  %v4246_v38 = vadd.f32 %v554_v10, %v498_v51  ;;  %v480_v42 = vld [vmem:[#allocation2 + $0xb0] sm:$0xff] }
  0xbd   : > { %v907_v9 = vld [vmem:[#allocation2 + $0xc4] sm:$0xff]  ;;  %v4235_v28 = vmul.f32 %v4184_v56, %v854_v8  ;;  %v732_v31 = vadd.f32 %v716_v17, %v676_v58  ;;  %v4249_v43 = vadd.f32 %v556_v6, %v500_v13  ;;  %v624_v44 = vadd.f32 %v608_v14, %v568_v52  ;;  %v698_v63 = vld [vmem:[#allocation2 + $0xcf] sm:$0xff] }
  0xbe   : > { %v960_v11 = vld [vmem:[#allocation2 + $0xc5] sm:$0xff]  ;;  %v4238_v29 = vmul.f32 %v4212_v20, %v907_v9  ;;  %v734_v45 = vadd.f32 %v718_v7, %v678_v30  ;;  %v889_v53 = vadd.f32 %v873_v25, %v836_v0  ;;  %v503_v57 = vmul.f32 %v4112_v34, %v482_v40  ;;  %v696_v6 = vld [vmem:[#allocation2 + $0xaf] sm:$0xff] }
  0xbf   : > { %v1013_v12 = vld [vmem:[#allocation2 + $0xc6] sm:$0xff]  ;;  %v4241_v36 = vmul.f32 %v4217_v21, %v960_v11  ;;  %v319_v49 = vpop.permute.xlu1 %318  ;;  %v317_v50 = vpop.permute.xlu0 %316  ;;  %v785_v52 = vadd.f32 %v769_v39, %v732_v31  ;;  %v557_v61 = vmul.f32 %v4117_v35, %v482_v40  ;;  %v555_v0 = vmul.f32 %v4117_v35, %v480_v42  ;;  %v484_v11 = vld [vmem:[#allocation2 + $0xf0] sm:$0xff] }
  0xc0   : > { %v905_v26 = vld [vmem:[#allocation2 + $0xa4] sm:$0xff]  ;;  %v4244_v37 = vmul.f32 %v4232_v27, %v1013_v12  ;;  %359 = vst.msk [vmem:[#allocation2 + $0x130] sm:$0xff] %vm189_vm0, %v319_v49  ;;  %358 = vst.msk [vmem:[#allocation2 + $0x128] sm:$0xff] %vm189_vm0, %v317_v50  ;;  %v787_v1 = vadd.f32 %v771_v24, %v734_v45  ;;  %v501_v7 = vmul.f32 %v4112_v34, %v480_v42 }
  0xc1   : > { %v958_v32 = vld [vmem:[#allocation2 + $0xa5] sm:$0xff]  ;;  %v926_v46 = vmul.f32 %v4212_v20, %v905_v26  ;;  %v609_v8 = vmul.f32 %v4124_v41, %v480_v42  ;;  %v663_v9 = vmul.f32 %v4132_v48, %v480_v42  ;;  %v611_v12 = vmul.f32 %v4124_v41, %v482_v40 }
  0xc2   : > { %v1011_v33 = vld [vmem:[#allocation2 + $0xa6] sm:$0xff]  ;;  %v4253_v54 = vmul.f32 %v4217_v21, %v958_v32  ;;  %v4269_v13 = vmul.f32 %v4132_v48, %v482_v40  ;;  %v571_v16 = vadd.f32 %v555_v0, %v4187_v59  ;;  %v4276_v24 = vmul.f32 %v4139_v55, %v698_v63 }
  0xc3   : > { %v801_v47 = vld [vmem:[#allocation2 + $0xa9] sm:$0xff]  ;;  %v4256_v51 = vmul.f32 %v4232_v27, %v1011_v33  ;;  %v323_v17 = vpop.permute.xlu1 %322  ;;  %v321_v18 = vpop.permute.xlu0 %320  ;;  %v4273_v19 = vadd.f32 %v926_v46, %v889_v53  ;;  %v4279_v25 = vmul.f32 %v4147_v62, %v482_v40  ;;  %v4282_v26 = vmul.f32 %v4139_v55, %v696_v6 }
  0xc4   : > { %v803_v58 = vld [vmem:[#allocation2 + $0xc9] sm:$0xff]  ;;  %v822_v10 = vmul.f32 %v4160_v15, %v801_v47  ;;  %6861 = vst [vmem:[#allocation9_spill] sm:$0xff] %v4269_v13  ;;  %6862 = vst [vmem:[#allocation10_spill] sm:$0xff] %v4276_v24  ;;  %v4287_v59 = vmul.f32 %v4147_v62, %v480_v42  ;;  %v559_v33 = vmul.f32 %v4117_v35, %v484_v11 }
  0xc5   : > { %v824_v14 = vmul.f32 %v4160_v15, %v803_v58  ;;  %6863 = vst [vmem:[#allocation11_spill] sm:$0xff] %v4279_v25  ;;  %v483_v30 = vld [vmem:[#allocation2 + $0xe8] sm:$0xff]  ;;  %361 = vst.msk [vmem:[#allocation2 + $0x150] sm:$0xff] %vm189_vm0, %v323_v17  ;;  %v573_v45 = vadd.f32 %v557_v61, %v501_v7  ;;  %v4291_v40 = vadd.f32 %v609_v8, %v4189_v60 }
  0xc6   : > { %360 = vst.msk [vmem:[#allocation2 + $0x148] sm:$0xff] %vm189_vm0, %v321_v18  ;;  %v838_v32 = vadd.f32 %v822_v10, %v785_v52  ;;  %v699_v39 = vld [vmem:[#allocation2 + $0xe7] sm:$0xff]  ;;  %v4294_v46 = vadd.f32 %v663_v9, %v4193_v2  ;;  %v613_v47 = vmul.f32 %v4124_v41, %v484_v11  ;;  %v627_v49 = vadd.f32 %v611_v12, %v571_v16  ;;  %v700_v8 = vld [vmem:[#allocation2 + $0xef] sm:$0xff] }
  0xc7   : > { %v840_v31 = vadd.f32 %v824_v14, %v787_v1  ;;  %6864 = vst [vmem:[#allocation12_spill] sm:$0xff] %v4291_v40  ;;  %v667_v50 = vmul.f32 %v4132_v48, %v484_v11  ;;  %v558_v53 = vmul.f32 %v4117_v35, %v483_v30  ;;  %v612_v42 = vmul.f32 %v4124_v41, %v483_v30  ;;  %v856_v58 = vld [vmem:[#allocation2 + $0xe3] sm:$0xff]  ;;  %v327_v52 = vpop.permute.xlu1 %326  ;;  %v325_v63 = vpop.permute.xlu0 %324  ;;  %v596_v13 = vld [vmem:[#allocation2 + $0x130] sm:$0xff] }
  0xc8   : > { %6865 = vst [vmem:[#allocation13_spill] sm:$0xff] %v4294_v46  ;;  %v505_v61 = vmul.f32 %v4112_v34, %v484_v11  ;;  %v4302_v60 = vmul.f32 %v4147_v62, %v484_v11  ;;  %v680_v2 = vadd.f32 %v4223_v23, %v624_v44  ;;  %v720_v1 = vmul.f32 %v4139_v55, %v699_v39  ;;  %v805_v10 = vld [vmem:[#allocation2 + $0xe9] sm:$0xff] }
  0xc9   : > { %363 = vst.msk [vmem:[#allocation2 + $0x170] sm:$0xff] %vm189_vm0, %v327_v52  ;;  %362 = vst.msk [vmem:[#allocation2 + $0x168] sm:$0xff] %vm189_vm0, %v325_v63  ;;  %v4309_v0 = vadd.f32 %v4235_v28, %v838_v32  ;;  %v575_v6 = vadd.f32 %v559_v33, %v503_v57  ;;  %v666_v7 = vmul.f32 %v4132_v48, %v483_v30  ;;  %v540_v11 = vld [vmem:[#allocation2 + $0x110] sm:$0xff]  ;;  %v909_v16 = vld [vmem:[#allocation2 + $0xe4] sm:$0xff] }
  0xca   : > { %6866 = vst [vmem:[#allocation14_spill] sm:$0xff] %v4302_v60  ;;  %v773_v9 = vmul.f32 %v4147_v62, %v483_v30  ;;  %v629_v12 = vadd.f32 %v613_v47, %v573_v45  ;;  %v504_v23 = vmul.f32 %v4112_v34, %v483_v30  ;;  %v736_v44 = vadd.f32 %v720_v1, %v680_v2  ;;  %v962_v32 = vld [vmem:[#allocation2 + $0xe5] sm:$0xff] }
  0xcb   : > { %v877_v14 = vmul.f32 %v4184_v56, %v856_v58  ;;  %v4315_v17 = vadd.f32 %v667_v50, %v627_v49  ;;  %v574_v28 = vadd.f32 %v558_v53, %v4200_v5  ;;  %v626_v57 = vadd.f32 %v4220_v22, %v4246_v38  ;;  %v1015_v33 = vld [vmem:[#allocation2 + $0xe6] sm:$0xff]  ;;  %v331_v45 = vpop.permute.xlu1 %330  ;;  %v329_v47 = vpop.permute.xlu0 %328 }
  0xcc   : > { %v628_v18 = vadd.f32 %v612_v42, %v4249_v43  ;;  %v4321_v39 = vld [vmem:[#allocation2 + $0x108] sm:$0xff]  ;;  %v4324_v30 = vmul.f32 %v4139_v55, %v700_v8  ;;  %v789_v58 = vadd.f32 %v773_v9, %v736_v44  ;;  %v826_v49 = vmul.f32 %v4160_v15, %v805_v10  ;;  %365 = vst.msk [vmem:[#allocation2 + $0x190] sm:$0xff] %vm189_vm0, %v331_v45 }
  0xcd   : > { %6867 = vst [vmem:[#allocation15_spill] sm:$0xff] %v4315_v17  ;;  %v561_v50 = vmul.f32 %v4117_v35, %v540_v11  ;;  %v701_v5 = vld [vmem:[#allocation2 + $0x107] sm:$0xff]  ;;  %364 = vst.msk [vmem:[#allocation2 + $0x188] sm:$0xff] %vm189_vm0, %v329_v47  ;;  %v682_v22 = vadd.f32 %v666_v7, %v626_v57  ;;  %v893_v38 = vadd.f32 %v877_v14, %v840_v31  ;;  %v702_v9 = vld [vmem:[#allocation2 + $0x10f] sm:$0xff] }
  0xce   : > { %6868 = vst [vmem:[#allocation16_spill] sm:$0xff] %v4324_v30  ;;  %v930_v43 = vmul.f32 %v4212_v20, %v909_v16  ;;  %v615_v53 = vmul.f32 %v4124_v41, %v540_v11  ;;  %v858_v42 = vld [vmem:[#allocation2 + $0x103] sm:$0xff]  ;;  %v4333_v52 = vmul.f32 %v4217_v21, %v962_v32  ;;  %v4336_v63 = vmul.f32 %v4232_v27, %v1015_v33 }
  0xcf   : > { %v669_v2 = vmul.f32 %v4132_v48, %v540_v11  ;;  %v560_v1 = vmul.f32 %v4117_v35, %v4321_v39  ;;  %v4342_v8 = vmul.f32 %v4147_v62, %v540_v11  ;;  %v614_v31 = vmul.f32 %v4124_v41, %v4321_v39  ;;  %v807_v44 = vld [vmem:[#allocation2 + $0x109] sm:$0xff]  ;;  %v404_v14 = vpop.permute.xlu1 %403  ;;  %v402_v16 = vpop.permute.xlu0 %401 }
  0xd0   : > { %6869 = vst [vmem:[#allocation17_spill] sm:$0xff] %v4333_v52  ;;  %6870 = vst [vmem:[#allocation18_spill] sm:$0xff] %v4336_v63  ;;  %v668_v7 = vmul.f32 %v4132_v48, %v4321_v39  ;;  %v722_v10 = vmul.f32 %v4139_v55, %v701_v5  ;;  %v842_v57 = vadd.f32 %v826_v49, %v789_v58  ;;  %v911_v47 = vld [vmem:[#allocation2 + $0x104] sm:$0xff] }
  0xd1   : > { %6871 = vst [vmem:[#allocation19_spill] sm:$0xff] %v4342_v8  ;;  %v577_v32 = vadd.f32 %v561_v50, %v505_v61  ;;  %v775_v33 = vmul.f32 %v4147_v62, %v4321_v39  ;;  %v879_v45 = vmul.f32 %v4184_v56, %v858_v42  ;;  %452 = vst.msk [vmem:[#allocation2 + $0x1b0] sm:$0xff] %vm189_vm0, %v404_v14  ;;  %v964_v30 = vld [vmem:[#allocation2 + $0x105] sm:$0xff] }
  0xd2   : > { %451 = vst.msk [vmem:[#allocation2 + $0x1a8] sm:$0xff] %vm189_vm0, %v402_v16  ;;  %v4354_v8 = vadd.f32 %v930_v43, %v893_v38  ;;  %v631_v17 = vadd.f32 %v615_v53, %v575_v6  ;;  %v1959_v5 = vmul.f32 %v4112_v34, %v540_v11  ;;  %v738_v60 = vadd.f32 %v722_v10, %v682_v22  ;;  %v1017_v42 = vld [vmem:[#allocation2 + $0x106] sm:$0xff] }
  0xd3   : > { %v4357_v58 = vadd.f32 %v669_v2, %v629_v12  ;;  %v576_v61 = vadd.f32 %v560_v1, %v504_v23  ;;  %v4360_v49 = vmul.f32 %v4139_v55, %v702_v9  ;;  %v828_v50 = vmul.f32 %v4160_v15, %v807_v44  ;;  %v595_v14 = vld [vmem:[#allocation2 + $0x128] sm:$0xff]  ;;  %v408_v11 = vpop.permute.xlu1 %407  ;;  %v406_v22 = vpop.permute.xlu0 %405 }
  0xd4   : > { %6872 = vst [vmem:[#allocation20_spill] sm:$0xff] %v4354_v8  ;;  %v703_v40 = vld [vmem:[#allocation2 + $0x127] sm:$0xff]  ;;  %v630_v16 = vadd.f32 %v614_v31, %v574_v28  ;;  %v684_v38 = vadd.f32 %v668_v7, %v628_v18  ;;  %v791_v43 = vadd.f32 %v775_v33, %v738_v60  ;;  %v932_v6 = vmul.f32 %v4212_v20, %v911_v47  ;;  %v704_v44 = vld [vmem:[#allocation2 + $0x12f] sm:$0xff] }
  0xd5   : > { %6873 = vst [vmem:[#allocation21_spill] sm:$0xff] %v4357_v58  ;;  %6874 = vst [vmem:[#allocation22_spill] sm:$0xff] %v4360_v49  ;;  %v895_v53 = vadd.f32 %v879_v45, %v842_v57  ;;  %v617_v12 = vmul.f32 %v4124_v41, %v596_v13  ;;  %v671_v23 = vmul.f32 %v4132_v48, %v596_v13  ;;  %v860_v1 = vld [vmem:[#allocation2 + $0x123] sm:$0xff] }
  0xd6   : > { %v2015_v2 = vmul.f32 %v4117_v35, %v596_v13  ;;  %454 = vst.msk [vmem:[#allocation2 + $0x1d0] sm:$0xff] %vm189_vm0, %v408_v11  ;;  %453 = vst.msk [vmem:[#allocation2 + $0x1c8] sm:$0xff] %vm189_vm0, %v406_v22  ;;  %v4370_v28 = vmul.f32 %v4217_v21, %v964_v30  ;;  %v4373_v60 = vmul.f32 %v4232_v27, %v1017_v42  ;;  %v809_v33 = vld [vmem:[#allocation2 + $0x129] sm:$0xff] }
  0xd7   : > { %v616_v18 = vmul.f32 %v4124_v41, %v595_v14  ;;  %v724_v31 = vmul.f32 %v4139_v55, %v703_v40  ;;  %v844_v7 = vadd.f32 %v828_v50, %v791_v43  ;;  %v1958_v9 = vmul.f32 %v4112_v34, %v4321_v39  ;;  %v913_v11 = vld [vmem:[#allocation2 + $0x124] sm:$0xff]  ;;  %v412_v50 = vpop.permute.xlu1 %411  ;;  %v410_v43 = vpop.permute.xlu0 %409 }
  0xd8   : > { %6875 = vst [vmem:[#allocation23_spill] sm:$0xff] %v4370_v28  ;;  %6876 = vst [vmem:[#allocation24_spill] sm:$0xff] %v4373_v60  ;;  %v670_v10 = vmul.f32 %v4132_v48, %v595_v14  ;;  %v777_v57 = vmul.f32 %v4147_v62, %v595_v14  ;;  %v4382_v30 = vmul.f32 %v4147_v62, %v596_v13  ;;  %v966_v40 = vld [vmem:[#allocation2 + $0x125] sm:$0xff]  ;;  %v652_v28 = vld [vmem:[#allocation2 + $0x150] sm:$0xff] }
  0xd9   : > { %v1961_v45 = vmul.f32 %v4112_v34, %v596_v13  ;;  %v740_v47 = vadd.f32 %v724_v31, %v684_v38  ;;  %v881_v42 = vmul.f32 %v4184_v56, %v860_v1  ;;  %v4386_v22 = vadd.f32 %v932_v6, %v895_v53  ;;  %v1019_v60 = vld [vmem:[#allocation2 + $0x126] sm:$0xff]  ;;  %456 = vst.msk [vmem:[#allocation2 + $0x1f0] sm:$0xff] %vm189_vm0, %v412_v50 }
  0xda   : > { %6877 = vst [vmem:[#allocation25_spill] sm:$0xff] %v4382_v30  ;;  %v633_v39 = vadd.f32 %v617_v12, %v577_v32  ;;  %v4388_v58 = vadd.f32 %v671_v23, %v631_v17  ;;  %v2031_v49 = vadd.f32 %v2015_v2, %v1959_v5  ;;  %455 = vst.msk [vmem:[#allocation2 + $0x1e8] sm:$0xff] %vm189_vm0, %v410_v43  ;;  %v705_v30 = vld [vmem:[#allocation2 + $0x147] sm:$0xff] }
  0xdb   : > { %6878 = vst [vmem:[#allocation26_spill] sm:$0xff] %v4386_v22  ;;  %v632_v13 = vadd.f32 %v616_v18, %v576_v61  ;;  %v4393_v38 = vmul.f32 %v4139_v55, %v704_v44  ;;  %v793_v1 = vadd.f32 %v777_v57, %v740_v47  ;;  %v830_v31 = vmul.f32 %v4160_v15, %v809_v33  ;;  %v4400_v5 = vld [vmem:[#allocation2 + $0x148] sm:$0xff] }
  0xdc   : > { %6879 = vst [vmem:[#allocation27_spill] sm:$0xff] %v4388_v58  ;;  %v686_v6 = vadd.f32 %v670_v10, %v630_v16  ;;  %v897_v53 = vadd.f32 %v881_v42, %v844_v7  ;;  %v934_v17 = vmul.f32 %v4212_v20, %v913_v11  ;;  %v4398_v32 = vmul.f32 %v4217_v21, %v966_v40  ;;  %v862_v12 = vld [vmem:[#allocation2 + $0x143] sm:$0xff]  ;;  %v416_v16 = vpop.permute.xlu1 %415  ;;  %v414_v7 = vpop.permute.xlu0 %413  ;;  %v706_v11 = vld [vmem:[#allocation2 + $0x14f] sm:$0xff] }
  0xdd   : > { %6880 = vst [vmem:[#allocation28_spill] sm:$0xff] %v4393_v38  ;;  %v4403_v23 = vmul.f32 %v4232_v27, %v1019_v60  ;;  %v2014_v61 = vmul.f32 %v4117_v35, %v595_v14  ;;  %v673_v2 = vmul.f32 %v4132_v48, %v652_v28  ;;  %v2017_v18 = vmul.f32 %v4117_v35, %v652_v28  ;;  %v811_v44 = vld [vmem:[#allocation2 + $0x149] sm:$0xff] }
  0xde   : > { %6881 = vst [vmem:[#allocation29_spill] sm:$0xff] %v4398_v32  ;;  %v1960_v10 = vmul.f32 %v4112_v34, %v595_v14  ;;  %v4410_v57 = vmul.f32 %v4147_v62, %v652_v28  ;;  %v2071_v33 = vmul.f32 %v4124_v41, %v652_v28  ;;  %v726_v47 = vmul.f32 %v4139_v55, %v705_v30  ;;  %v761_v38 = vld [vmem:[#allocation2 + $0x170] sm:$0xff] }
  0xdf   : > { %6882 = vst [vmem:[#allocation30_spill] sm:$0xff] %v4403_v23  ;;  %458 = vst.msk [vmem:[#allocation2 + $0x210] sm:$0xff] %vm189_vm0, %v416_v16  ;;  %v846_v60 = vadd.f32 %v830_v31, %v793_v1  ;;  %v672_v42 = vmul.f32 %v4132_v48, %v4400_v5  ;;  %v779_v40 = vmul.f32 %v4147_v62, %v4400_v5  ;;  %v915_v16 = vld [vmem:[#allocation2 + $0x144] sm:$0xff] }
  0xe0   : > { %6883 = vst [vmem:[#allocation31_spill] sm:$0xff] %v4410_v57  ;;  %457 = vst.msk [vmem:[#allocation2 + $0x208] sm:$0xff] %vm189_vm0, %v414_v7  ;;  %v883_v14 = vmul.f32 %v4184_v56, %v862_v12  ;;  %v4421_v50 = vadd.f32 %v934_v17, %v897_v53  ;;  %v1963_v43 = vmul.f32 %v4112_v34, %v652_v28  ;;  %v707_v23 = vld [vmem:[#allocation2 + $0x167] sm:$0xff]  ;;  %v420_v32 = vpop.permute.xlu1 %419  ;;  %v418_v22 = vpop.permute.xlu0 %417 }
  0xe1   : > { %v742_v57 = vadd.f32 %v726_v47, %v686_v6  ;;  %v832_v30 = vmul.f32 %v4160_v15, %v811_v44  ;;  %v2030_v58 = vadd.f32 %v2014_v61, %v1958_v9  ;;  %v4425_v7 = vadd.f32 %v673_v2, %v633_v39  ;;  %v968_v6 = vld [vmem:[#allocation2 + $0x145] sm:$0xff]  ;;  %460 = vst.msk [vmem:[#allocation2 + $0x230] sm:$0xff] %vm189_vm0, %v420_v32 }
  0xe2   : > { %6884 = vst [vmem:[#allocation32_spill] sm:$0xff] %v4421_v50  ;;  %v2033_v1 = vadd.f32 %v2017_v18, %v1961_v45  ;;  %v2016_v31 = vmul.f32 %v4117_v35, %v4400_v5  ;;  %v2087_v12 = vadd.f32 %v2071_v33, %v2031_v49  ;;  %v4430_v53 = vmul.f32 %v4139_v55, %v706_v11  ;;  %v1021_v17 = vld [vmem:[#allocation2 + $0x146] sm:$0xff] }
  0xe3   : > { %6885 = vst [vmem:[#allocation33_spill] sm:$0xff] %v4425_v7  ;;  %v795_v28 = vadd.f32 %v779_v40, %v742_v57  ;;  %v2070_v9 = vmul.f32 %v4124_v41, %v4400_v5  ;;  %459 = vst.msk [vmem:[#allocation2 + $0x228] sm:$0xff] %vm189_vm0, %v418_v22  ;;  %v688_v45 = vadd.f32 %v672_v42, %v632_v13  ;;  %v813_v18 = vld [vmem:[#allocation2 + $0x169] sm:$0xff] }
  0xe4   : > { %6886 = vst [vmem:[#allocation34_spill] sm:$0xff] %v4430_v53  ;;  %v899_v39 = vadd.f32 %v883_v14, %v846_v60  ;;  %v936_v61 = vmul.f32 %v4212_v20, %v915_v16  ;;  %v2032_v2 = vadd.f32 %v2016_v31, %v1960_v10  ;;  %v864_v49 = vld [vmem:[#allocation2 + $0x163] sm:$0xff]  ;;  %v2019_v57 = vmul.f32 %v4117_v35, %v761_v38  ;;  %v424_v60 = vpop.permute.xlu1 %423  ;;  %v422_v42 = vpop.permute.xlu0 %421  ;;  %v1946_v7 = vld [vmem:[#allocation2 + $0x190] sm:$0xff] }
  0xe5   : > { %v848_v44 = vadd.f32 %v832_v30, %v795_v28  ;;  %v2086_v33 = vadd.f32 %v2070_v9, %v2030_v58  ;;  %v728_v47 = vmul.f32 %v4139_v55, %v707_v23  ;;  %v760_v11 = vld [vmem:[#allocation2 + $0x168] sm:$0xff]  ;;  %v4440_v40 = vmul.f32 %v4217_v21, %v968_v6  ;;  %462 = vst.msk [vmem:[#allocation2 + $0x250] sm:$0xff] %vm189_vm0, %v424_v60 }
  0xe6   : > { %v4443_v32 = vmul.f32 %v4232_v27, %v1021_v17  ;;  %v2073_v22 = vmul.f32 %v4124_v41, %v761_v38  ;;  %v781_v13 = vmul.f32 %v4147_v62, %v760_v11  ;;  %v917_v10 = vld [vmem:[#allocation2 + $0x164] sm:$0xff]  ;;  %v2127_v58 = vmul.f32 %v4132_v48, %v761_v38  ;;  %461 = vst.msk [vmem:[#allocation2 + $0x248] sm:$0xff] %vm189_vm0, %v422_v42  ;;  %v708_v17 = vld [vmem:[#allocation2 + $0x16f] sm:$0xff] }
  0xe7   : > { %6887 = vst [vmem:[#allocation35_spill] sm:$0xff] %v4440_v40  ;;  %v744_v14 = vadd.f32 %v728_v47, %v688_v45  ;;  %v834_v30 = vmul.f32 %v4160_v15, %v813_v18  ;;  %v885_v23 = vmul.f32 %v4184_v56, %v864_v49  ;;  %v4452_v16 = vadd.f32 %v936_v61, %v899_v39  ;;  %v970_v9 = vld [vmem:[#allocation2 + $0x165] sm:$0xff] }
  0xe8   : > { %6888 = vst [vmem:[#allocation36_spill] sm:$0xff] %v4443_v32  ;;  %v1962_v31 = vmul.f32 %v4112_v34, %v4400_v5  ;;  %v4457_v28 = vmul.f32 %v4147_v62, %v761_v38  ;;  %v1965_v6 = vmul.f32 %v4112_v34, %v761_v38  ;;  %v2035_v45 = vadd.f32 %v2019_v57, %v1963_v43  ;;  %v1023_v60 = vld [vmem:[#allocation2 + $0x166] sm:$0xff]  ;;  %v426_v40 = vpop.permute.xlu0 %425 }
  0xe9   : > { %6889 = vst [vmem:[#allocation37_spill] sm:$0xff] %v4452_v16  ;;  %v797_v18 = vadd.f32 %v781_v13, %v744_v14  ;;  %v901_v47 = vadd.f32 %v885_v23, %v848_v44  ;;  %v938_v49 = vmul.f32 %v4212_v20, %v917_v10  ;;  %v2089_v42 = vadd.f32 %v2073_v22, %v2033_v1  ;;  %v866_v32 = vld [vmem:[#allocation2 + $0x183] sm:$0xff] }
  0xea   : > { %6890 = vst [vmem:[#allocation38_spill] sm:$0xff] %v4457_v28  ;;  %v2018_v39 = vmul.f32 %v4117_v35, %v760_v11  ;;  %v2072_v61 = vmul.f32 %v4124_v41, %v760_v11  ;;  %v2126_v53 = vmul.f32 %v4132_v48, %v760_v11  ;;  %v428_v28 = vpop.permute.xlu1 %427  ;;  %v4464_v38 = vadd.f32 %v2127_v58, %v2087_v12  ;;  %v1945_v13 = vld [vmem:[#allocation2 + $0x188] sm:$0xff] }
  0xeb   : > { %v4467_v43 = vmul.f32 %v4139_v55, %v708_v17  ;;  %v850_v44 = vadd.f32 %v834_v30, %v797_v18  ;;  %v4470_v57 = vmul.f32 %v4217_v21, %v970_v9  ;;  %464 = vst.msk [vmem:[#allocation2 + $0x270] sm:$0xff] %vm189_vm0, %v428_v28  ;;  %463 = vst.msk [vmem:[#allocation2 + $0x268] sm:$0xff] %vm189_vm0, %v426_v40  ;;  %v919_v58 = vld [vmem:[#allocation2 + $0x184] sm:$0xff] }
  0xec   : > { %6891 = vst [vmem:[#allocation39_spill] sm:$0xff] %v4464_v38  ;;  %v4475_v1 = vmul.f32 %v4232_v27, %v1023_v60  ;;  %v1964_v22 = vmul.f32 %v4112_v34, %v760_v11  ;;  %v2021_v12 = vmul.f32 %v4117_v35, %v1946_v7  ;;  %v2075_v10 = vmul.f32 %v4124_v41, %v1946_v7  ;;  %v1078_v14 = vld [vmem:[#allocation2 + $0x187] sm:$0xff] }
  0xed   : > { %6892 = vst [vmem:[#allocation40_spill] sm:$0xff] %v4467_v43  ;;  %6893 = vst [vmem:[#allocation41_spill] sm:$0xff] %v4470_v57  ;;  %v4480_v30 = vadd.f32 %v938_v49, %v901_v47  ;;  %v1967_v23 = vmul.f32 %v4112_v34, %v1946_v7  ;;  %v2129_v17 = vmul.f32 %v4132_v48, %v1946_v7  ;;  %v972_v60 = vld [vmem:[#allocation2 + $0x185] sm:$0xff]  ;;  %v430_v43 = vpop.permute.xlu0 %429  ;;  %v2162_v49 = vld [vmem:[#allocation2 + $0x18f] sm:$0xff] }
  0xee   : > { %6894 = vst [vmem:[#allocation42_spill] sm:$0xff] %v4475_v1  ;;  %v887_v28 = vmul.f32 %v4184_v56, %v866_v32  ;;  %v2034_v40 = vadd.f32 %v2018_v39, %v1962_v31  ;;  %v2088_v9 = vadd.f32 %v2072_v61, %v2032_v2  ;;  %v2142_v18 = vadd.f32 %v2126_v53, %v2086_v33  ;;  %v432_v38 = vpop.permute.xlu1 %431  ;;  %v1025_v16 = vld [vmem:[#allocation2 + $0x186] sm:$0xff] }
  0xef   : > { %6895 = vst [vmem:[#allocation43_spill] sm:$0xff] %v4480_v30  ;;  %v2020_v11 = vmul.f32 %v4117_v35, %v1945_v13  ;;  %v940_v57 = vmul.f32 %v4212_v20, %v919_v58  ;;  %v2074_v47 = vmul.f32 %v4124_v41, %v1945_v13  ;;  %v2182_v30 = vmul.f32 %v4139_v55, %v1078_v14  ;;  %v2267_v31 = vld [vmem:[#allocation2 + $0x189] sm:$0xff] }
  0xf0   : > { %v903_v1 = vadd.f32 %v887_v28, %v850_v44  ;;  %466 = vst.msk [vmem:[#allocation2 + $0x290] sm:$0xff] %vm189_vm0, %v432_v38  ;;  %465 = vst.msk [vmem:[#allocation2 + $0x288] sm:$0xff] %vm189_vm0, %v430_v43  ;;  %v2037_v2 = vadd.f32 %v2021_v12, %v1965_v6  ;;  %v2091_v53 = vadd.f32 %v2075_v10, %v2035_v45  ;;  %v1948_v14 = vld [vmem:[#allocation2 + $0x1b0] sm:$0xff]  ;;  %v1947_v12 = vld [vmem:[#allocation2 + $0x1a8] sm:$0xff] }
  0xf1   : > { %v2128_v33 = vmul.f32 %v4132_v48, %v1945_v13  ;;  %v2235_v32 = vmul.f32 %v4147_v62, %v1945_v13  ;;  %v4493_v39 = vadd.f32 %v2129_v17, %v2089_v42  ;;  %v4496_v61 = vmul.f32 %v4147_v62, %v1946_v7  ;;  %v2163_v42 = vld [vmem:[#allocation2 + $0x1a7] sm:$0xff] }
  0xf2   : > { %v4499_v44 = vmul.f32 %v4217_v21, %v972_v60  ;;  %v2198_v58 = vadd.f32 %v2182_v30, %v2142_v18  ;;  %v4502_v38 = vmul.f32 %v4232_v27, %v1025_v16  ;;  %v1966_v6 = vmul.f32 %v4112_v34, %v1945_v13  ;;  %v2269_v13 = vld [vmem:[#allocation2 + $0x1a9] sm:$0xff] }
  0xf3   : > { %6896 = vst [vmem:[#allocation44_spill] sm:$0xff] %v4493_v39  ;;  %6897 = vst [vmem:[#allocation45_spill] sm:$0xff] %v4496_v61  ;;  %v2036_v45 = vadd.f32 %v2020_v11, %v1964_v22  ;;  %v4506_v43 = vmul.f32 %v4139_v55, %v2162_v49  ;;  %v4508_v10 = vadd.f32 %v940_v57, %v903_v1  ;;  %v2320_v22 = vld [vmem:[#allocation2 + $0x1a3] sm:$0xff] }
  0xf4   : > { %6898 = vst [vmem:[#allocation46_spill] sm:$0xff] %v4499_v44  ;;  %6899 = vst [vmem:[#allocation47_spill] sm:$0xff] %v4502_v38  ;;  %v2090_v7 = vadd.f32 %v2074_v47, %v2034_v40  ;;  %v2251_v17 = vadd.f32 %v2235_v32, %v2198_v58  ;;  %v2288_v28 = vmul.f32 %v4160_v15, %v2267_v31  ;;  %v1950_v40 = vld [vmem:[#allocation2 + $0x1d0] sm:$0xff]  ;;  %v2373_v38 = vld [vmem:[#allocation2 + $0x1a4] sm:$0xff] }
  0xf5   : > { %6900 = vst [vmem:[#allocation48_spill] sm:$0xff] %v4506_v43  ;;  %6901 = vst [vmem:[#allocation49_spill] sm:$0xff] %v4508_v10  ;;  %v2144_v60 = vadd.f32 %v2128_v33, %v2088_v9  ;;  %v2023_v30 = vmul.f32 %v4117_v35, %v1948_v14  ;;  %v2077_v16 = vmul.f32 %v4124_v41, %v1948_v14  ;;  %v2164_v32 = vld [vmem:[#allocation2 + $0x1af] sm:$0xff]  ;;  %v2426_v44 = vld [vmem:[#allocation2 + $0x1a5] sm:$0xff] }
  0xf6   : > { %v2131_v18 = vmul.f32 %v4132_v48, %v1948_v14  ;;  %v1969_v11 = vmul.f32 %v4112_v34, %v1948_v14  ;;  %v2022_v49 = vmul.f32 %v4117_v35, %v1947_v12  ;;  %v2076_v57 = vmul.f32 %v4124_v41, %v1947_v12 }
  0xf7   : > { %v2184_v1 = vmul.f32 %v4139_v55, %v2163_v42  ;;  %v4519_v47 = vmul.f32 %v4147_v62, %v1948_v14  ;;  %v1968_v9 = vmul.f32 %v4112_v34, %v1947_v12  ;;  %v2130_v33 = vmul.f32 %v4132_v48, %v1947_v12  ;;  %v2479_v42 = vld [vmem:[#allocation2 + $0x1a6] sm:$0xff] }
  0xf8   : > { %v2237_v31 = vmul.f32 %v4147_v62, %v1947_v12  ;;  %v2304_v58 = vadd.f32 %v2288_v28, %v2251_v17  ;;  %v2290_v61 = vmul.f32 %v4160_v15, %v2269_v13  ;;  %v2341_v43 = vmul.f32 %v4184_v56, %v2320_v22  ;;  %v1949_v17 = vld [vmem:[#allocation2 + $0x1c8] sm:$0xff] }
  0xf9   : > { %6902 = vst [vmem:[#allocation50_spill] sm:$0xff] %v4519_v47  ;;  %v2200_v39 = vadd.f32 %v2184_v1, %v2144_v60  ;;  %v2039_v10 = vadd.f32 %v2023_v30, %v1967_v23  ;;  %v2093_v50 = vadd.f32 %v2077_v16, %v2037_v2  ;;  %v4526_v14 = vadd.f32 %v2131_v18, %v2091_v53  ;;  %v2165_v28 = vld [vmem:[#allocation2 + $0x1c7] sm:$0xff]  ;;  %v2166_v1 = vld [vmem:[#allocation2 + $0x1cf] sm:$0xff] }
  0xfa   : > { %v2025_v47 = vmul.f32 %v4117_v35, %v1950_v40  ;;  %v2038_v63 = vadd.f32 %v2022_v49, %v1966_v6  ;;  %v2092_v52 = vadd.f32 %v2076_v57, %v2036_v45  ;;  %v4530_v8 = vmul.f32 %v4139_v55, %v2164_v32  ;;  %v2322_v2 = vld [vmem:[#allocation2 + $0x1c3] sm:$0xff] }
  0xfb   : > { %6903 = vst [vmem:[#allocation51_spill] sm:$0xff] %v4526_v14  ;;  %v2253_v12 = vadd.f32 %v2237_v31, %v2200_v39  ;;  %v2146_v60 = vadd.f32 %v2130_v33, %v2090_v7  ;;  %v2394_v13 = vmul.f32 %v4212_v20, %v2373_v38  ;;  %v4534_v22 = vmul.f32 %v4217_v21, %v2426_v44  ;;  %v2271_v16 = vld [vmem:[#allocation2 + $0x1c9] sm:$0xff] }
  0xfc   : > { %6904 = vst [vmem:[#allocation52_spill] sm:$0xff] %v4530_v8  ;;  %v4537_v23 = vmul.f32 %v4232_v27, %v2479_v42  ;;  %v2357_v30 = vadd.f32 %v2341_v43, %v2304_v58  ;;  %v1971_v6 = vmul.f32 %v4112_v34, %v1950_v40  ;;  %v2079_v45 = vmul.f32 %v4124_v41, %v1950_v40  ;;  %v2375_v44 = vld [vmem:[#allocation2 + $0x1c4] sm:$0xff] }
  0xfd   : > { %6905 = vst [vmem:[#allocation53_spill] sm:$0xff] %v4534_v22  ;;  %v2306_v53 = vadd.f32 %v2290_v61, %v2253_v12  ;;  %v2041_v39 = vadd.f32 %v2025_v47, %v1969_v11  ;;  %v2133_v18 = vmul.f32 %v4132_v48, %v1950_v40  ;;  %v2024_v7 = vmul.f32 %v4117_v35, %v1949_v17  ;;  %v2428_v32 = vld [vmem:[#allocation2 + $0x1c5] sm:$0xff]  ;;  %v2174_v22 = vld [vmem:[#allocation2 + $0x24f] sm:$0xff] }
  0xfe   : > { %6906 = vst [vmem:[#allocation54_spill] sm:$0xff] %v4537_v23  ;;  %v2186_v38 = vmul.f32 %v4139_v55, %v2165_v28  ;;  %v2078_v49 = vmul.f32 %v4124_v41, %v1949_v17  ;;  %v2132_v57 = vmul.f32 %v4132_v48, %v1949_v17  ;;  %v2239_v61 = vmul.f32 %v4147_v62, %v1949_v17  ;;  %v2481_v31 = vld [vmem:[#allocation2 + $0x1c6] sm:$0xff]  ;;  %v1952_v28 = vld [vmem:[#allocation2 + $0x1f0] sm:$0xff] }
  0xff   : > { %v2343_v43 = vmul.f32 %v4184_v56, %v2322_v2  ;;  %v4549_v33 = vmul.f32 %v4147_v62, %v1950_v40  ;;  %v1970_v11 = vmul.f32 %v4112_v34, %v1949_v17  ;;  %v2292_v35 = vmul.f32 %v4160_v15, %v2271_v16  ;;  %v1951_v34 = vld [vmem:[#allocation2 + $0x1e8] sm:$0xff] }
 0x100   : > { %v2202_v47 = vadd.f32 %v2186_v38, %v2146_v60  ;;  %v4553_v58 = vadd.f32 %v2394_v13, %v2357_v30  ;;  %v2095_v41 = vadd.f32 %v2079_v45, %v2039_v10  ;;  %v2396_v12 = vmul.f32 %v4212_v20, %v2375_v44  ;;  %v2167_v17 = vld [vmem:[#allocation2 + $0x1e7] sm:$0xff]  ;;  %v3681_v30 = vld [vmem:[%s6799_s1 + $0x1] ss:$0 sm:$0xff] }
 0x101   : > { %6907 = vst [vmem:[#allocation55_spill] sm:$0xff] %v4549_v33  ;;  %v2359_v42 = vadd.f32 %v2343_v43, %v2306_v53  ;;  %v4556_v14 = vadd.f32 %v2133_v18, %v2093_v50  ;;  %v2040_v2 = vadd.f32 %v2024_v7, %v1968_v9  ;;  %v4559_v40 = vmul.f32 %v4139_v55, %v2166_v1  ;;  %v2324_v13 = vld [vmem:[#allocation2 + $0x1e3] sm:$0xff]  ;;  %v3680_v50 = vld [vmem:[%s6799_s1] ss:$0 sm:$0xff] }
 0x102   : > { %6908 = vst [vmem:[#allocation56_spill] sm:$0xff] %v4553_v58  ;;  %v2255_v33 = vadd.f32 %v2239_v61, %v2202_v47  ;;  %v2094_v60 = vadd.f32 %v2078_v49, %v2038_v63  ;;  %v2148_v16 = vadd.f32 %v2132_v57, %v2092_v52  ;;  %v4562_v38 = vmul.f32 %v4217_v21, %v2428_v32  ;;  %v4576_v52 = vld [vmem:[%s6799_s1 + $0x2] ss:$0 sm:$0xff]  ;;  %v2273_v18 = vld [vmem:[#allocation2 + $0x1e9] sm:$0xff]  ;;  %v4587_v43 = vld [vmem:[%s6799_s1 + $0x3] ss:$0 sm:$0xff] }
 0x103   : > { %6909 = vst [vmem:[#allocation57_spill] sm:$0xff] %v4556_v14  ;;  %6910 = vst [vmem:[#allocation58_spill] sm:$0xff] %v4559_v40  ;;  %v4565_v10 = vmul.f32 %v4232_v27, %v2481_v31  ;;  %v1973_v9 = vmul.f32 %v3680_v50, %v1952_v28  ;;  %v2027_v45 = vmul.f32 %v3681_v30, %v1952_v28  ;;  %v2377_v1 = vld [vmem:[#allocation2 + $0x1e4] sm:$0xff]  ;;  %v2168_v47 = vld [vmem:[#allocation2 + $0x1ef] sm:$0xff] }
 0x104   : > { %6911 = vst [vmem:[#allocation59_spill] sm:$0xff] %v4562_v38  ;;  %v2308_v53 = vadd.f32 %v2292_v35, %v2255_v33  ;;  %v2081_v63 = vmul.f32 %v4576_v52, %v1952_v28  ;;  %v4579_v7 = vadd.f32 %v2396_v12, %v2359_v42  ;;  %v2135_v44 = vmul.f32 %v4132_v48, %v1952_v28  ;;  %v2008_v12 = vld [vmem:[#allocation2 + $0x210] sm:$0xff]  ;;  %v2430_v38 = vld [vmem:[#allocation2 + $0x1e5] sm:$0xff] }
 0x105   : > { %6912 = vst [vmem:[#allocation60_spill] sm:$0xff] %v4565_v10  ;;  %v2026_v49 = vmul.f32 %v3681_v30, %v1951_v34  ;;  %v2188_v57 = vmul.f32 %v4139_v55, %v2167_v17  ;;  %v2080_v61 = vmul.f32 %v4576_v52, %v1951_v34  ;;  %v2134_v33 = vmul.f32 %v4587_v43, %v1951_v34  ;;  %v2279_v58 = vld [vmem:[#allocation2 + $0x249] sm:$0xff] }
 0x106   : > { %6913 = vst [vmem:[#allocation61_spill] sm:$0xff] %v4579_v7  ;;  %v2241_v35 = vmul.f32 %v4147_v62, %v1951_v34  ;;  %v2345_v32 = vmul.f32 %v4184_v56, %v2324_v13  ;;  %v4593_v48 = vmul.f32 %v4147_v62, %v1952_v28  ;;  %v1972_v31 = vmul.f32 %v3680_v50, %v1951_v34  ;;  %v2007_v7 = vld [vmem:[#allocation2 + $0x208] sm:$0xff]  ;;  %v4602_v62 = vld [vmem:[%s6799_s1 + $0x4] ss:$0 sm:$0xff] }
 0x107   : > { %v2204_v55 = vadd.f32 %v2188_v57, %v2148_v16  ;;  %v2294_v42 = vmul.f32 %v4160_v15, %v2273_v18  ;;  %v2043_v17 = vadd.f32 %v2027_v45, %v1971_v6  ;;  %v2097_v14 = vadd.f32 %v2081_v63, %v2041_v39  ;;  %v2483_v34 = vld [vmem:[#allocation2 + $0x1e6] sm:$0xff] }
 0x108   : > { %6914 = vst [vmem:[#allocation62_spill] sm:$0xff] %v4593_v48  ;;  %v2361_v40 = vadd.f32 %v2345_v32, %v2308_v53  ;;  %v2398_v10 = vmul.f32 %v4212_v20, %v2377_v1  ;;  %v4597_v8 = vadd.f32 %v2135_v44, %v2095_v41  ;;  %v2042_v23 = vadd.f32 %v2026_v49, %v1970_v11  ;;  %v2169_v6 = vld [vmem:[#allocation2 + $0x207] sm:$0xff] }
 0x109   : > { %v4605_v28 = vmul.f32 %v4602_v62, %v2168_v47  ;;  %v2257_v15 = vadd.f32 %v2241_v35, %v2204_v55  ;;  %v2096_v39 = vadd.f32 %v2080_v61, %v2040_v2  ;;  %v2150_v16 = vadd.f32 %v2134_v33, %v2094_v60  ;;  %v2326_v50 = vld [vmem:[#allocation2 + $0x203] sm:$0xff]  ;;  %v2064_v33 = vld [vmem:[#allocation2 + $0x230] sm:$0xff] }
 0x10a   : > { %6915 = vst [vmem:[#allocation63_spill] sm:$0xff] %v4597_v8  ;;  %v2029_v13 = vmul.f32 %v3681_v30, %v2008_v12  ;;  %v2083_v53 = vmul.f32 %v4576_v52, %v2008_v12  ;;  %v4609_v11 = vmul.f32 %v4217_v21, %v2430_v38  ;;  %v2137_v45 = vmul.f32 %v4587_v43, %v2008_v12  ;;  %v2275_v18 = vld [vmem:[#allocation2 + $0x209] sm:$0xff]  ;;  %v4621_v2 = vld [vmem:[%s6799_s1 + $0x5] ss:$0 sm:$0xff] }
 0x10b   : > { %6916 = vst [vmem:[#allocation64_spill] sm:$0xff] %v4605_v28  ;;  %v2310_v41 = vadd.f32 %v2294_v42, %v2257_v15  ;;  %v2136_v63 = vmul.f32 %v4587_v43, %v2007_v7  ;;  %v4613_v44 = vadd.f32 %v2398_v10, %v2361_v40  ;;  %v4616_v49 = vmul.f32 %v4232_v27, %v2483_v34  ;;  %v2379_v57 = vld [vmem:[#allocation2 + $0x204] sm:$0xff]  ;;  %v2170_v55 = vld [vmem:[#allocation2 + $0x20f] sm:$0xff] }
 0x10c   : > { %6917 = vst [vmem:[#allocation65_spill] sm:$0xff] %v4609_v11  ;;  %v4624_v60 = vmul.f32 %v4621_v2, %v2008_v12  ;;  %v2190_v38 = vmul.f32 %v4602_v62, %v2169_v6  ;;  %v2028_v1 = vmul.f32 %v3681_v30, %v2007_v7  ;;  %v2082_v61 = vmul.f32 %v4576_v52, %v2007_v7  ;;  %v2171_v47 = vld [vmem:[#allocation2 + $0x227] sm:$0xff]  ;;  %v4633_v12 = vld [vmem:[%s6799_s1 + $0x6] ss:$0 sm:$0xff] }
 0x10d   : > { %6918 = vst [vmem:[#allocation66_spill] sm:$0xff] %v4613_v44  ;;  %6919 = vst [vmem:[#allocation67_spill] sm:$0xff] %v4616_v49  ;;  %v2243_v40 = vmul.f32 %v4621_v2, %v2007_v7  ;;  %v2347_v10 = vmul.f32 %v4184_v56, %v2326_v50  ;;  %v2045_v35 = vadd.f32 %v2029_v13, %v1973_v9  ;;  %v2432_v30 = vld [vmem:[#allocation2 + $0x205] sm:$0xff]  ;;  %v1118_v49 = vld [vmem:[#allocation2 + $0xb0] sm:$0xff] }
 0x10e   : > { %6920 = vst [vmem:[#allocation68_spill] sm:$0xff] %v4624_v60  ;;  %v2099_v32 = vadd.f32 %v2083_v53, %v2043_v17  ;;  %v2206_v42 = vadd.f32 %v2190_v38, %v2150_v16  ;;  %6921 = vst [vmem:[#allocation69_spill] sm:$0xff] %v4633_v12  ;;  %v2296_v15 = vmul.f32 %v4633_v12, %v2275_v18  ;;  %v2485_v50 = vld [vmem:[#allocation2 + $0x206] sm:$0xff] }
 0x10f   : > { %v4636_v34 = vadd.f32 %v2137_v45, %v2097_v14  ;;  %v2152_v6 = vadd.f32 %v2136_v63, %v2096_v39  ;;  %v2363_v7 = vadd.f32 %v2347_v10, %v2310_v41  ;;  %v2400_v56 = vmul.f32 %v4212_v20, %v2379_v57  ;;  %v2063_v16 = vld [vmem:[#allocation2 + $0x228] sm:$0xff] }
 0x110   : > { %v2259_v60 = vadd.f32 %v2243_v40, %v2206_v42  ;;  %v2085_v9 = vmul.f32 %v4576_v52, %v2064_v33  ;;  %v2139_v17 = vmul.f32 %v4587_v43, %v2064_v33  ;;  %v2192_v13 = vmul.f32 %v4602_v62, %v2171_v47  ;;  %v2328_v53 = vld [vmem:[#allocation2 + $0x223] sm:$0xff]  ;;  %v4648_v39 = vld [vmem:[#allocation2 + $0xab] sm:$0xff] }
 0x111   : > { %6922 = vst [vmem:[#allocation70_spill] sm:$0xff] %v4636_v34  ;;  %v2044_v38 = vadd.f32 %v2028_v1, %v1972_v31  ;;  %v2098_v8 = vadd.f32 %v2082_v61, %v2042_v23  ;;  %v4643_v18 = vmul.f32 %v4602_v62, %v2170_v55  ;;  %v4646_v14 = vmul.f32 %v4217_v21, %v2432_v30  ;;  %v2172_v57 = vld [vmem:[#allocation2 + $0x22f] sm:$0xff]  ;;  %v2381_v31 = vld [vmem:[#allocation2 + $0x224] sm:$0xff] }
 0x112   : > { %v2312_v41 = vadd.f32 %v2296_v15, %v2259_v60  ;;  %v4651_v45 = vmul.f32 %v4232_v27, %v2485_v50  ;;  %v4654_v63 = vmul.f32 %v4621_v2, %v2064_v33  ;;  %v2208_v40 = vadd.f32 %v2192_v13, %v2152_v6  ;;  %v2277_v10 = vld [vmem:[#allocation2 + $0x229] sm:$0xff]  ;;  %v4662_v60 = vld [vmem:[%s6799_s1 + $0x7] ss:$0 sm:$0xff] }
 0x113   : > { %6923 = vst [vmem:[#allocation71_spill] sm:$0xff] %v4643_v18  ;;  %6924 = vst [vmem:[#allocation72_spill] sm:$0xff] %v4646_v14  ;;  %v2084_v23 = vmul.f32 %v4576_v52, %v2063_v16  ;;  %v2138_v1 = vmul.f32 %v4587_v43, %v2063_v16  ;;  %v2245_v21 = vmul.f32 %v4621_v2, %v2063_v16  ;;  %v906_v61 = vld [vmem:[#allocation2 + $0xac] sm:$0xff]  ;;  %v4676_v42 = vld [vmem:[%s6799_s1 + $0xb] ss:$0 sm:$0xff] }
 0x114   : > { %6925 = vst [vmem:[#allocation73_spill] sm:$0xff] %v4651_v45  ;;  %6926 = vst [vmem:[#allocation74_spill] sm:$0xff] %v4654_v63  ;;  %v2349_v27 = vmul.f32 %v4662_v60, %v2328_v53  ;;  %v4665_v33 = vadd.f32 %v2400_v56, %v2363_v7  ;;  %v4667_v47 = vadd.f32 %v2085_v9, %v2045_v35  ;;  %v4681_v15 = vld [vmem:[%s6799_s1 + $0xc] ss:$0 sm:$0xff]  ;;  %v959_v56 = vld [vmem:[#allocation2 + $0xad] sm:$0xff] }
 0x115   : > { %v4669_v55 = vadd.f32 %v2139_v17, %v2099_v32  ;;  %v874_v52 = vmul.f32 %v4662_v60, %v4648_v39  ;;  %v4684_v30 = vmul.f32 %v4602_v62, %v2172_v57  ;;  %v2298_v35 = vmul.f32 %v4633_v12, %v2277_v10  ;;  %v2434_v6 = vld [vmem:[#allocation2 + $0x225] sm:$0xff]  ;;  %v4693_v9 = vld [vmem:[%s6799_s1 + $0xd] ss:$0 sm:$0xff]  ;;  %v1012_v57 = vld [vmem:[#allocation2 + $0xae] sm:$0xff] }
 0x116   : > { %6927 = vst [vmem:[#allocation75_spill] sm:$0xff] %v4665_v33  ;;  %v2402_v32 = vmul.f32 %v4212_v20, %v2381_v31  ;;  %v2487_v7 = vld [vmem:[#allocation2 + $0x226] sm:$0xff]  ;;  %v995_v50 = vadd.f32 %v4253_v54, %v4273_v19  ;;  %v2261_v17 = vadd.f32 %v2245_v21, %v2208_v40  ;;  %v2365_v16 = vadd.f32 %v2349_v27, %v2312_v41  ;;  %v1065_v10 = vld [vmem:[#allocation2 + $0xaf] sm:$0xff] }
 0x117   : > { %6928 = vst [vmem:[#allocation76_spill] sm:$0xff] %v4669_v55  ;;  %6929 = vst [vmem:[#allocation77_spill] sm:$0xff] %v4684_v30  ;;  %v890_v13 = vadd.f32 %v874_v52, %v4195_v3  ;;  %v927_v53 = vmul.f32 %v4212_v20, %v906_v61  ;;  %v1117_v31 = vld [vmem:[#allocation2 + $0xa8] sm:$0xff]  ;;  %v4710_v19 = vld [vmem:[%s6799_s1 + $0x10] ss:$0 sm:$0xff]  ;;  %v4712_v3 = vadd.f32 %v2084_v23, %v2044_v38 }
 0x118   : > { %v4700_v55 = vld [vmem:[%s6799_s1 + $0xe] ss:$0 sm:$0xff]  ;;  %v4705_v54 = vld [vmem:[%s6799_s1 + $0xf] ss:$0 sm:$0xff]  ;;  %v2154_v20 = vadd.f32 %v2138_v1, %v2098_v8  ;;  %v1048_v41 = vadd.f32 %v4256_v51, %v995_v50  ;;  %v4719_v52 = vld [vmem:[%s6799_s1 + $0x11] ss:$0 sm:$0xff]  ;;  %v2314_v45 = vadd.f32 %v2298_v35, %v2261_v17  ;;  %v4763_v14 = vadd.f32 %v2402_v32, %v2365_v16 }
 0x119   : > { %v3688_v40 = vld [vmem:[#allocation2 + $0xa7] sm:$0xff]  ;;  %v4724_v63 = vld [vmem:[%s6799_s1 + $0x12] ss:$0 sm:$0xff]  ;;  %v943_v1 = vadd.f32 %v927_v53, %v890_v13  ;;  %v4746_v30 = vld [vmem:[%s6799_s1 + $0x13] ss:$0 sm:$0xff]  ;;  %v1138_v13 = vmul.f32 %v4681_v15, %v1117_v31  ;;  %v1289_v28 = vmul.f32 %v4705_v54, %v4648_v39  ;;  %v1334_v35 = vmul.f32 %v4710_v19, %v906_v61 }
 0x11a   : > { %v1085_v21 = vmul.f32 %v3688_v40, %v4676_v42  ;;  %v1170_v27 = vld [vmem:[#allocation2 + $0xa9] sm:$0xff]  ;;  %v4761_v18 = vld [vmem:[%s6799_s1 + $0x15] ss:$0 sm:$0xff]  ;;  %6932 = vst [vmem:[#allocation80_spill] sm:$0xff] %v4763_v14  ;;  %v4792_v39 = vld [vmem:[%s6799_s1 + $0x17] ss:$0 sm:$0xff] }
 0x11b   : > { %v4729_v8 = vld [vmem:[%s6799_s1 + $0x9] ss:$0 sm:$0xff]  ;;  %v4737_v38 = vld [vmem:[%s6799_s1 + $0xa] ss:$0 sm:$0xff]  ;;  %v1191_v48 = vmul.f32 %v4693_v9, %v1170_v27  ;;  %v2120_v16 = vld [vmem:[#allocation2 + $0x250] sm:$0xff] }
 0x11c   : > { %v4732_v51 = vmul.f32 %v4729_v8, %v2434_v6  ;;  %v4740_v23 = vmul.f32 %v4737_v38, %v2487_v7  ;;  %v980_v50 = vmul.f32 %v4729_v8, %v959_v56  ;;  %v1223_v40 = vld [vmem:[#allocation2 + $0xaa] sm:$0xff]  ;;  %v4751_v6 = vld [vmem:[%s6799_s1 + $0x14] ss:$0 sm:$0xff]  ;;  %v1033_v34 = vmul.f32 %v4737_v38, %v1012_v57 }
 0x11d   : > { %v1101_v7 = vadd.f32 %v1085_v21, %v1048_v41  ;;  %v1414_v53 = vld [vmem:[#allocation2 + $0xc7] sm:$0xff]  ;;  %v1244_v21 = vmul.f32 %v4700_v55, %v1223_v40  ;;  %v2141_v44 = vmul.f32 %v4587_v43, %v2120_v16 }
 0x11e   : > { %6930 = vst [vmem:[#allocation78_spill] sm:$0xff] %v4732_v51  ;;  %6931 = vst [vmem:[#allocation79_spill] sm:$0xff] %v4740_v23  ;;  %v1086_v51 = vmul.f32 %v4676_v42, %v1065_v10  ;;  %v4756_v23 = vld [vmem:[#allocation2 + $0xc8] sm:$0xff]  ;;  %v996_v33 = vadd.f32 %v980_v50, %v943_v1  ;;  %v4771_v10 = vld [vmem:[%s6799_s1 + $0x16] ss:$0 sm:$0xff]  ;;  %v1379_v1 = vmul.f32 %v4719_v52, %v959_v56 }
 0x11f   : > { %v4766_v57 = vld [vmem:[#allocation2 + $0xc9] sm:$0xff]  ;;  %v1154_v41 = vadd.f32 %v1138_v13, %v1101_v7  ;;  %v4783_v50 = vmul.f32 %v4724_v63, %v1414_v53  ;;  %v4787_v7 = vmul.f32 %v4746_v30, %v4756_v23  ;;  %v4803_v56 = vld [vmem:[%s6799_s1 + $0x18] ss:$0 sm:$0xff] }
 0x120   : > { %6933 = vst [vmem:[#allocation81_spill] sm:$0xff] %v4766_v57  ;;  %v2173_v31 = vld [vmem:[#allocation2 + $0x247] sm:$0xff]  ;;  %v1049_v27 = vadd.f32 %v1033_v34, %v996_v33  ;;  %v4796_v34 = vmul.f32 %v4751_v6, %v4766_v57 }
 0x121   : > { %v4777_v32 = vld [vmem:[#allocation2 + $0xe8] sm:$0xff]  ;;  %v1207_v13 = vadd.f32 %v1191_v48, %v1154_v41  ;;  %v2194_v53 = vmul.f32 %v4602_v62, %v2173_v31 }
 0x122   : > { %6934 = vst [vmem:[#allocation82_spill] sm:$0xff] %v4777_v32  ;;  %v4779_v17 = vld [vmem:[#allocation2 + $0x108] sm:$0xff]  ;;  %v1102_v11 = vadd.f32 %v1086_v51, %v1049_v27  ;;  %v4809_v48 = vmul.f32 %v4761_v18, %v4777_v32  ;;  %v1171_v51 = vld [vmem:[#allocation2 + $0xb1] sm:$0xff]  ;;  %v4827_v32 = vmul.f32 %v4621_v2, %v2120_v16 }
 0x123   : > { %6935 = vst [vmem:[#allocation83_spill] sm:$0xff] %v4779_v17  ;;  %v2119_v61 = vld [vmem:[#allocation2 + $0x248] sm:$0xff]  ;;  %v4813_v41 = vmul.f32 %v4771_v10, %v4779_v17  ;;  %v1260_v25 = vadd.f32 %v1244_v21, %v1207_v13  ;;  %v2210_v31 = vadd.f32 %v2194_v53, %v2154_v20  ;;  %v4824_v17 = vmul.f32 %v4803_v56, %v4400_v5  ;;  %v1224_v53 = vld [vmem:[#allocation2 + $0xb2] sm:$0xff] }
 0x124   : > { %v2330_v40 = vld [vmem:[#allocation2 + $0x243] sm:$0xff]  ;;  %v2247_v14 = vmul.f32 %v4621_v2, %v2119_v61  ;;  %v2140_v24 = vmul.f32 %v4587_v43, %v2119_v61  ;;  %6939 = vst [vmem:[#allocation87_spill] sm:$0xff] %v4827_v32  ;;  %v1139_v21 = vmul.f32 %v4681_v15, %v1118_v49  ;;  %v4831_v20 = vmul.f32 %v4602_v62, %v2174_v22  ;;  %v1366_v22 = vld [vmem:[#allocation2 + $0xb5] sm:$0xff] }
 0x125   : > { %v4798_v33 = vld [vmem:[#allocation2 + $0x128] sm:$0xff]  ;;  %6937 = vst [vmem:[#allocation85_spill] sm:$0xff] %v4813_v41  ;;  %v2351_v46 = vmul.f32 %v4662_v60, %v2330_v40  ;;  %v1305_v43 = vadd.f32 %v1289_v28, %v1260_v25  ;;  %v2300_v40 = vmul.f32 %v4633_v12, %v2279_v58  ;;  %v1192_v25 = vmul.f32 %v4693_v9, %v1171_v51  ;;  %v1321_v28 = vld [vmem:[#allocation2 + $0xb4] sm:$0xff] }
 0x126   : > { %6936 = vst [vmem:[#allocation84_spill] sm:$0xff] %v4798_v33  ;;  %v2383_v57 = vld [vmem:[#allocation2 + $0x244] sm:$0xff]  ;;  %v4820_v27 = vmul.f32 %v4792_v39, %v4798_v33  ;;  %6940 = vst [vmem:[#allocation88_spill] sm:$0xff] %v4831_v20  ;;  %v2263_v61 = vadd.f32 %v2247_v14, %v2210_v31  ;;  %v1276_v33 = vld [vmem:[#allocation2 + $0xb3] sm:$0xff]  ;;  %v1155_v32 = vadd.f32 %v1139_v21, %v1102_v11 }
 0x127   : > { %v2436_v41 = vld [vmem:[#allocation2 + $0x245] sm:$0xff]  ;;  %v1350_v49 = vadd.f32 %v1334_v35, %v1305_v43  ;;  %v4842_v14 = vadd.f32 %v2141_v44, %v4667_v47  ;;  %v4845_v58 = vadd.f32 %v2140_v24, %v4712_v3  ;;  %v1245_v11 = vmul.f32 %v4700_v55, %v1224_v53  ;;  %v4855_v21 = vld [vmem:[#allocation2 + $0xd0] sm:$0xff] }
 0x128   : > { %6938 = vst [vmem:[#allocation86_spill] sm:$0xff] %v4820_v27  ;;  %v2489_v13 = vld [vmem:[#allocation2 + $0x246] sm:$0xff]  ;;  %v2367_v27 = vadd.f32 %v2351_v46, %v2314_v45  ;;  %v4848_v46 = vmul.f32 %v4729_v8, %v2436_v41  ;;  %v1415_v45 = vld [vmem:[#allocation2 + $0xcf] sm:$0xff]  ;;  %v1290_v51 = vmul.f32 %v4705_v54, %v1276_v33  ;;  %v4859_v24 = vadd.f32 %v2300_v40, %v2263_v61 }
 0x129   : > { %v4837_v5 = vld [vmem:[%s6799_s1 + $0x8] ss:$0 sm:$0xff]  ;;  %6941 = vst [vmem:[#allocation89_spill] sm:$0xff] %v4842_v14  ;;  %v4851_v31 = vmul.f32 %v4737_v38, %v2489_v13  ;;  %v4857_v35 = vld [vmem:[#allocation2 + $0xd1] sm:$0xff]  ;;  %v1395_v47 = vadd.f32 %v1379_v1, %v1350_v49  ;;  %v1335_v3 = vmul.f32 %v4710_v19, %v1321_v28  ;;  %v1380_v41 = vmul.f32 %v4719_v52, %v1366_v22 }
 0x12a   : > { %v2404_v16 = vmul.f32 %v4837_v5, %v2383_v57  ;;  %6942 = vst [vmem:[#allocation90_spill] sm:$0xff] %v4848_v46  ;;  %v1208_v57 = vadd.f32 %v1192_v25, %v1155_v32  ;;  %v802_v44 = vld [vmem:[#allocation2 + $0xb1] sm:$0xff]  ;;  %v1436_v53 = vmul.f32 %v4724_v63, %v1415_v45  ;;  %v733_v1 = vadd.f32 %v4282_v26, %v4197_v4 }
 0x12b   : > { %6943 = vst [vmem:[#allocation91_spill] sm:$0xff] %v4851_v31  ;;  %v4863_v43 = vld [vmem:[#allocation2 + $0xf0] sm:$0xff]  ;;  %v1451_v61 = vadd.f32 %v4783_v50, %v1395_v47  ;;  %v1489_v40 = vmul.f32 %v4746_v30, %v4855_v21  ;;  %v1542_v28 = vmul.f32 %v4751_v6, %v4857_v35  ;;  %v944_v22 = vadd.f32 %v4238_v29, %v4309_v0  ;;  %v3692_v31 = vld [vmem:[#allocation2 + $0xc7] sm:$0xff] }
 0x12c   : > { %v4865_v13 = vadd.f32 %v2404_v16, %v2367_v27  ;;  %v1261_v32 = vadd.f32 %v1245_v11, %v1208_v57  ;;  %v4868_v33 = vld [vmem:[#allocation2 + $0x110] sm:$0xff]  ;;  %v1598_v57 = vmul.f32 %v4761_v18, %v4863_v43  ;;  %v786_v4 = vadd.f32 %v4287_v59, %v733_v1 }
 0x12d   : > { %6945 = vst [vmem:[#allocation93_spill] sm:$0xff] %v4868_v33  ;;  %v4870_v25 = vld [vmem:[#allocation2 + $0x130] sm:$0xff]  ;;  %v823_v26 = vmul.f32 %v4633_v12, %v802_v44  ;;  %v1504_v11 = vadd.f32 %v4787_v7, %v1451_v61  ;;  %v4890_v47 = vmul.f32 %v4771_v10, %v4868_v33  ;;  %v997_v0 = vadd.f32 %v4241_v36, %v944_v22 }
 0x12e   : > { %6944 = vst [vmem:[#allocation92_spill] sm:$0xff] %v4865_v13  ;;  %6946 = vst [vmem:[#allocation94_spill] sm:$0xff] %v4870_v25  ;;  %v4879_v27 = vld [vmem:[#allocation2 + $0x150] sm:$0xff]  ;;  %v1306_v49 = vadd.f32 %v1290_v51, %v1261_v32  ;;  %v4894_v14 = vmul.f32 %v4792_v39, %v4870_v25  ;;  %v1087_v46 = vmul.f32 %v3692_v31, %v4676_v42  ;;  %v6948_v25 = vld [vmem:[#allocation81_spill] sm:$0xff] }
 0x12f   : > { %6947 = vst [vmem:[#allocation95_spill] sm:$0xff] %v4879_v27  ;;  %v855_v16 = vld [vmem:[#allocation2 + $0xcb] sm:$0xff]  ;;  %v4899_v59 = vmul.f32 %v4803_v56, %v4879_v27  ;;  %v839_v44 = vadd.f32 %v823_v26, %v786_v4  ;;  %v1557_v1 = vadd.f32 %v4796_v34, %v1504_v11  ;;  %v1050_v20 = vadd.f32 %v4244_v37, %v997_v0 }
 0x130   : > { %v908_v50 = vld [vmem:[#allocation2 + $0xcc] sm:$0xff]  ;;  %v1351_v32 = vadd.f32 %v1335_v3, %v1306_v49  ;;  %v876_v7 = vmul.f32 %v4662_v60, %v855_v16  ;;  %v1088_v26 = vmul.f32 %v4676_v42, %v1415_v45  ;;  %v1140_v34 = vmul.f32 %v4681_v15, %v4756_v23 }
 0x131   : > { %v961_v29 = vld [vmem:[#allocation2 + $0xcd] sm:$0xff]  ;;  %v929_v61 = vmul.f32 %v4837_v5, %v908_v50  ;;  %v1613_v4 = vadd.f32 %v4809_v48, %v1557_v1  ;;  %v1103_v27 = vadd.f32 %v1087_v46, %v1050_v20  ;;  %v1193_v31 = vmul.f32 %v4693_v9, %v6948_v25  ;;  %v2332_v25 = vld [vmem:[#allocation2 + $0x263] sm:$0xff] }
 0x132   : > { %v1014_v51 = vld [vmem:[#allocation2 + $0xce] sm:$0xff]  ;;  %v1396_v36 = vadd.f32 %v1380_v41, %v1351_v32  ;;  %v892_v22 = vadd.f32 %v876_v7, %v839_v44  ;;  %v982_v3 = vmul.f32 %v4729_v8, %v961_v29  ;;  %v6949_v7 = vld [vmem:[#allocation85_spill] sm:$0xff]  ;;  %v1291_v48 = vmul.f32 %v4705_v54, %v855_v16 }
 0x133   : > { %v1225_v13 = vld [vmem:[#allocation2 + $0xca] sm:$0xff]  ;;  %v1035_v49 = vmul.f32 %v4737_v38, %v1014_v51  ;;  %v1669_v51 = vadd.f32 %v6949_v7, %v1613_v4  ;;  %v1156_v33 = vadd.f32 %v1140_v34, %v1103_v27  ;;  %v1336_v20 = vmul.f32 %v4710_v19, %v908_v50  ;;  %v4928_v16 = vld [vmem:[%s6800_s2] ss:$0 sm:$0xff]  ;;  %v6953_v7 = vld [vmem:[#allocation84_spill] sm:$0xff] }
 0x134   : > { %v2175_v11 = vld [vmem:[#allocation2 + $0x267] sm:$0xff]  ;;  %v1452_v37 = vadd.f32 %v1436_v53, %v1396_v36  ;;  %v945_v0 = vadd.f32 %v929_v61, %v892_v22  ;;  %v1246_v41 = vmul.f32 %v4700_v55, %v1225_v13  ;;  %v1381_v23 = vmul.f32 %v4719_v52, %v961_v29 }
 0x135   : > { %v1416_v32 = vld [vmem:[#allocation2 + $0xe7] sm:$0xff]  ;;  %v2196_v1 = vmul.f32 %v4602_v62, %v2175_v11  ;;  %v1209_v36 = vadd.f32 %v1193_v31, %v1156_v33 }
 0x136   : > { %v2228_v44 = vld [vmem:[#allocation2 + $0x268] sm:$0xff]  ;;  %v1505_v46 = vadd.f32 %v1489_v40, %v1452_v37  ;;  %v998_v45 = vadd.f32 %v982_v3, %v945_v0  ;;  %v1437_v22 = vmul.f32 %v4724_v63, %v1416_v32  ;;  %v2353_v0 = vmul.f32 %v4662_v60, %v2332_v25 }
 0x137   : > { %v4919_v53 = vld [vmem:[#allocation2 + $0xe9] sm:$0xff]  ;;  %v2249_v27 = vmul.f32 %v4621_v2, %v2228_v44  ;;  %v2212_v4 = vadd.f32 %v2196_v1, %v4845_v58  ;;  %v1262_v33 = vadd.f32 %v1246_v41, %v1209_v36  ;;  %v4945_v58 = vmul.f32 %v4771_v10, %v6953_v7 }
 0x138   : > { %v6950_v61 = vld [vmem:[#allocation86_spill] sm:$0xff]  ;;  %v1558_v40 = vadd.f32 %v1542_v28, %v1505_v46  ;;  %v1051_v50 = vadd.f32 %v1035_v49, %v998_v45  ;;  %v4936_v37 = vmul.f32 %v4751_v6, %v4919_v53  ;;  %v6952_v28 = vld [vmem:[#allocation83_spill] sm:$0xff] }
 0x139   : > { %v1725_v13 = vadd.f32 %v6950_v61, %v1669_v51  ;;  %v6951_v29 = vld [vmem:[#allocation82_spill] sm:$0xff]  ;;  %v4941_v49 = vmul.f32 %v4761_v18, %v6952_v28  ;;  %v2229_v41 = vld [vmem:[#allocation2 + $0x270] sm:$0xff]  ;;  %v1307_v45 = vadd.f32 %v1291_v48, %v1262_v33  ;;  %v2265_v25 = vadd.f32 %v2249_v27, %v2212_v4 }
 0x13a   : > { %v1490_v3 = vmul.f32 %v4746_v30, %v6951_v29  ;;  %v2281_v34 = vld [vmem:[#allocation2 + $0x269] sm:$0xff]  ;;  %v1614_v32 = vadd.f32 %v1598_v57, %v1558_v40  ;;  %v1104_v44 = vadd.f32 %v1088_v26, %v1051_v50  ;;  %v2369_v61 = vadd.f32 %v2353_v0, %v4859_v24  ;;  %v1226_v27 = vld [vmem:[#allocation2 + $0xd2] sm:$0xff] }
 0x13b   : > { %v1781_v11 = vadd.f32 %v4824_v17, %v1725_v13  ;;  %v2385_v31 = vld [vmem:[#allocation2 + $0x264] sm:$0xff]  ;;  %v2176_v1 = vld [vmem:[#allocation2 + $0x26f] sm:$0xff]  ;;  %v2302_v57 = vmul.f32 %v4633_v12, %v2281_v34  ;;  %v1141_v50 = vmul.f32 %v4681_v15, %v4855_v21  ;;  %v4968_v24 = vmul.f32 %v4621_v2, %v2229_v41 }
 0x13c   : > { %v4947_v51 = vld [vmem:[#allocation2 + $0x148] sm:$0xff]  ;;  %v1670_v26 = vadd.f32 %v4890_v47, %v1614_v32  ;;  %v2406_v13 = vmul.f32 %v4837_v5, %v2385_v31  ;;  %v4972_v21 = vmul.f32 %v4602_v62, %v2176_v1  ;;  %v1277_v33 = vld [vmem:[#allocation2 + $0xd3] sm:$0xff] }
 0x13d   : > { %v4949_v17 = vld [vmem:[#allocation2 + $0x168] sm:$0xff]  ;;  %v1804_v46 = vadd.f32 %v4928_v16, %v1781_v11  ;;  %v1352_v11 = vadd.f32 %v1336_v20, %v1307_v45  ;;  %v4961_v48 = vmul.f32 %v4792_v39, %v4947_v51  ;;  %6954 = vst [vmem:[#allocation81_spill] sm:$0xff] %v4968_v24  ;;  %v1157_v34 = vadd.f32 %v1141_v50, %v1104_v44  ;;  %v1322_v0 = vld [vmem:[#allocation2 + $0xd4] sm:$0xff] }
 0x13e   : > { %v2438_v36 = vld [vmem:[#allocation2 + $0x265] sm:$0xff]  ;;  %v4965_v47 = vmul.f32 %v4803_v56, %v4949_v17  ;;  %v1726_v4 = vadd.f32 %v4894_v14, %v1670_v26  ;;  %6955 = vst [vmem:[#allocation85_spill] sm:$0xff] %v4972_v21  ;;  %v1194_v20 = vmul.f32 %v4693_v9, %v4857_v35  ;;  %v4976_v32 = vadd.f32 %v2302_v57, %v2265_v25  ;;  %v1367_v41 = vld [vmem:[#allocation2 + $0xd5] sm:$0xff] }
 0x13f   : > { %v2491_v40 = vld [vmem:[#allocation2 + $0x266] sm:$0xff]  ;;  %1852 = vrot.lane.b32.xlu0 %v1804_v46, %s3849_s23  ;;  %v1397_v31 = vadd.f32 %v1381_v23, %v1352_v11  ;;  %v4979_v46 = vmul.f32 %v4729_v8, %v2438_v36  ;;  %v1417_v14 = vld [vmem:[#allocation2 + $0xef] sm:$0xff]  ;;  %v4985_v44 = vadd.f32 %v2406_v13, %v2369_v61  ;;  %v1247_v35 = vmul.f32 %v4700_v55, %v1226_v27 }
 0x140   : > { %v4982_v2 = vmul.f32 %v4737_v38, %v2491_v40  ;;  %v804_v45 = vld [vmem:[#allocation2 + $0xd1] sm:$0xff]  ;;  %v1782_v62 = vadd.f32 %v4899_v59, %v1726_v4  ;;  %v1210_v1 = vadd.f32 %v1194_v20, %v1157_v34  ;;  %v1292_v25 = vmul.f32 %v4705_v54, %v1277_v33  ;;  %v6959_v40 = vld [vmem:[#allocation13_spill] sm:$0xff]  ;;  %v6960_v50 = vld [vmem:[#allocation10_spill] sm:$0xff] }
 0x141   : > { %6956 = vst [vmem:[#allocation86_spill] sm:$0xff] %v4979_v46  ;;  %6958 = vst [vmem:[#allocation83_spill] sm:$0xff] %v4985_v44  ;;  %v857_v26 = vld [vmem:[#allocation2 + $0xeb] sm:$0xff]  ;;  %v1453_v23 = vadd.f32 %v1437_v22, %v1397_v31  ;;  %v1337_v57 = vmul.f32 %v4710_v19, %v1322_v0  ;;  %v735_v11 = vadd.f32 %v6960_v50, %v6959_v40 }
 0x142   : > { %6957 = vst [vmem:[#allocation82_spill] sm:$0xff] %v4982_v2  ;;  %v4990_v36 = vld [vmem:[#allocation2 + $0xf1] sm:$0xff]  ;;  %v1805_v24 = vadd.f32 %v4928_v16, %v1782_v62  ;;  %v1263_v21 = vadd.f32 %v1247_v35, %v1210_v1  ;;  %v1382_v59 = vmul.f32 %v4719_v52, %v1367_v41  ;;  %v1438_v61 = vmul.f32 %v4724_v63, %v1417_v14  ;;  %v6966_v40 = vld [vmem:[#allocation94_spill] sm:$0xff] }
 0x143   : > { %v1506_v13 = vadd.f32 %v1490_v3, %v1453_v23  ;;  %v6961_v27 = vld [vmem:[#allocation11_spill] sm:$0xff]  ;;  %v825_v22 = vmul.f32 %v4633_v12, %v804_v45  ;;  %v878_v34 = vmul.f32 %v4662_v60, %v857_v26  ;;  %v1491_v33 = vmul.f32 %v4746_v30, %v4863_v43  ;;  %v6963_v62 = vld [vmem:[#allocation20_spill] sm:$0xff]  ;;  %v6964_v3 = vld [vmem:[#allocation17_spill] sm:$0xff] }
 0x144   : > { %v788_v4 = vadd.f32 %v6961_v27, %v735_v11  ;;  %1854 = vrot.lane.b32.xlu1 %v1805_v24, %s3849_s23  ;;  %v1308_v20 = vadd.f32 %v1292_v25, %v1263_v21  ;;  %v1544_v0 = vmul.f32 %v4751_v6, %v4990_v36  ;;  %v5005_v31 = vld [vmem:[#allocation2 + $0x170] sm:$0xff]  ;;  %v999_v1 = vadd.f32 %v6964_v3, %v6963_v62  ;;  %v6965_v45 = vld [vmem:[#allocation93_spill] sm:$0xff]  ;;  %v6968_v46 = vld [vmem:[#allocation18_spill] sm:$0xff] }
 0x145   : > { %6962 = vst [vmem:[#allocation84_spill] sm:$0xff] %v5005_v31  ;;  %v910_v41 = vld [vmem:[#allocation2 + $0xec] sm:$0xff]  ;;  %v1559_v35 = vadd.f32 %v4936_v37, %v1506_v13  ;;  %v1600_v23 = vmul.f32 %v4761_v18, %v6965_v45  ;;  %v5014_v24 = vmul.f32 %v4771_v10, %v6966_v40  ;;  %v5025_v3 = vmul.f32 %v4803_v56, %v5005_v31  ;;  %v2334_v31 = vld [vmem:[#allocation2 + $0x283] sm:$0xff] }
 0x146   : > { %v841_v21 = vadd.f32 %v825_v22, %v788_v4  ;;  %v963_v25 = vld [vmem:[#allocation2 + $0xed] sm:$0xff]  ;;  %v1353_v50 = vadd.f32 %v1337_v57, %v1308_v20  ;;  %v1052_v44 = vadd.f32 %v6968_v46, %v999_v1  ;;  %v931_v4 = vmul.f32 %v4837_v5, %v910_v41 }
 0x147   : > { %v6967_v11 = vld [vmem:[#allocation95_spill] sm:$0xff]  ;;  %v3693_v62 = vld [vmem:[#allocation2 + $0xe7] sm:$0xff]  ;;  %v1615_v13 = vadd.f32 %v4941_v49, %v1559_v35  ;;  %v984_v20 = vmul.f32 %v4729_v8, %v963_v25  ;;  %v1142_v46 = vmul.f32 %v4681_v15, %v6951_v29  ;;  %v1090_v35 = vmul.f32 %v4676_v42, %v1417_v14 }
 0x148   : > { %v5018_v27 = vmul.f32 %v4792_v39, %v6967_v11  ;;  %v1016_v2 = vld [vmem:[#allocation2 + $0xee] sm:$0xff]  ;;  %v1089_v37 = vmul.f32 %v3693_v62, %v4676_v42  ;;  %v894_v40 = vadd.f32 %v878_v34, %v841_v21  ;;  %v1398_v22 = vadd.f32 %v1382_v59, %v1353_v50 }
 0x149   : > { %v1227_v57 = vld [vmem:[#allocation2 + $0xea] sm:$0xff]  ;;  %v1671_v1 = vadd.f32 %v4945_v58, %v1615_v13  ;;  %v1037_v49 = vmul.f32 %v4737_v38, %v1016_v2  ;;  %v1195_v21 = vmul.f32 %v4693_v9, %v4919_v53  ;;  %v1293_v29 = vmul.f32 %v4705_v54, %v857_v26 }
 0x14a   : > { %v1105_v11 = vadd.f32 %v1089_v37, %v1052_v44  ;;  %v947_v62 = vadd.f32 %v931_v4, %v894_v40  ;;  %v1454_v12 = vadd.f32 %v1438_v61, %v1398_v22  ;;  %v1248_v59 = vmul.f32 %v4700_v55, %v1227_v57  ;;  %v1418_v50 = vld [vmem:[#allocation2 + $0x107] sm:$0xff] }
 0x14b   : > { %v1727_v44 = vadd.f32 %v4961_v48, %v1671_v1  ;;  %v1338_v58 = vmul.f32 %v4710_v19, %v910_v41  ;;  %v5040_v40 = vld [vmem:[#allocation2 + $0x109] sm:$0xff]  ;;  %v1383_v61 = vmul.f32 %v4719_v52, %v963_v25  ;;  %v1439_v57 = vmul.f32 %v4724_v63, %v1418_v50  ;;  %v1323_v50 = vld [vmem:[#allocation2 + $0xf4] sm:$0xff] }
 0x14c   : > { %v1158_v34 = vadd.f32 %v1142_v46, %v1105_v11  ;;  %v1000_v37 = vadd.f32 %v984_v20, %v947_v62  ;;  %v2387_v2 = vld [vmem:[#allocation2 + $0x284] sm:$0xff]  ;;  %v1507_v14 = vadd.f32 %v1491_v33, %v1454_v12  ;;  %v2355_v11 = vmul.f32 %v4662_v60, %v2334_v31 }
 0x14d   : > { %v1783_v53 = vadd.f32 %v4965_v47, %v1727_v44  ;;  %v1492_v48 = vmul.f32 %v4746_v30, %v6952_v28  ;;  %v5050_v41 = vmul.f32 %v4751_v6, %v5040_v40  ;;  %v5052_v12 = vld [vmem:[#allocation2 + $0x188] sm:$0xff]  ;;  %v2408_v33 = vmul.f32 %v4837_v5, %v2387_v2 }
 0x14e   : > { %v1211_v13 = vadd.f32 %v1195_v21, %v1158_v34  ;;  %v1053_v4 = vadd.f32 %v1037_v49, %v1000_v37  ;;  %v1560_v26 = vadd.f32 %v1544_v0, %v1507_v14  ;;  %6969 = vst [vmem:[#allocation13_spill] sm:$0xff] %v5052_v12  ;;  %v2371_v47 = vadd.f32 %v2355_v11, %v4976_v32  ;;  %v2440_v20 = vld [vmem:[#allocation2 + $0x285] sm:$0xff]  ;;  %v1228_v21 = vld [vmem:[#allocation2 + $0xf2] sm:$0xff] }
 0x14f   : > { %v1806_v31 = vadd.f32 %v4928_v16, %v1783_v53  ;;  %v2493_v46 = vld [vmem:[#allocation2 + $0x286] sm:$0xff]  ;;  %v1143_v1 = vmul.f32 %v4681_v15, %v4863_v43  ;;  %v1601_v49 = vmul.f32 %v4761_v18, %v6953_v7  ;;  %v5063_v34 = vmul.f32 %v4771_v10, %v4947_v51  ;;  %v1368_v14 = vld [vmem:[#allocation2 + $0xf5] sm:$0xff] }
 0x150   : > { %v1264_v22 = vadd.f32 %v1248_v59, %v1211_v13  ;;  %v1106_v25 = vadd.f32 %v1090_v35, %v1053_v4  ;;  %v1616_v0 = vadd.f32 %v1600_v23, %v1560_v26  ;;  %v1278_v59 = vld [vmem:[#allocation2 + $0xf3] sm:$0xff]  ;;  %v5068_v32 = vmul.f32 %v4792_v39, %v4949_v17 }
 0x151   : > { %1856 = vrot.lane.b32.xlu0 %v1806_v31, %s3849_s23  ;;  %v5072_v43 = vmul.f32 %v4803_v56, %v5052_v12  ;;  %v1196_v35 = vmul.f32 %v4693_v9, %v4990_v36  ;;  %v5081_v2 = vmul.f32 %v4737_v38, %v2493_v46  ;;  %v1419_v13 = vld [vmem:[#allocation2 + $0x10f] sm:$0xff]  ;;  %v5083_v53 = vadd.f32 %v2408_v33, %v2371_v47 }
 0x152   : > { %v1309_v62 = vadd.f32 %v1293_v29, %v1264_v22  ;;  %v1159_v23 = vadd.f32 %v1143_v1, %v1106_v25  ;;  %v1672_v44 = vadd.f32 %v5014_v24, %v1616_v0  ;;  %v5078_v29 = vmul.f32 %v4729_v8, %v2440_v20  ;;  %v806_v11 = vld [vmem:[#allocation2 + $0xf1] sm:$0xff]  ;;  %v6974_v20 = vld [vmem:[#allocation9_spill] sm:$0xff] }
 0x153   : > { %6971 = vst [vmem:[#allocation11_spill] sm:$0xff] %v5081_v2  ;;  %6972 = vst [vmem:[#allocation20_spill] sm:$0xff] %v5083_v53  ;;  %v1249_v26 = vmul.f32 %v4700_v55, %v1228_v21  ;;  %v1294_v36 = vmul.f32 %v4705_v54, %v1278_v59  ;;  %v5089_v31 = vld [vmem:[#allocation2 + $0x111] sm:$0xff]  ;;  %v1384_v0 = vmul.f32 %v4719_v52, %v1368_v14 }
 0x154   : > { %v1354_v37 = vadd.f32 %v1338_v58, %v1309_v62  ;;  %6970 = vst [vmem:[#allocation10_spill] sm:$0xff] %v5078_v29  ;;  %v1212_v4 = vadd.f32 %v1196_v35, %v1159_v23  ;;  %v1728_v22 = vadd.f32 %v5018_v27, %v1672_v44  ;;  %v1339_v58 = vmul.f32 %v4710_v19, %v1323_v50  ;;  %v6973_v25 = vld [vmem:[#allocation12_spill] sm:$0xff]  ;;  %v859_v62 = vld [vmem:[#allocation2 + $0x10b] sm:$0xff]  ;;  %v6976_v23 = vld [vmem:[#allocation69_spill] sm:$0xff] }
 0x155   : > { %v681_v46 = vadd.f32 %v6974_v20, %v6973_v25  ;;  %v1440_v33 = vmul.f32 %v4724_v63, %v1419_v13  ;;  %v1493_v47 = vmul.f32 %v4746_v30, %v6965_v45  ;;  %v827_v35 = vmul.f32 %v6976_v23, %v806_v11  ;;  %v6979_v25 = vld [vmem:[#allocation23_spill] sm:$0xff]  ;;  %v6983_v53 = vld [vmem:[#allocation24_spill] sm:$0xff]  ;;  %v3694_v23 = vld [vmem:[#allocation2 + $0x107] sm:$0xff] }
 0x156   : > { %v1399_v24 = vadd.f32 %v1383_v61, %v1354_v37  ;;  %v1265_v1 = vadd.f32 %v1249_v26, %v1212_v4  ;;  %v1784_v21 = vadd.f32 %v5025_v3, %v1728_v22  ;;  %v6975_v61 = vld [vmem:[#allocation16_spill] sm:$0xff]  ;;  %v1546_v44 = vmul.f32 %v4751_v6, %v5089_v31  ;;  %v6977_v37 = vld [vmem:[#allocation94_spill] sm:$0xff]  ;;  %v5107_v3 = vld [vmem:[#allocation2 + $0x190] sm:$0xff] }
 0x157   : > { %v737_v59 = vadd.f32 %v6975_v61, %v681_v46  ;;  %v1602_v14 = vmul.f32 %v4761_v18, %v6977_v37  ;;  %v912_v4 = vld [vmem:[#allocation2 + $0x10c] sm:$0xff]  ;;  %6980 = vst [vmem:[#allocation17_spill] sm:$0xff] %v5107_v3  ;;  %v880_v11 = vmul.f32 %v4662_v60, %v859_v62 }
 0x158   : > { %v1455_v27 = vadd.f32 %v1439_v57, %v1399_v24  ;;  %v1310_v50 = vadd.f32 %v1294_v36, %v1265_v1  ;;  %v6978_v26 = vld [vmem:[#allocation26_spill] sm:$0xff]  ;;  %v1807_v2 = vadd.f32 %v4928_v16, %v1784_v21  ;;  %v6982_v24 = vld [vmem:[#allocation95_spill] sm:$0xff]  ;;  %v6984_v21 = vld [vmem:[#allocation84_spill] sm:$0xff] }
 0x159   : > { %v1001_v20 = vadd.f32 %v6979_v25, %v6978_v26  ;;  %v6981_v57 = vld [vmem:[#allocation14_spill] sm:$0xff]  ;;  %v1658_v46 = vmul.f32 %v4771_v10, %v6982_v24  ;;  %v1091_v26 = vmul.f32 %v3694_v23, %v4676_v42  ;;  %v5124_v25 = vmul.f32 %v4803_v56, %v5107_v3 }
 0x15a   : > { %v1508_v29 = vadd.f32 %v1492_v48, %v1455_v27  ;;  %v790_v22 = vadd.f32 %v6981_v57, %v737_v59  ;;  %v1355_v36 = vadd.f32 %v1339_v58, %v1310_v50  ;;  %v965_v1 = vld [vmem:[#allocation2 + $0x10d] sm:$0xff]  ;;  %1858 = vrot.lane.b32.xlu1 %v1807_v2, %s3849_s23  ;;  %v5119_v27 = vmul.f32 %v4792_v39, %v6984_v21 }
 0x15b   : > { %v1018_v61 = vld [vmem:[#allocation2 + $0x10e] sm:$0xff]  ;;  %v1054_v37 = vadd.f32 %v6983_v53, %v1001_v20  ;;  %v933_v58 = vmul.f32 %v4837_v5, %v912_v4  ;;  %v1144_v23 = vmul.f32 %v4681_v15, %v6952_v28 }
 0x15c   : > { %v1561_v48 = vadd.f32 %v5050_v41, %v1508_v29  ;;  %v843_v59 = vadd.f32 %v827_v35, %v790_v22  ;;  %v1400_v50 = vadd.f32 %v1384_v0, %v1355_v36  ;;  %v1229_v20 = vld [vmem:[#allocation2 + $0x10a] sm:$0xff]  ;;  %v986_v41 = vmul.f32 %v4729_v8, %v965_v1 }
 0x15d   : > { %v1107_v53 = vadd.f32 %v1091_v26, %v1054_v37  ;;  %v1039_v29 = vmul.f32 %v4737_v38, %v1018_v61  ;;  %v1092_v35 = vmul.f32 %v4676_v42, %v1419_v13  ;;  %v1197_v0 = vmul.f32 %v4693_v9, %v5040_v40  ;;  %v1420_v36 = vld [vmem:[#allocation2 + $0x127] sm:$0xff] }
 0x15e   : > { %v1617_v2 = vadd.f32 %v1601_v49, %v1561_v48  ;;  %v896_v57 = vadd.f32 %v880_v11, %v843_v59  ;;  %v1456_v21 = vadd.f32 %v1440_v33, %v1400_v50  ;;  %v1250_v28 = vmul.f32 %v4700_v55, %v1229_v20  ;;  %v5136_v11 = vld [vmem:[#allocation2 + $0x129] sm:$0xff] }
 0x15f   : > { %v1160_v22 = vadd.f32 %v1144_v23, %v1107_v53  ;;  %v1295_v49 = vmul.f32 %v4705_v54, %v859_v62  ;;  %v1340_v33 = vmul.f32 %v4710_v19, %v912_v4  ;;  %v1385_v13 = vmul.f32 %v4719_v52, %v965_v1  ;;  %v1230_v1 = vld [vmem:[#allocation2 + $0x112] sm:$0xff] }
 0x160   : > { %v1673_v37 = vadd.f32 %v5063_v34, %v1617_v2  ;;  %v949_v26 = vadd.f32 %v933_v58, %v896_v57  ;;  %v1509_v48 = vadd.f32 %v1493_v47, %v1456_v21  ;;  %v1441_v40 = vmul.f32 %v4724_v63, %v1420_v36  ;;  %v5144_v58 = vld [vmem:[#allocation2 + $0x1a8] sm:$0xff]  ;;  %v1324_v2 = vld [vmem:[#allocation2 + $0x114] sm:$0xff] }
 0x161   : > { %v1213_v59 = vadd.f32 %v1197_v0, %v1160_v22  ;;  %v1494_v34 = vmul.f32 %v4746_v30, %v6953_v7  ;;  %6985 = vst [vmem:[#allocation93_spill] sm:$0xff] %v5144_v58  ;;  %v1547_v47 = vmul.f32 %v4751_v6, %v5136_v11  ;;  %v5150_v4 = vmul.f32 %v4761_v18, %v4947_v51  ;;  %v808_v57 = vld [vmem:[#allocation2 + $0x111] sm:$0xff] }
 0x162   : > { %v1729_v61 = vadd.f32 %v5068_v32, %v1673_v37  ;;  %v1002_v50 = vadd.f32 %v986_v41, %v949_v26  ;;  %v1562_v53 = vadd.f32 %v1546_v44, %v1509_v48  ;;  %v5155_v23 = vmul.f32 %v4771_v10, %v4949_v17  ;;  %v1279_v44 = vld [vmem:[#allocation2 + $0x113] sm:$0xff] }
 0x163   : > { %v1266_v62 = vadd.f32 %v1250_v28, %v1213_v59  ;;  %v5159_v20 = vmul.f32 %v4792_v39, %v5052_v12  ;;  %v5163_v0 = vmul.f32 %v4803_v56, %v5144_v58  ;;  %v1198_v26 = vmul.f32 %v4693_v9, %v5089_v31  ;;  %v1421_v48 = vld [vmem:[#allocation2 + $0x12f] sm:$0xff] }
 0x164   : > { %v1785_v32 = vadd.f32 %v5072_v43, %v1729_v61  ;;  %v1055_v21 = vadd.f32 %v1039_v29, %v1002_v50  ;;  %v1618_v41 = vadd.f32 %v1602_v14, %v1562_v53  ;;  %v1145_v43 = vmul.f32 %v4681_v15, %v6965_v45  ;;  %v1369_v29 = vld [vmem:[#allocation2 + $0x115] sm:$0xff]  ;;  %v861_v50 = vld [vmem:[#allocation2 + $0x12b] sm:$0xff] }
 0x165   : > { %v1311_v22 = vadd.f32 %v1295_v49, %v1266_v62  ;;  %6986 = vst [vmem:[#allocation18_spill] sm:$0xff] %v5163_v0  ;;  %v1251_v28 = vmul.f32 %v4700_v55, %v1230_v1  ;;  %v1296_v49 = vmul.f32 %v4705_v54, %v1279_v44  ;;  %v1341_v61 = vmul.f32 %v4710_v19, %v1324_v2  ;;  %v5175_v62 = vld [vmem:[#allocation2 + $0x131] sm:$0xff]  ;;  %v6990_v2 = vld [vmem:[#allocation94_spill] sm:$0xff]  ;;  %v6993_v0 = vld [vmem:[#allocation29_spill] sm:$0xff] }
 0x166   : > { %v1808_v36 = vadd.f32 %v4928_v16, %v1785_v32  ;;  %v1108_v37 = vadd.f32 %v1092_v35, %v1055_v21  ;;  %v1674_v59 = vadd.f32 %v1658_v46, %v1618_v41  ;;  %v1386_v53 = vmul.f32 %v4719_v52, %v1369_v29  ;;  %v6987_v35 = vld [vmem:[#allocation15_spill] sm:$0xff]  ;;  %v6988_v32 = vld [vmem:[#allocation22_spill] sm:$0xff]  ;;  %v6989_v21 = vld [vmem:[#allocation69_spill] sm:$0xff] }
 0x167   : > { %v1356_v14 = vadd.f32 %v1340_v33, %v1311_v22  ;;  %v739_v31 = vadd.f32 %v6988_v32, %v6987_v35  ;;  %v829_v1 = vmul.f32 %v6989_v21, %v808_v57  ;;  %v914_v58 = vld [vmem:[#allocation2 + $0x12c] sm:$0xff]  ;;  %v1442_v44 = vmul.f32 %v4724_v63, %v1421_v48 }
 0x168   : > { %1860 = vrot.lane.b32.xlu0 %v1808_v36, %s3849_s23  ;;  %v1161_v45 = vadd.f32 %v1145_v43, %v1108_v37  ;;  %v1730_v46 = vadd.f32 %v5119_v27, %v1674_v59  ;;  %v1495_v41 = vmul.f32 %v4746_v30, %v6990_v2  ;;  %v6991_v43 = vld [vmem:[#allocation19_spill] sm:$0xff]  ;;  %v882_v29 = vmul.f32 %v4662_v60, %v861_v50  ;;  %v6992_v37 = vld [vmem:[#allocation32_spill] sm:$0xff]  ;;  %v6994_v32 = vld [vmem:[#allocation30_spill] sm:$0xff] }
 0x169   : > { %v1401_v33 = vadd.f32 %v1385_v13, %v1356_v14  ;;  %v792_v36 = vadd.f32 %v6991_v43, %v739_v31  ;;  %v1003_v12 = vadd.f32 %v6993_v0, %v6992_v37  ;;  %v5191_v27 = vmul.f32 %v4751_v6, %v5175_v62  ;;  %v5194_v14 = vld [vmem:[#allocation2 + $0x1b0] sm:$0xff]  ;;  %v3695_v60 = vld [vmem:[#allocation2 + $0x127] sm:$0xff] }
 0x16a   : > { %v1214_v22 = vadd.f32 %v1198_v26, %v1161_v45  ;;  %v1786_v35 = vadd.f32 %v5124_v25, %v1730_v46  ;;  %v935_v13 = vmul.f32 %v4837_v5, %v914_v58  ;;  %v967_v45 = vld [vmem:[#allocation2 + $0x12d] sm:$0xff]  ;;  %v1093_v21 = vmul.f32 %v3695_v60, %v4676_v42  ;;  %v6995_v46 = vld [vmem:[#allocation84_spill] sm:$0xff] }
 0x16b   : > { %v1457_v57 = vadd.f32 %v1441_v40, %v1401_v33  ;;  %v845_v26 = vadd.f32 %v829_v1, %v792_v36  ;;  %v1056_v31 = vadd.f32 %v6994_v32, %v1003_v12  ;;  %v5201_v40 = vmul.f32 %v4761_v18, %v6982_v24  ;;  %v1020_v1 = vld [vmem:[#allocation2 + $0x12e] sm:$0xff] }
 0x16c   : > { %v1267_v59 = vadd.f32 %v1251_v28, %v1214_v22  ;;  %v1809_v0 = vadd.f32 %v4928_v16, %v1786_v35  ;;  %v5205_v33 = vmul.f32 %v4771_v10, %v6995_v46  ;;  %v1146_v12 = vmul.f32 %v4681_v15, %v6953_v7  ;;  %v1231_v36 = vld [vmem:[#allocation2 + $0x12a] sm:$0xff] }
 0x16d   : > { %v1510_v25 = vadd.f32 %v1494_v34, %v1457_v57  ;;  %v898_v22 = vadd.f32 %v882_v29, %v845_v26  ;;  %v1109_v43 = vadd.f32 %v1093_v21, %v1056_v31  ;;  %v5212_v34 = vmul.f32 %v4792_v39, %v5107_v3  ;;  %v1422_v26 = vld [vmem:[#allocation2 + $0x147] sm:$0xff] }
 0x16e   : > { %v1312_v28 = vadd.f32 %v1296_v49, %v1267_v59  ;;  %1862 = vrot.lane.b32.xlu1 %v1809_v0, %s3849_s23  ;;  %v5216_v35 = vmul.f32 %v4803_v56, %v5194_v14  ;;  %v988_v49 = vmul.f32 %v4729_v8, %v967_v45  ;;  %v1199_v7 = vmul.f32 %v4693_v9, %v5136_v11 }
 0x16f   : > { %v1563_v37 = vadd.f32 %v1547_v47, %v1510_v25  ;;  %v951_v57 = vadd.f32 %v935_v13, %v898_v22  ;;  %v1162_v59 = vadd.f32 %v1146_v12, %v1109_v43  ;;  %v1041_v47 = vmul.f32 %v4737_v38, %v1020_v1 }
 0x170   : > { %v1357_v29 = vadd.f32 %v1341_v61, %v1312_v28  ;;  %v1094_v31 = vmul.f32 %v4676_v42, %v1421_v48  ;;  %v1252_v60 = vmul.f32 %v4700_v55, %v1231_v36  ;;  %v1297_v8 = vmul.f32 %v4705_v54, %v861_v50  ;;  %v5226_v61 = vld [vmem:[#allocation2 + $0x149] sm:$0xff] }
 0x171   : > { %v1619_v32 = vadd.f32 %v5150_v4, %v1563_v37  ;;  %v1004_v0 = vadd.f32 %v988_v49, %v951_v57  ;;  %v1215_v25 = vadd.f32 %v1199_v7, %v1162_v59  ;;  %v1342_v11 = vmul.f32 %v4710_v19, %v914_v58  ;;  %v1280_v49 = vld [vmem:[#allocation2 + $0x133] sm:$0xff]  ;;  %v6997_v57 = vld [vmem:[#allocation18_spill] sm:$0xff]  ;;  %v6998_v7 = vld [vmem:[#allocation93_spill] sm:$0xff] }
 0x172   : > { %v1402_v21 = vadd.f32 %v1386_v53, %v1357_v29  ;;  %v1387_v28 = vmul.f32 %v4719_v52, %v967_v45  ;;  %v1443_v4 = vmul.f32 %v4724_v63, %v1422_v26  ;;  %v1496_v48 = vmul.f32 %v4746_v30, %v4947_v51  ;;  %v5234_v53 = vld [vmem:[#allocation2 + $0x1c8] sm:$0xff]  ;;  %v810_v29 = vld [vmem:[#allocation2 + $0x131] sm:$0xff] }
 0x173   : > { %v1675_v13 = vadd.f32 %v5155_v23, %v1619_v32  ;;  %v1057_v22 = vadd.f32 %v1041_v47, %v1004_v0  ;;  %v1268_v42 = vadd.f32 %v1252_v60, %v1215_v25  ;;  %v1549_v1 = vmul.f32 %v4751_v6, %v5226_v61  ;;  %v6996_v23 = vld [vmem:[#allocation13_spill] sm:$0xff]  ;;  %v1370_v60 = vld [vmem:[#allocation2 + $0x135] sm:$0xff]  ;;  %v5264_v0 = vld [vmem:[#allocation2 + $0x14b] sm:$0xff] }
 0x174   : > { %v1458_v38 = vadd.f32 %v1442_v44, %v1402_v21  ;;  %v5241_v58 = vmul.f32 %v4761_v18, %v4949_v17  ;;  %v5245_v45 = vmul.f32 %v4771_v10, %v6996_v23  ;;  %v1232_v44 = vld [vmem:[#allocation2 + $0x132] sm:$0xff]  ;;  %v1147_v37 = vmul.f32 %v4681_v15, %v6990_v2 }
 0x175   : > { %v1731_v50 = vadd.f32 %v5159_v20, %v1675_v13  ;;  %v1110_v12 = vadd.f32 %v1094_v31, %v1057_v22  ;;  %v1313_v36 = vadd.f32 %v1297_v8, %v1268_v42  ;;  %v1325_v20 = vld [vmem:[#allocation2 + $0x134] sm:$0xff]  ;;  %v5252_v26 = vmul.f32 %v4792_v39, %v6998_v7 }
 0x176   : > { %v1511_v43 = vadd.f32 %v1495_v41, %v1458_v38  ;;  %v5256_v32 = vmul.f32 %v4803_v56, %v5234_v53  ;;  %v1200_v41 = vmul.f32 %v4693_v9, %v5175_v62  ;;  %v1253_v2 = vmul.f32 %v4700_v55, %v1232_v44  ;;  %v5262_v21 = vld [vmem:[#allocation2 + $0x14f] sm:$0xff]  ;;  %v6999_v38 = vld [vmem:[#allocation21_spill] sm:$0xff]  ;;  %v7000_v22 = vld [vmem:[#allocation28_spill] sm:$0xff] }
 0x177   : > { %v1787_v59 = vadd.f32 %v6997_v57, %v1731_v50  ;;  %v1358_v31 = vadd.f32 %v1342_v11, %v1313_v36  ;;  %v1163_v15 = vadd.f32 %v1147_v37, %v1110_v12  ;;  %v1298_v8 = vmul.f32 %v4705_v54, %v1280_v49  ;;  %v5275_v55 = vld [vmem:[%s6799_s1 + $0x6] ss:$0 sm:$0xff]  ;;  %v5278_v50 = vld [vmem:[#allocation2 + $0x14c] sm:$0xff] }
 0x178   : > { %v1564_v47 = vadd.f32 %v5191_v27, %v1511_v43  ;;  %v1343_v13 = vmul.f32 %v4710_v19, %v1325_v20  ;;  %v741_v9 = vadd.f32 %v7000_v22, %v6999_v38  ;;  %7001 = vst [vmem:[#allocation12_spill] sm:$0xff] %v5275_v55  ;;  %v831_v42 = vmul.f32 %v5275_v55, %v810_v29  ;;  %v7002_v44 = vld [vmem:[#allocation25_spill] sm:$0xff]  ;;  %v5293_v49 = vld [vmem:[#allocation2 + $0x151] sm:$0xff]  ;;  %v5318_v38 = vld [vmem:[%s6799_s1 + $0xc] ss:$0 sm:$0xff] }
 0x179   : > { %v1810_v25 = vadd.f32 %v4928_v16, %v1787_v59  ;;  %v1403_v27 = vadd.f32 %v1387_v28, %v1358_v31  ;;  %v1216_v11 = vadd.f32 %v1200_v41, %v1163_v15  ;;  %v1388_v54 = vmul.f32 %v4719_v52, %v1370_v60  ;;  %v5288_v28 = vld [vmem:[%s6799_s1 + $0x7] ss:$0 sm:$0xff]  ;;  %v7005_v20 = vld [vmem:[#allocation35_spill] sm:$0xff]  ;;  %v7006_v60 = vld [vmem:[#allocation36_spill] sm:$0xff] }
 0x17a   : > { %v1620_v62 = vadd.f32 %v5201_v40, %v1564_v47  ;;  %v1444_v19 = vmul.f32 %v4724_v63, %v5262_v21  ;;  %v794_v40 = vadd.f32 %v7002_v44, %v741_v9  ;;  %7003 = vst [vmem:[#allocation9_spill] sm:$0xff] %v5288_v28  ;;  %v884_v43 = vmul.f32 %v5288_v28, %v5264_v0  ;;  %v7004_v52 = vld [vmem:[#allocation37_spill] sm:$0xff]  ;;  %v5304_v47 = vld [vmem:[%s6799_s1 + $0xb] ss:$0 sm:$0xff]  ;;  %v5323_v9 = vld [vmem:[#allocation2 + $0x1d0] sm:$0xff] }
 0x17b   : > { %1864 = vrot.lane.b32.xlu0 %v1810_v25, %s3849_s23  ;;  %v1459_v36 = vadd.f32 %v1443_v4, %v1403_v27  ;;  %v1269_v37 = vadd.f32 %v1253_v2, %v1216_v11  ;;  %v1005_v29 = vadd.f32 %v7005_v20, %v7004_v52  ;;  %v1497_v63 = vmul.f32 %v4746_v30, %v6982_v24  ;;  %v3698_v41 = vld [vmem:[#allocation2 + $0x147] sm:$0xff] }
 0x17c   : > { %v1676_v12 = vadd.f32 %v5205_v33, %v1620_v62  ;;  %v847_v57 = vadd.f32 %v831_v42, %v794_v40  ;;  %v937_v59 = vmul.f32 %v4837_v5, %v5278_v50  ;;  %v1095_v33 = vmul.f32 %v5304_v47, %v3698_v41  ;;  %v969_v2 = vld [vmem:[#allocation2 + $0x14d] sm:$0xff]  ;;  %v5332_v11 = vld [vmem:[%s6799_s1 + $0x9] ss:$0 sm:$0xff] }
 0x17d   : > { %v1512_v31 = vadd.f32 %v1496_v48, %v1459_v36  ;;  %v1314_v15 = vadd.f32 %v1298_v8, %v1269_v37  ;;  %v1058_v25 = vadd.f32 %v7006_v60, %v1005_v29  ;;  %v1550_v30 = vmul.f32 %v4751_v6, %v5293_v49  ;;  %v1022_v6 = vld [vmem:[#allocation2 + $0x14e] sm:$0xff]  ;;  %7007 = vst [vmem:[#allocation16_spill] sm:$0xff] %v5332_v11 }
 0x17e   : > { %v1732_v4 = vadd.f32 %v5212_v34, %v1676_v12  ;;  %v5313_v5 = vmul.f32 %v4761_v18, %v6995_v46  ;;  %v900_v24 = vadd.f32 %v884_v43, %v847_v57  ;;  %v1148_v34 = vmul.f32 %v5318_v38, %v4947_v51  ;;  %v1424_v20 = vld [vmem:[#allocation2 + $0x167] sm:$0xff]  ;;  %v1128_v29 = vld [vmem:[#allocation2 + $0x150] sm:$0xff]  ;;  %v5371_v41 = vld [vmem:[%s6799_s1 + $0xf] ss:$0 sm:$0xff] }
 0x17f   : > { %v1565_v8 = vadd.f32 %v1549_v1, %v1512_v31  ;;  %v1359_v22 = vadd.f32 %v1343_v13, %v1314_v15  ;;  %v1111_v62 = vadd.f32 %v1095_v33, %v1058_v25  ;;  %v5327_v18 = vmul.f32 %v4771_v10, %v5107_v3  ;;  %v1233_v13 = vld [vmem:[#allocation2 + $0x14a] sm:$0xff] }
 0x180   : > { %v1788_v48 = vadd.f32 %v5216_v35, %v1732_v4  ;;  %v953_v27 = vadd.f32 %v937_v59, %v900_v24  ;;  %v990_v51 = vmul.f32 %v5332_v11, %v969_v2  ;;  %v5338_v35 = vld [vmem:[%s6799_s1 + $0xd] ss:$0 sm:$0xff]  ;;  %v5346_v43 = vmul.f32 %v4792_v39, %v5194_v14  ;;  %v5363_v39 = vld [vmem:[%s6799_s1 + $0xe] ss:$0 sm:$0xff]  ;;  %v5388_v60 = vld [vmem:[%s6799_s1 + $0x11] ss:$0 sm:$0xff] }
 0x181   : > { %v1201_v1 = vmul.f32 %v5338_v35, %v5226_v61  ;;  %v1621_v42 = vadd.f32 %v5241_v58, %v1565_v8  ;;  %v1404_v44 = vadd.f32 %v1388_v54, %v1359_v22  ;;  %v1164_v40 = vadd.f32 %v1148_v34, %v1111_v62  ;;  %v5355_v61 = vld [vmem:[%s6799_s1 + $0xa] ss:$0 sm:$0xff]  ;;  %v5394_v24 = vld [vmem:[%s6799_s1 + $0x12] ss:$0 sm:$0xff]  ;;  %v5409_v22 = vld [vmem:[%s6799_s1 + $0x14] ss:$0 sm:$0xff] }
 0x182   : > { %v1811_v10 = vadd.f32 %v4928_v16, %v1788_v48  ;;  %v5350_v12 = vmul.f32 %v4803_v56, %v5323_v9  ;;  %v1006_v36 = vadd.f32 %v990_v51, %v953_v27  ;;  %v1043_v37 = vmul.f32 %v5355_v61, %v1022_v6  ;;  %v5382_v4 = vld [vmem:[#allocation2 + $0x169] sm:$0xff]  ;;  %v1234_v27 = vld [vmem:[#allocation2 + $0x152] sm:$0xff] }
 0x183   : > { %v1677_v58 = vadd.f32 %v5245_v45, %v1621_v42  ;;  %v1460_v54 = vadd.f32 %v1444_v19, %v1404_v44  ;;  %v1217_v52 = vadd.f32 %v1201_v1, %v1164_v40  ;;  %v1254_v56 = vmul.f32 %v5363_v39, %v1233_v13  ;;  %v5378_v19 = vld [vmem:[%s6799_s1 + $0x10] ss:$0 sm:$0xff]  ;;  %v5413_v62 = vld [vmem:[#allocation2 + $0x1e8] sm:$0xff]  ;;  %v1281_v51 = vld [vmem:[#allocation2 + $0x153] sm:$0xff] }
 0x184   : > { %1866 = vrot.lane.b32.xlu1 %v1811_v10, %s3849_s23  ;;  %v1059_v57 = vadd.f32 %v1043_v37, %v1006_v36  ;;  %v1096_v59 = vmul.f32 %v5304_v47, %v5262_v21  ;;  %v1299_v45 = vmul.f32 %v5371_v41, %v5264_v0  ;;  %v1344_v33 = vmul.f32 %v5378_v19, %v5278_v50  ;;  %v1326_v42 = vld [vmem:[#allocation2 + $0x154] sm:$0xff] }
 0x185   : > { %v1733_v21 = vadd.f32 %v5252_v26, %v1677_v58  ;;  %v1513_v31 = vadd.f32 %v1497_v63, %v1460_v54  ;;  %v1270_v15 = vadd.f32 %v1254_v56, %v1217_v52  ;;  %v1389_v0 = vmul.f32 %v5388_v60, %v969_v2  ;;  %v5400_v26 = vld [vmem:[%s6799_s1 + $0x13] ss:$0 sm:$0xff]  ;;  %v5440_v58 = vld [vmem:[%s6799_s1 + $0x17] ss:$0 sm:$0xff] }
 0x186   : > { %v1112_v25 = vadd.f32 %v1096_v59, %v1059_v57  ;;  %v1445_v50 = vmul.f32 %v5394_v24, %v1424_v20  ;;  %v1498_v63 = vmul.f32 %v5400_v26, %v4949_v17  ;;  %v1149_v34 = vmul.f32 %v5318_v38, %v1128_v29  ;;  %v5418_v17 = vld [vmem:[%s6799_s1 + $0x15] ss:$0 sm:$0xff]  ;;  %v865_v59 = vld [vmem:[#allocation2 + $0x16b] sm:$0xff] }
 0x187   : > { %v1789_v2 = vadd.f32 %v5256_v32, %v1733_v21  ;;  %v1566_v48 = vadd.f32 %v1550_v30, %v1513_v31  ;;  %v1315_v8 = vadd.f32 %v1299_v45, %v1270_v15  ;;  %v1551_v6 = vmul.f32 %v5409_v22, %v5382_v4  ;;  %v5427_v30 = vld [vmem:[%s6799_s1 + $0x16] ss:$0 sm:$0xff] }
 0x188   : > { %v5422_v32 = vmul.f32 %v5418_v17, %v6996_v23  ;;  %v5431_v1 = vmul.f32 %v5427_v30, %v6998_v7  ;;  %v1165_v13 = vadd.f32 %v1149_v34, %v1112_v25  ;;  %v1202_v10 = vmul.f32 %v5338_v35, %v5293_v49  ;;  %v812_v44 = vld [vmem:[#allocation2 + $0x151] sm:$0xff]  ;;  %v7009_v25 = vld [vmem:[#allocation34_spill] sm:$0xff] }
 0x189   : > { %v1812_v40 = vadd.f32 %v4928_v16, %v1789_v2  ;;  %v1622_v36 = vadd.f32 %v5313_v5, %v1566_v48  ;;  %v1360_v37 = vadd.f32 %v1344_v33, %v1315_v8  ;;  %v5444_v54 = vmul.f32 %v5440_v58, %v5234_v53  ;;  %v1371_v52 = vld [vmem:[#allocation2 + $0x155] sm:$0xff] }
 0x18a   : > { %v1425_v56 = vld [vmem:[#allocation2 + $0x16f] sm:$0xff]  ;;  %v5449_v49 = vld [vmem:[%s6799_s1 + $0x18] ss:$0 sm:$0xff]  ;;  %v1218_v20 = vadd.f32 %v1202_v10, %v1165_v13  ;;  %v1255_v29 = vmul.f32 %v5363_v39, %v1234_v27  ;;  %v1300_v57 = vmul.f32 %v5371_v41, %v1281_v51  ;;  %v1345_v21 = vmul.f32 %v5378_v19, %v1326_v42 }
 0x18b   : > { %v5453_v5 = vmul.f32 %v5449_v49, %v5413_v62  ;;  %1868 = vrot.lane.b32.xlu0 %v1812_v40, %s3849_s23  ;;  %v1678_v45 = vadd.f32 %v5327_v18, %v1622_v36  ;;  %v1405_v33 = vadd.f32 %v1389_v0, %v1360_v37  ;;  %v5460_v31 = vld [vmem:[#allocation2 + $0x171] sm:$0xff]  ;;  %v1390_v48 = vmul.f32 %v5388_v60, %v1371_v52 }
 0x18c   : > { %v7008_v15 = vld [vmem:[#allocation27_spill] sm:$0xff]  ;;  %v1271_v2 = vadd.f32 %v1255_v29, %v1218_v20  ;;  %v1446_v8 = vmul.f32 %v5394_v24, %v1425_v56  ;;  %v833_v27 = vmul.f32 %v5275_v55, %v812_v44  ;;  %v886_v42 = vmul.f32 %v5288_v28, %v865_v59  ;;  %v7012_v20 = vld [vmem:[#allocation41_spill] sm:$0xff] }
 0x18d   : > { %v743_v34 = vadd.f32 %v7009_v25, %v7008_v15  ;;  %v918_v51 = vld [vmem:[#allocation2 + $0x16c] sm:$0xff]  ;;  %v1734_v13 = vadd.f32 %v5346_v43, %v1678_v45  ;;  %v1461_v10 = vadd.f32 %v1445_v50, %v1405_v33  ;;  %v1499_v36 = vmul.f32 %v5400_v26, %v6995_v46  ;;  %v5480_v43 = vld [vmem:[%s6799_s1 + $0x8] ss:$0 sm:$0xff] }
 0x18e   : > { %v7010_v18 = vld [vmem:[#allocation31_spill] sm:$0xff]  ;;  %v1316_v40 = vadd.f32 %v1300_v57, %v1271_v2  ;;  %v1552_v37 = vmul.f32 %v5409_v22, %v5460_v31  ;;  %7013 = vst [vmem:[#allocation26_spill] sm:$0xff] %v5480_v43  ;;  %v939_v50 = vmul.f32 %v5480_v43, %v918_v51  ;;  %v1129_v57 = vld [vmem:[#allocation2 + $0x168] sm:$0xff]  ;;  %v1608_v33 = vmul.f32 %v5418_v17, %v5107_v3 }
 0x18f   : > { %v796_v0 = vadd.f32 %v7010_v18, %v743_v34  ;;  %v7011_v52 = vld [vmem:[#allocation43_spill] sm:$0xff]  ;;  %v1790_v44 = vadd.f32 %v5350_v12, %v1734_v13  ;;  %v1514_v15 = vadd.f32 %v1498_v63, %v1461_v10  ;;  %v7014_v18 = vld [vmem:[#allocation42_spill] sm:$0xff]  ;;  %v1664_v10 = vmul.f32 %v5427_v30, %v5194_v14 }
 0x190   : > { %v1007_v29 = vadd.f32 %v7012_v20, %v7011_v52  ;;  %v1361_v45 = vadd.f32 %v1345_v21, %v1316_v40  ;;  %v5485_v34 = vld [vmem:[#allocation2 + $0x1f0] sm:$0xff]  ;;  %v3716_v12 = vld [vmem:[#allocation2 + $0x167] sm:$0xff]  ;;  %v1720_v40 = vmul.f32 %v5440_v58, %v5323_v9  ;;  %v1150_v3 = vmul.f32 %v5318_v38, %v1129_v57 }
 0x191   : > { %v849_v25 = vadd.f32 %v833_v27, %v796_v0  ;;  %v971_v2 = vld [vmem:[#allocation2 + $0x16d] sm:$0xff]  ;;  %v1097_v63 = vmul.f32 %v3716_v12, %v5304_v47  ;;  %v1813_v27 = vadd.f32 %v4928_v16, %v1790_v44  ;;  %v1567_v13 = vadd.f32 %v1551_v6, %v1514_v15 }
 0x192   : > { %v1060_v52 = vadd.f32 %v7014_v18, %v1007_v29  ;;  %v1024_v20 = vld [vmem:[#allocation2 + $0x16e] sm:$0xff]  ;;  %v1406_v21 = vadd.f32 %v1390_v48, %v1361_v45  ;;  %v5499_v6 = vmul.f32 %v5449_v49, %v5485_v34  ;;  %v1203_v45 = vmul.f32 %v5338_v35, %v5382_v4 }
 0x193   : > { %v902_v0 = vadd.f32 %v886_v42, %v849_v25  ;;  %v1235_v28 = vld [vmem:[#allocation2 + $0x16a] sm:$0xff]  ;;  %1870 = vrot.lane.b32.xlu1 %v1813_v27, %s3849_s23  ;;  %v1623_v29 = vadd.f32 %v5422_v32, %v1567_v13  ;;  %v992_v42 = vmul.f32 %v5332_v11, %v971_v2  ;;  %v1045_v48 = vmul.f32 %v5355_v61, %v1024_v20 }
 0x194   : > { %v1113_v43 = vadd.f32 %v1097_v63, %v1060_v52  ;;  %v1462_v15 = vadd.f32 %v1446_v8, %v1406_v21  ;;  %v1426_v57 = vld [vmem:[#allocation2 + $0x187] sm:$0xff]  ;;  %v1098_v32 = vmul.f32 %v5304_v47, %v1425_v56  ;;  %v1256_v12 = vmul.f32 %v5363_v39, %v1235_v28  ;;  %v1282_v21 = vld [vmem:[#allocation2 + $0x173] sm:$0xff] }
 0x195   : > { %v955_v44 = vadd.f32 %v939_v50, %v902_v0  ;;  %v1679_v18 = vadd.f32 %v5431_v1, %v1623_v29  ;;  %v5508_v63 = vld [vmem:[#allocation2 + $0x189] sm:$0xff]  ;;  %v1301_v8 = vmul.f32 %v5371_v41, %v865_v59  ;;  %v1346_v13 = vmul.f32 %v5378_v19, %v918_v51  ;;  %v814_v29 = vld [vmem:[#allocation2 + $0x171] sm:$0xff] }
 0x196   : > { %v1166_v25 = vadd.f32 %v1150_v3, %v1113_v43  ;;  %v1515_v50 = vadd.f32 %v1499_v36, %v1462_v15  ;;  %v1391_v4 = vmul.f32 %v5388_v60, %v971_v2  ;;  %v1447_v1 = vmul.f32 %v5394_v24, %v1426_v57  ;;  %v5519_v36 = vld [vmem:[#allocation2 + $0x208] sm:$0xff]  ;;  %v1372_v57 = vld [vmem:[#allocation2 + $0x175] sm:$0xff] }
 0x197   : > { %v1008_v52 = vadd.f32 %v992_v42, %v955_v44  ;;  %v1735_v3 = vadd.f32 %v5444_v54, %v1679_v18  ;;  %v1500_v28 = vmul.f32 %v5400_v26, %v6996_v23  ;;  %v1553_v56 = vmul.f32 %v5409_v22, %v5508_v63  ;;  %7015 = vst [vmem:[#allocation23_spill] sm:$0xff] %v5519_v36  ;;  %v1427_v18 = vld [vmem:[#allocation2 + $0x18f] sm:$0xff] }
 0x198   : > { %v1219_v27 = vadd.f32 %v1203_v45, %v1166_v25  ;;  %v1568_v0 = vadd.f32 %v1552_v37, %v1515_v50  ;;  %v5524_v54 = vmul.f32 %v5418_v17, %v6998_v7  ;;  %v1151_v2 = vmul.f32 %v5318_v38, %v6995_v46  ;;  %v1236_v37 = vld [vmem:[#allocation2 + $0x172] sm:$0xff] }
 0x199   : > { %v1061_v43 = vadd.f32 %v1045_v48, %v1008_v52  ;;  %v1791_v59 = vadd.f32 %v5453_v5, %v1735_v3  ;;  %v5530_v15 = vmul.f32 %v5427_v30, %v5234_v53  ;;  %v5534_v5 = vmul.f32 %v5440_v58, %v5413_v62  ;;  %v1327_v48 = vld [vmem:[#allocation2 + $0x174] sm:$0xff]  ;;  %v7016_v3 = vld [vmem:[#allocation33_spill] sm:$0xff] }
 0x19a   : > { %v1272_v20 = vadd.f32 %v1256_v12, %v1219_v27  ;;  %v1624_v44 = vadd.f32 %v1608_v33, %v1568_v0  ;;  %v5539_v45 = vmul.f32 %v5449_v49, %v5519_v36  ;;  %v1204_v33 = vmul.f32 %v5338_v35, %v5460_v31  ;;  %v867_v27 = vld [vmem:[#allocation2 + $0x18b] sm:$0xff] }
 0x19b   : > { %v1114_v51 = vadd.f32 %v1098_v32, %v1061_v43  ;;  %v1814_v25 = vadd.f32 %v4928_v16, %v1791_v59  ;;  %v1257_v12 = vmul.f32 %v5363_v39, %v1236_v37  ;;  %v1302_v50 = vmul.f32 %v5371_v41, %v1282_v21  ;;  %v7017_v43 = vld [vmem:[#allocation40_spill] sm:$0xff]  ;;  %v920_v31 = vld [vmem:[#allocation2 + $0x18c] sm:$0xff] }
 0x19c   : > { %v1317_v42 = vadd.f32 %v1301_v8, %v1272_v20  ;;  %v1680_v52 = vadd.f32 %v1664_v10, %v1624_v44  ;;  %v1347_v8 = vmul.f32 %v5378_v19, %v1327_v48  ;;  %v745_v0 = vadd.f32 %v7017_v43, %v7016_v3  ;;  %v5552_v37 = vld [vmem:[#allocation2 + $0x191] sm:$0xff]  ;;  %v7018_v21 = vld [vmem:[#allocation38_spill] sm:$0xff]  ;;  %v7020_v48 = vld [vmem:[#allocation49_spill] sm:$0xff] }
 0x19d   : > { %v1167_v46 = vadd.f32 %v1151_v2, %v1114_v51  ;;  %1872 = vrot.lane.b32.xlu0 %v1814_v25, %s3849_s23  ;;  %v835_v20 = vmul.f32 %v5275_v55, %v814_v29  ;;  %v1392_v10 = vmul.f32 %v5388_v60, %v1372_v57  ;;  %v7022_v43 = vld [vmem:[#allocation17_spill] sm:$0xff] }
 0x19e   : > { %v1362_v32 = vadd.f32 %v1346_v13, %v1317_v42  ;;  %v1736_v59 = vadd.f32 %v1720_v40, %v1680_v52  ;;  %v1448_v13 = vmul.f32 %v5394_v24, %v1427_v18  ;;  %v798_v44 = vadd.f32 %v7018_v21, %v745_v0  ;;  %v7019_v42 = vld [vmem:[#allocation9_spill] sm:$0xff] }
 0x19f   : > { %v1220_v16 = vadd.f32 %v1204_v33, %v1167_v46  ;;  %v888_v25 = vmul.f32 %v7019_v42, %v867_v27  ;;  %v7021_v46 = vld [vmem:[#allocation46_spill] sm:$0xff]  ;;  %v1501_v40 = vmul.f32 %v5400_v26, %v7022_v43  ;;  %v5567_v21 = vld [vmem:[%s6800_s2] ss:$0 sm:$0xff] }
 0x1a0   : > { %v1407_v51 = vadd.f32 %v1391_v4, %v1362_v32  ;;  %v1009_v33 = vadd.f32 %v7021_v46, %v7020_v48  ;;  %v1792_v3 = vadd.f32 %v5499_v6, %v1736_v59  ;;  %v7023_v4 = vld [vmem:[#allocation26_spill] sm:$0xff]  ;;  %v851_v32 = vadd.f32 %v835_v20, %v798_v44 }
 0x1a1   : > { %v1273_v2 = vadd.f32 %v1257_v12, %v1220_v16  ;;  %v941_v57 = vmul.f32 %v7023_v4, %v920_v31  ;;  %v973_v12 = vld [vmem:[#allocation2 + $0x18d] sm:$0xff]  ;;  %v1554_v59 = vmul.f32 %v5409_v22, %v5552_v37  ;;  %v1152_v48 = vmul.f32 %v5318_v38, %v6996_v23 }
 0x1a2   : > { %v1463_v29 = vadd.f32 %v1447_v1, %v1407_v51  ;;  %v7024_v16 = vld [vmem:[#allocation47_spill] sm:$0xff]  ;;  %v3717_v36 = vld [vmem:[#allocation2 + $0x187] sm:$0xff]  ;;  %v1815_v6 = vadd.f32 %v5567_v21, %v1792_v3 }
 0x1a3   : > { %v1318_v52 = vadd.f32 %v1302_v50, %v1273_v2  ;;  %v1062_v55 = vadd.f32 %v7024_v16, %v1009_v33  ;;  %v1099_v0 = vmul.f32 %v3717_v36, %v5304_v47  ;;  %v1610_v50 = vmul.f32 %v5418_v17, %v5194_v14  ;;  %v5574_v51 = vld [vmem:[#allocation2 + $0x210] sm:$0xff] }
 0x1a4   : > { %v1516_v1 = vadd.f32 %v1500_v28, %v1463_v29  ;;  %v904_v2 = vadd.f32 %v888_v25, %v851_v32  ;;  %v1026_v44 = vld [vmem:[#allocation2 + $0x18e] sm:$0xff]  ;;  %1874 = vrot.lane.b32.xlu1 %v1815_v6, %s3849_s23  ;;  %v1666_v28 = vmul.f32 %v5427_v30, %v5323_v9  ;;  %v5583_v33 = vmul.f32 %v5440_v58, %v5485_v34 }
 0x1a5   : > { %v1363_v20 = vadd.f32 %v1347_v8, %v1318_v52  ;;  %v1115_v36 = vadd.f32 %v1099_v0, %v1062_v55  ;;  %v994_v8 = vmul.f32 %v5332_v11, %v973_v12  ;;  %v1237_v3 = vld [vmem:[#allocation2 + $0x18a] sm:$0xff]  ;;  %v1205_v55 = vmul.f32 %v5338_v35, %v5508_v63 }
 0x1a6   : > { %v1569_v46 = vadd.f32 %v1553_v56, %v1516_v1  ;;  %v957_v25 = vadd.f32 %v941_v57, %v904_v2  ;;  %v5591_v56 = vmul.f32 %v5449_v49, %v5574_v51  ;;  %v1047_v32 = vmul.f32 %v5355_v61, %v1026_v44  ;;  %v1428_v0 = vld [vmem:[#allocation2 + $0x1a7] sm:$0xff] }
 0x1a7   : > { %v1408_v29 = vadd.f32 %v1392_v10, %v1363_v20  ;;  %v1168_v52 = vadd.f32 %v1152_v48, %v1115_v36  ;;  %v1100_v16 = vmul.f32 %v5304_v47, %v1427_v18  ;;  %v1258_v10 = vmul.f32 %v5363_v39, %v1237_v3  ;;  %v5596_v57 = vld [vmem:[#allocation2 + $0x1a9] sm:$0xff]  ;;  %v1283_v3 = vld [vmem:[#allocation2 + $0x193] sm:$0xff] }
 0x1a8   : > { %v1625_v23 = vadd.f32 %v5524_v54, %v1569_v46  ;;  %v1010_v1 = vadd.f32 %v994_v8, %v957_v25  ;;  %v1303_v54 = vmul.f32 %v5371_v41, %v867_v27  ;;  %v1348_v20 = vmul.f32 %v5378_v19, %v920_v31  ;;  %v5603_v18 = vld [vmem:[#allocation2 + $0x228] sm:$0xff]  ;;  %v1238_v8 = vld [vmem:[#allocation2 + $0x192] sm:$0xff] }
 0x1a9   : > { %v1464_v6 = vadd.f32 %v1448_v13, %v1408_v29  ;;  %v1221_v11 = vadd.f32 %v1205_v55, %v1168_v52  ;;  %v1393_v2 = vmul.f32 %v5388_v60, %v973_v12  ;;  %v1449_v47 = vmul.f32 %v5394_v24, %v1428_v0  ;;  %7025 = vst [vmem:[#allocation14_spill] sm:$0xff] %v5603_v18  ;;  %v1328_v29 = vld [vmem:[#allocation2 + $0x194] sm:$0xff] }
 0x1aa   : > { %v1681_v63 = vadd.f32 %v5530_v15, %v1625_v23  ;;  %v1063_v44 = vadd.f32 %v1047_v32, %v1010_v1  ;;  %v1502_v46 = vmul.f32 %v5400_v26, %v6998_v7  ;;  %v1555_v15 = vmul.f32 %v5409_v22, %v5596_v57  ;;  %v7026_v55 = vld [vmem:[#allocation23_spill] sm:$0xff] }
 0x1ab   : > { %v1517_v36 = vadd.f32 %v1501_v40, %v1464_v6  ;;  %v1274_v48 = vadd.f32 %v1258_v10, %v1221_v11  ;;  %v5612_v27 = vmul.f32 %v5418_v17, %v5234_v53  ;;  %v1153_v11 = vmul.f32 %v5318_v38, %v7022_v43  ;;  %v1373_v0 = vld [vmem:[#allocation2 + $0x195] sm:$0xff]  ;;  %v5631_v6 = vld [vmem:[#allocation2 + $0x1ab] sm:$0xff] }
 0x1ac   : > { %v1737_v13 = vadd.f32 %v5534_v5, %v1681_v63  ;;  %v1116_v40 = vadd.f32 %v1100_v16, %v1063_v44  ;;  %v2268_v5 = vld [vmem:[#allocation2 + $0x191] sm:$0xff]  ;;  %v5619_v52 = vmul.f32 %v5427_v30, %v5413_v62  ;;  %v5623_v23 = vmul.f32 %v5440_v58, %v7026_v55 }
 0x1ad   : > { %v1570_v31 = vadd.f32 %v1554_v59, %v1517_v36  ;;  %v1319_v12 = vadd.f32 %v1303_v54, %v1274_v48  ;;  %v5627_v59 = vmul.f32 %v5449_v49, %v5603_v18  ;;  %v1206_v16 = vmul.f32 %v5338_v35, %v5552_v37  ;;  %v7027_v48 = vld [vmem:[#allocation39_spill] sm:$0xff] }
 0x1ae   : > { %v1793_v25 = vadd.f32 %v5539_v45, %v1737_v13  ;;  %v1169_v43 = vadd.f32 %v1153_v11, %v1116_v40  ;;  %v1429_v45 = vld [vmem:[#allocation2 + $0x1af] sm:$0xff]  ;;  %v1259_v10 = vmul.f32 %v5363_v39, %v1238_v8  ;;  %v1304_v63 = vmul.f32 %v5371_v41, %v1283_v3  ;;  %v7028_v13 = vld [vmem:[#allocation48_spill] sm:$0xff]  ;;  %v7030_v11 = vld [vmem:[#allocation45_spill] sm:$0xff] }
 0x1af   : > { %v1626_v32 = vadd.f32 %v1610_v50, %v1570_v31  ;;  %v1364_v38 = vadd.f32 %v1348_v20, %v1319_v12  ;;  %v1349_v54 = vmul.f32 %v5378_v19, %v1328_v29  ;;  %v5637_v20 = vld [vmem:[#allocation2 + $0x1b1] sm:$0xff]  ;;  %v2199_v35 = vadd.f32 %v7028_v13, %v7027_v48  ;;  %v5654_v3 = vld [vmem:[%s6799_s1 + $0xb] ss:$0 sm:$0xff] }
 0x1b0   : > { %v1816_v1 = vadd.f32 %v5567_v21, %v1793_v25  ;;  %v1222_v50 = vadd.f32 %v1206_v16, %v1169_v43  ;;  %v5641_v37 = vld [vmem:[#allocation2 + $0x1ac] sm:$0xff]  ;;  %v1394_v31 = vmul.f32 %v5388_v60, %v1373_v0  ;;  %v1450_v39 = vmul.f32 %v5394_v24, %v1429_v45  ;;  %v7029_v40 = vld [vmem:[#allocation12_spill] sm:$0xff] }
 0x1b1   : > { %v1682_v36 = vadd.f32 %v1666_v28, %v1626_v32  ;;  %v1409_v44 = vadd.f32 %v1393_v2, %v1364_v38  ;;  %v2289_v41 = vmul.f32 %v7029_v40, %v2268_v5  ;;  %v2342_v19 = vmul.f32 %v7019_v42, %v5631_v6  ;;  %v5667_v43 = vld [vmem:[#allocation2 + $0x230] sm:$0xff] }
 0x1b2   : > { %1876 = vrot.lane.b32.xlu0 %v1816_v1, %s3849_s23  ;;  %v1275_v12 = vadd.f32 %v1259_v10, %v1222_v50  ;;  %v2252_v8 = vadd.f32 %v7030_v11, %v2199_v35  ;;  %v1503_v60 = vmul.f32 %v5400_v26, %v5194_v14  ;;  %v5660_v24 = vmul.f32 %v5409_v22, %v5637_v20  ;;  %v5672_v26 = vld [vmem:[%s6799_s1 + $0xc] ss:$0 sm:$0xff]  ;;  %v2427_v1 = vld [vmem:[#allocation2 + $0x1ad] sm:$0xff] }
 0x1b3   : > { %v1738_v28 = vadd.f32 %v5583_v33, %v1682_v36  ;;  %v1465_v2 = vadd.f32 %v1449_v47, %v1409_v44  ;;  %v2395_v29 = vmul.f32 %v7023_v4, %v5641_v37  ;;  %v7031_v33 = vld [vmem:[#allocation56_spill] sm:$0xff]  ;;  %v7032_v47 = vld [vmem:[#allocation53_spill] sm:$0xff]  ;;  %v5676_v22 = vmul.f32 %v5418_v17, %v5323_v9  ;;  %v2480_v13 = vld [vmem:[#allocation2 + $0x1ae] sm:$0xff] }
 0x1b4   : > { %v2463_v5 = vadd.f32 %v7032_v47, %v7031_v33  ;;  %v1320_v38 = vadd.f32 %v1304_v63, %v1275_v12  ;;  %v2305_v16 = vadd.f32 %v2289_v41, %v2252_v8  ;;  %v5680_v0 = vmul.f32 %v5427_v30, %v5485_v34  ;;  %v3719_v10 = vld [vmem:[#allocation2 + $0x1a7] sm:$0xff]  ;;  %v7034_v12 = vld [vmem:[#allocation16_spill] sm:$0xff]  ;;  %v5721_v8 = vld [vmem:[%s6799_s1 + $0x11] ss:$0 sm:$0xff] }
 0x1b5   : > { %v1794_v25 = vadd.f32 %v5591_v56, %v1738_v28  ;;  %v1518_v32 = vadd.f32 %v1502_v46, %v1465_v2  ;;  %v7033_v56 = vld [vmem:[#allocation54_spill] sm:$0xff]  ;;  %v2553_v63 = vmul.f32 %v3719_v10, %v5654_v3  ;;  %v5692_v30 = vmul.f32 %v5440_v58, %v5574_v51 }
 0x1b6   : > { %v2516_v46 = vadd.f32 %v7033_v56, %v2463_v5  ;;  %v1365_v50 = vadd.f32 %v1349_v54, %v1320_v38  ;;  %v2358_v48 = vadd.f32 %v2342_v19, %v2305_v16  ;;  %v5688_v17 = vld [vmem:[%s6799_s1 + $0xd] ss:$0 sm:$0xff]  ;;  %v5696_v35 = vmul.f32 %v5449_v49, %v5667_v43  ;;  %v5703_v19 = vld [vmem:[%s6799_s1 + $0xe] ss:$0 sm:$0xff]  ;;  %v5711_v49 = vld [vmem:[%s6799_s1 + $0xf] ss:$0 sm:$0xff] }
 0x1b7   : > { %v1817_v36 = vadd.f32 %v5567_v21, %v1794_v25  ;;  %v1571_v44 = vadd.f32 %v1555_v15, %v1518_v32  ;;  %v2606_v15 = vmul.f32 %v5672_v26, %v6998_v7  ;;  %v2691_v54 = vld [vmem:[#allocation2 + $0x1aa] sm:$0xff]  ;;  %v2448_v11 = vmul.f32 %v7034_v12, %v2427_v1  ;;  %v5730_v5 = vld [vmem:[%s6799_s1 + $0x12] ss:$0 sm:$0xff]  ;;  %v5735_v25 = vld [vmem:[%s6799_s1 + $0x13] ss:$0 sm:$0xff] }
 0x1b8   : > { %v2569_v41 = vadd.f32 %v2553_v63, %v2516_v46  ;;  %v1410_v58 = vadd.f32 %v1394_v31, %v1365_v50  ;;  %v2411_v2 = vadd.f32 %v2395_v29, %v2358_v48  ;;  %v5716_v7 = vld [vmem:[%s6799_s1 + $0x10] ss:$0 sm:$0xff]  ;;  %v2554_v31 = vmul.f32 %v5654_v3, %v1429_v45  ;;  %v2882_v47 = vld [vmem:[#allocation2 + $0x1c7] sm:$0xff]  ;;  %v5749_v46 = vld [vmem:[%s6799_s1 + $0x15] ss:$0 sm:$0xff] }
 0x1b9   : > { %1878 = vrot.lane.b32.xlu1 %v1817_v36, %s3849_s23  ;;  %v1627_v28 = vadd.f32 %v5612_v27, %v1571_v44  ;;  %v2501_v27 = vmul.f32 %v5355_v61, %v2480_v13  ;;  %v2659_v33 = vmul.f32 %v5688_v17, %v5596_v57  ;;  %v2712_v45 = vmul.f32 %v5703_v19, %v2691_v54  ;;  %v5739_v56 = vld [vmem:[#allocation2 + $0x1c9] sm:$0xff]  ;;  %v5744_v57 = vld [vmem:[%s6799_s1 + $0x14] ss:$0 sm:$0xff]  ;;  %v5759_v36 = vld [vmem:[%s6799_s1 + $0x16] ss:$0 sm:$0xff] }
 0x1ba   : > { %v2622_v29 = vadd.f32 %v2606_v15, %v2569_v41  ;;  %v1466_v38 = vadd.f32 %v1450_v39, %v1410_v58  ;;  %v2464_v16 = vadd.f32 %v2448_v11, %v2411_v2  ;;  %v2802_v39 = vmul.f32 %v5716_v7, %v5641_v37  ;;  %v5768_v41 = vld [vmem:[#allocation2 + $0x248] sm:$0xff]  ;;  %v5773_v37 = vld [vmem:[%s6799_s1 + $0x18] ss:$0 sm:$0xff] }
 0x1bb   : > { %v1683_v32 = vadd.f32 %v5619_v52, %v1627_v28  ;;  %v2757_v52 = vmul.f32 %v5711_v49, %v5631_v6  ;;  %v2847_v63 = vmul.f32 %v5721_v8, %v2427_v1  ;;  %v2903_v13 = vmul.f32 %v5730_v5, %v2882_v47  ;;  %v5766_v6 = vld [vmem:[%s6799_s1 + $0x17] ss:$0 sm:$0xff]  ;;  %7035 = vst [vmem:[#allocation95_spill] sm:$0xff] %v5768_v41 }
 0x1bc   : > { %v2675_v10 = vadd.f32 %v2659_v33, %v2622_v29  ;;  %v1519_v50 = vadd.f32 %v1503_v60, %v1466_v38  ;;  %v2517_v48 = vadd.f32 %v2501_v27, %v2464_v16  ;;  %v3009_v60 = vmul.f32 %v5744_v57, %v5739_v56  ;;  %v2692_v11 = vld [vmem:[#allocation2 + $0x1b2] sm:$0xff] }
 0x1bd   : > { %v1739_v44 = vadd.f32 %v5623_v23, %v1683_v32  ;;  %v2956_v23 = vmul.f32 %v5735_v25, %v5234_v53  ;;  %v5781_v15 = vmul.f32 %v5749_v46, %v5413_v62  ;;  %v2607_v2 = vmul.f32 %v5672_v26, %v5194_v14  ;;  %v2744_v27 = vld [vmem:[#allocation2 + $0x1b3] sm:$0xff] }
 0x1be   : > { %v2728_v1 = vadd.f32 %v2712_v45, %v2675_v10  ;;  %v1572_v28 = vadd.f32 %v5660_v24, %v1519_v50  ;;  %v2570_v58 = vadd.f32 %v2554_v31, %v2517_v48  ;;  %v2789_v29 = vld [vmem:[#allocation2 + $0x1b4] sm:$0xff]  ;;  %v5789_v32 = vmul.f32 %v5759_v36, %v7026_v55 }
 0x1bf   : > { %v1795_v54 = vadd.f32 %v5627_v59, %v1739_v44  ;;  %v2270_v33 = vld [vmem:[#allocation2 + $0x1b1] sm:$0xff]  ;;  %v5793_v38 = vmul.f32 %v5766_v6, %v5603_v18  ;;  %v5797_v59 = vmul.f32 %v5773_v37, %v5768_v41  ;;  %v2660_v16 = vmul.f32 %v5688_v17, %v5637_v20 }
 0x1c0   : > { %v2773_v47 = vadd.f32 %v2757_v52, %v2728_v1  ;;  %v1628_v14 = vadd.f32 %v5676_v22, %v1572_v28  ;;  %v2623_v31 = vadd.f32 %v2607_v2, %v2570_v58  ;;  %v2834_v45 = vld [vmem:[#allocation2 + $0x1b5] sm:$0xff]  ;;  %v2323_v52 = vld [vmem:[#allocation2 + $0x1cb] sm:$0xff]  ;;  %v2713_v50 = vmul.f32 %v5703_v19, %v2692_v11 }
 0x1c1   : > { %v1818_v24 = vadd.f32 %v5567_v21, %v1795_v54  ;;  %v2883_v10 = vld [vmem:[#allocation2 + $0x1cf] sm:$0xff]  ;;  %v2758_v48 = vmul.f32 %v5711_v49, %v2744_v27  ;;  %v2803_v1 = vmul.f32 %v5716_v7, %v2789_v29  ;;  %v7036_v22 = vld [vmem:[#allocation44_spill] sm:$0xff]  ;;  %v2291_v20 = vmul.f32 %v7029_v40, %v2270_v33 }
 0x1c2   : > { %v2818_v44 = vadd.f32 %v2802_v39, %v2773_v47  ;;  %v1684_v54 = vadd.f32 %v5680_v0, %v1628_v14  ;;  %v2676_v41 = vadd.f32 %v2660_v16, %v2623_v31  ;;  %v7037_v28 = vld [vmem:[#allocation52_spill] sm:$0xff]  ;;  %v2376_v2 = vld [vmem:[#allocation2 + $0x1cc] sm:$0xff]  ;;  %v2848_v39 = vmul.f32 %v5721_v8, %v2834_v45  ;;  %v7039_v31 = vld [vmem:[#allocation61_spill] sm:$0xff] }
 0x1c3   : > { %1880 = vrot.lane.b32.xlu0 %v1818_v24, %s3849_s23  ;;  %v2201_v58 = vadd.f32 %v7037_v28, %v7036_v22  ;;  %v2904_v11 = vmul.f32 %v5730_v5, %v2883_v10  ;;  %v2344_v27 = vmul.f32 %v7019_v42, %v2323_v52  ;;  %v5815_v24 = vld [vmem:[#allocation2 + $0x1d1] sm:$0xff]  ;;  %v7038_v0 = vld [vmem:[#allocation50_spill] sm:$0xff]  ;;  %v2397_v33 = vmul.f32 %v7023_v4, %v2376_v2 }
 0x1c4   : > { %v2863_v18 = vadd.f32 %v2847_v63, %v2818_v44  ;;  %v1740_v29 = vadd.f32 %v5692_v30, %v1684_v54  ;;  %v2729_v47 = vadd.f32 %v2713_v50, %v2676_v41  ;;  %v7040_v16 = vld [vmem:[#allocation59_spill] sm:$0xff]  ;;  %v2957_v63 = vmul.f32 %v5735_v25, %v5323_v9  ;;  %v3720_v45 = vld [vmem:[#allocation2 + $0x1c7] sm:$0xff]  ;;  %v7041_v54 = vld [vmem:[#allocation60_spill] sm:$0xff] }
 0x1c5   : > { %v2254_v14 = vadd.f32 %v7038_v0, %v2201_v58  ;;  %v2465_v22 = vadd.f32 %v7040_v16, %v7039_v31  ;;  %v2555_v44 = vmul.f32 %v3720_v45, %v5654_v3  ;;  %v2429_v50 = vld [vmem:[#allocation2 + $0x1cd] sm:$0xff]  ;;  %v3010_v0 = vmul.f32 %v5744_v57, %v5815_v24 }
 0x1c6   : > { %v2919_v28 = vadd.f32 %v2903_v13, %v2863_v18  ;;  %v1796_v42 = vadd.f32 %v5696_v35, %v1740_v29  ;;  %v2774_v30 = vadd.f32 %v2758_v48, %v2729_v47  ;;  %v3066_v18 = vmul.f32 %v5749_v46, %v5485_v34  ;;  %v5833_v45 = vld [vmem:[#allocation2 + $0x250] sm:$0xff] }
 0x1c7   : > { %v2307_v41 = vadd.f32 %v2291_v20, %v2254_v14  ;;  %v2518_v40 = vadd.f32 %v7041_v54, %v2465_v22  ;;  %v2608_v13 = vmul.f32 %v5672_v26, %v5234_v53  ;;  %v2482_v48 = vld [vmem:[#allocation2 + $0x1ce] sm:$0xff]  ;;  %v5839_v47 = vmul.f32 %v5766_v6, %v5667_v43 }
 0x1c8   : > { %v2972_v58 = vadd.f32 %v2956_v23, %v2919_v28  ;;  %v1819_v31 = vadd.f32 %v5567_v21, %v1796_v42  ;;  %v2819_v16 = vadd.f32 %v2803_v1, %v2774_v30  ;;  %v3122_v23 = vmul.f32 %v5759_v36, %v5574_v51  ;;  %v2693_v22 = vld [vmem:[#allocation2 + $0x1ca] sm:$0xff] }
 0x1c9   : > { %v2360_v35 = vadd.f32 %v2344_v27, %v2307_v41  ;;  %v2571_v20 = vadd.f32 %v2555_v44, %v2518_v40  ;;  %v2450_v14 = vmul.f32 %v7034_v12, %v2429_v50  ;;  %v2661_v1 = vmul.f32 %v5688_v17, %v5739_v56  ;;  %v2884_v44 = vld [vmem:[#allocation2 + $0x1e7] sm:$0xff] }
 0x1ca   : > { %v3025_v29 = vadd.f32 %v3009_v60, %v2972_v58  ;;  %1882 = vrot.lane.b32.xlu1 %v1819_v31, %s3849_s23  ;;  %v2864_v53 = vadd.f32 %v2848_v39, %v2819_v16  ;;  %v5848_v60 = vmul.f32 %v5773_v37, %v5833_v45  ;;  %v2503_v27 = vmul.f32 %v5355_v61, %v2482_v48 }
 0x1cb   : > { %v2413_v42 = vadd.f32 %v2397_v33, %v2360_v35  ;;  %v2624_v21 = vadd.f32 %v2608_v13, %v2571_v20  ;;  %v2556_v28 = vmul.f32 %v5654_v3, %v2883_v10  ;;  %v2714_v39 = vmul.f32 %v5703_v19, %v2693_v22  ;;  %v5853_v33 = vld [vmem:[#allocation2 + $0x1e9] sm:$0xff]  ;;  %v2745_v22 = vld [vmem:[#allocation2 + $0x1d3] sm:$0xff] }
 0x1cc   : > { %v3081_v40 = vadd.f32 %v5781_v15, %v3025_v29  ;;  %v2920_v30 = vadd.f32 %v2904_v11, %v2864_v53  ;;  %v2759_v15 = vmul.f32 %v5711_v49, %v2323_v52  ;;  %v2804_v58 = vmul.f32 %v5716_v7, %v2376_v2  ;;  %v5860_v11 = vld [vmem:[#allocation2 + $0x268] sm:$0xff]  ;;  %v2694_v2 = vld [vmem:[#allocation2 + $0x1d2] sm:$0xff] }
 0x1cd   : > { %v2466_v41 = vadd.f32 %v2450_v14, %v2413_v42  ;;  %v2677_v54 = vadd.f32 %v2661_v1, %v2624_v21  ;;  %v2849_v13 = vmul.f32 %v5721_v8, %v2429_v50  ;;  %v2905_v10 = vmul.f32 %v5730_v5, %v2884_v44  ;;  %7042 = vst [vmem:[#allocation24_spill] sm:$0xff] %v5860_v11  ;;  %v2790_v53 = vld [vmem:[#allocation2 + $0x1d4] sm:$0xff]  ;;  %v7043_v1 = vld [vmem:[#allocation14_spill] sm:$0xff] }
 0x1ce   : > { %v3137_v56 = vadd.f32 %v5789_v32, %v3081_v40  ;;  %v2973_v31 = vadd.f32 %v2957_v63, %v2920_v30  ;;  %v2958_v20 = vmul.f32 %v5735_v25, %v5413_v62  ;;  %v3011_v32 = vmul.f32 %v5744_v57, %v5853_v33  ;;  %v5874_v63 = vld [vmem:[%s6800_s2] ss:$0 sm:$0xff]  ;;  %v2272_v42 = vld [vmem:[#allocation2 + $0x1d1] sm:$0xff] }
 0x1cf   : > { %v2519_v16 = vadd.f32 %v2503_v27, %v2466_v41  ;;  %v2730_v35 = vadd.f32 %v2714_v39, %v2677_v54  ;;  %v5869_v52 = vmul.f32 %v5749_v46, %v7026_v55  ;;  %v5881_v40 = vmul.f32 %v5759_v36, %v7043_v1  ;;  %v7044_v27 = vld [vmem:[#allocation95_spill] sm:$0xff] }
 0x1d0   : > { %v3193_v48 = vadd.f32 %v5793_v38, %v3137_v56  ;;  %v3026_v50 = vadd.f32 %v3010_v0, %v2973_v31  ;;  %v2609_v38 = vmul.f32 %v5672_v26, %v5323_v9  ;;  %v5885_v44 = vmul.f32 %v5766_v6, %v7044_v27  ;;  %v2835_v54 = vld [vmem:[#allocation2 + $0x1d5] sm:$0xff]  ;;  %v2325_v39 = vld [vmem:[#allocation2 + $0x1eb] sm:$0xff] }
 0x1d1   : > { %v2572_v29 = vadd.f32 %v2556_v28, %v2519_v16  ;;  %v2775_v14 = vadd.f32 %v2759_v15, %v2730_v35  ;;  %v5889_v0 = vmul.f32 %v5773_v37, %v5860_v11  ;;  %v2662_v41 = vmul.f32 %v5688_v17, %v5815_v24  ;;  %v2378_v24 = vld [vmem:[#allocation2 + $0x1ec] sm:$0xff] }
 0x1d2   : > { %v3249_v21 = vadd.f32 %v5797_v59, %v3193_v48  ;;  %v3082_v28 = vadd.f32 %v3066_v18, %v3026_v50  ;;  %v2885_v59 = vld [vmem:[#allocation2 + $0x1ef] sm:$0xff]  ;;  %v2715_v15 = vmul.f32 %v5703_v19, %v2694_v2  ;;  %v2760_v31 = vmul.f32 %v5711_v49, %v2745_v22  ;;  %v7047_v2 = vld [vmem:[#allocation12_spill] sm:$0xff]  ;;  %v7048_v22 = vld [vmem:[#allocation9_spill] sm:$0xff] }
 0x1d3   : > { %v2820_v30 = vadd.f32 %v2804_v58, %v2775_v14  ;;  %v2625_v9 = vadd.f32 %v2609_v38, %v2572_v29  ;;  %v2805_v16 = vmul.f32 %v5716_v7, %v2790_v53  ;;  %v5897_v18 = vld [vmem:[#allocation2 + $0x1f1] sm:$0xff]  ;;  %v7046_v50 = vld [vmem:[#allocation58_spill] sm:$0xff]  ;;  %v2850_v14 = vmul.f32 %v5721_v8, %v2835_v54 }
 0x1d4   : > { %v3272_v56 = vadd.f32 %v5874_v63, %v3249_v21  ;;  %v3138_v35 = vadd.f32 %v3122_v23, %v3082_v28  ;;  %v7045_v58 = vld [vmem:[#allocation51_spill] sm:$0xff]  ;;  %v2906_v38 = vmul.f32 %v5730_v5, %v2885_v59  ;;  %v2293_v21 = vmul.f32 %v7047_v2, %v2272_v42 }
 0x1d5   : > { %v2865_v48 = vadd.f32 %v2849_v13, %v2820_v30  ;;  %v2678_v11 = vadd.f32 %v2662_v41, %v2625_v9  ;;  %v2203_v29 = vadd.f32 %v7046_v50, %v7045_v58  ;;  %v2346_v27 = vmul.f32 %v7048_v22, %v2325_v39  ;;  %v7049_v28 = vld [vmem:[#allocation55_spill] sm:$0xff]  ;;  %v7051_v58 = vld [vmem:[#allocation65_spill] sm:$0xff] }
 0x1d6   : > { %3320 = vrot.lane.b32.xlu0 %v3272_v56, %s3849_s23  ;;  %v3194_v23 = vadd.f32 %v5839_v47, %v3138_v35  ;;  %v2959_v9 = vmul.f32 %v5735_v25, %v5485_v34  ;;  %v3012_v41 = vmul.f32 %v5744_v57, %v5897_v18  ;;  %v2399_v54 = vmul.f32 %v7023_v4, %v2378_v24  ;;  %v7050_v56 = vld [vmem:[#allocation66_spill] sm:$0xff]  ;;  %v5916_v47 = vld [vmem:[#allocation2 + $0x270] sm:$0xff] }
 0x1d7   : > { %v2921_v13 = vadd.f32 %v2905_v10, %v2865_v48  ;;  %v2731_v53 = vadd.f32 %v2715_v15, %v2678_v11  ;;  %v2256_v30 = vadd.f32 %v7049_v28, %v2203_v29  ;;  %v2467_v50 = vadd.f32 %v7051_v58, %v7050_v56  ;;  %v2431_v35 = vld [vmem:[#allocation2 + $0x1ed] sm:$0xff] }
 0x1d8   : > { %v3250_v42 = vadd.f32 %v5848_v60, %v3194_v23  ;;  %v3068_v11 = vmul.f32 %v5749_v46, %v5574_v51  ;;  %v5922_v15 = vmul.f32 %v5759_v36, %v5667_v43  ;;  %v7052_v48 = vld [vmem:[#allocation67_spill] sm:$0xff]  ;;  %v3721_v28 = vld [vmem:[#allocation2 + $0x1e7] sm:$0xff]  ;;  %v2610_v58 = vmul.f32 %v5672_v26, %v5413_v62 }
 0x1d9   : > { %v2974_v2 = vadd.f32 %v2958_v20, %v2921_v13  ;;  %v2776_v22 = vadd.f32 %v2760_v31, %v2731_v53  ;;  %v2309_v10 = vadd.f32 %v2293_v21, %v2256_v30  ;;  %v2520_v29 = vadd.f32 %v7052_v48, %v2467_v50  ;;  %v2484_v13 = vld [vmem:[#allocation2 + $0x1ee] sm:$0xff] }
 0x1da   : > { %v2557_v56 = vmul.f32 %v3721_v28, %v5654_v3  ;;  %v3273_v60 = vadd.f32 %v5874_v63, %v3250_v42  ;;  %v5929_v21 = vmul.f32 %v5766_v6, %v5833_v45  ;;  %v5933_v53 = vmul.f32 %v5773_v37, %v5916_v47  ;;  %v2695_v50 = vld [vmem:[#allocation2 + $0x1ea] sm:$0xff] }
 0x1db   : > { %v3027_v20 = vadd.f32 %v3011_v32, %v2974_v2  ;;  %v2821_v31 = vadd.f32 %v2805_v16, %v2776_v22  ;;  %v2362_v23 = vadd.f32 %v2346_v27, %v2309_v10  ;;  %v2452_v42 = vmul.f32 %v7034_v12, %v2431_v35 }
 0x1dc   : > { %v2573_v30 = vadd.f32 %v2557_v56, %v2520_v29  ;;  %3322 = vrot.lane.b32.xlu1 %v3273_v60, %s3849_s23  ;;  %v2505_v2 = vmul.f32 %v5355_v61, %v2484_v13  ;;  %v2558_v22 = vmul.f32 %v5654_v3, %v2885_v59  ;;  %v2663_v48 = vmul.f32 %v5688_v17, %v5853_v33  ;;  %v2886_v29 = vld [vmem:[#allocation2 + $0x207] sm:$0xff] }
 0x1dd   : > { %v3083_v32 = vadd.f32 %v5869_v52, %v3027_v20  ;;  %v2866_v16 = vadd.f32 %v2850_v14, %v2821_v31  ;;  %v2415_v27 = vadd.f32 %v2399_v54, %v2362_v23  ;;  %v2716_v60 = vmul.f32 %v5703_v19, %v2695_v50  ;;  %v5946_v52 = vld [vmem:[#allocation2 + $0x209] sm:$0xff]  ;;  %v2791_v50 = vld [vmem:[#allocation2 + $0x1f4] sm:$0xff] }
 0x1de   : > { %v2626_v10 = vadd.f32 %v2610_v58, %v2573_v30  ;;  %v2761_v12 = vmul.f32 %v5711_v49, %v2325_v39  ;;  %v2806_v61 = vmul.f32 %v5716_v7, %v2378_v24  ;;  %v2851_v59 = vmul.f32 %v5721_v8, %v2431_v35  ;;  %v2696_v30 = vld [vmem:[#allocation2 + $0x1f2] sm:$0xff] }
 0x1df   : > { %v3139_v62 = vadd.f32 %v5881_v40, %v3083_v32  ;;  %v2922_v28 = vadd.f32 %v2906_v38, %v2866_v16  ;;  %v2468_v56 = vadd.f32 %v2452_v42, %v2415_v27  ;;  %v2907_v31 = vmul.f32 %v5730_v5, %v2886_v29  ;;  %v5953_v40 = vld [vmem:[#allocation2 + $0x288] sm:$0xff]  ;;  %v2746_v58 = vld [vmem:[#allocation2 + $0x1f3] sm:$0xff] }
 0x1e0   : > { %v2679_v14 = vadd.f32 %v2663_v48, %v2626_v10  ;;  %v2960_v23 = vmul.f32 %v5735_v25, %v7026_v55  ;;  %v3013_v13 = vmul.f32 %v5744_v57, %v5946_v52  ;;  %v5961_v39 = vmul.f32 %v5749_v46, %v7043_v1  ;;  %v2274_v32 = vld [vmem:[#allocation2 + $0x1f1] sm:$0xff] }
 0x1e1   : > { %v3195_v54 = vadd.f32 %v5885_v44, %v3139_v62  ;;  %v2975_v20 = vadd.f32 %v2959_v9, %v2922_v28  ;;  %v2521_v33 = vadd.f32 %v2505_v2, %v2468_v56  ;;  %v2611_v35 = vmul.f32 %v5672_v26, %v5485_v34  ;;  %v7053_v27 = vld [vmem:[#allocation95_spill] sm:$0xff]  ;;  %v7054_v2 = vld [vmem:[#allocation24_spill] sm:$0xff] }
 0x1e2   : > { %v2732_v38 = vadd.f32 %v2716_v60, %v2679_v14  ;;  %v5968_v42 = vmul.f32 %v5759_v36, %v7053_v27  ;;  %v5972_v10 = vmul.f32 %v5766_v6, %v7054_v2  ;;  %v2664_v48 = vmul.f32 %v5688_v17, %v5897_v18  ;;  %v2836_v29 = vld [vmem:[#allocation2 + $0x1f5] sm:$0xff]  ;;  %v5981_v28 = vld [vmem:[#allocation2 + $0x20b] sm:$0xff]  ;;  %v5993_v18 = vld [vmem:[%s6799_s1 + $0x6] ss:$0 sm:$0xff] }
 0x1e3   : > { %v3251_v24 = vadd.f32 %v5889_v0, %v3195_v54  ;;  %v3028_v44 = vadd.f32 %v3012_v41, %v2975_v20  ;;  %v2574_v9 = vadd.f32 %v2558_v22, %v2521_v33  ;;  %v5976_v0 = vmul.f32 %v5773_v37, %v5953_v40  ;;  %v2887_v62 = vld [vmem:[#allocation2 + $0x20f] sm:$0xff]  ;;  %v7055_v20 = vld [vmem:[#allocation57_spill] sm:$0xff]  ;;  %v7056_v33 = vld [vmem:[#allocation64_spill] sm:$0xff]  ;;  %7057 = vst [vmem:[#allocation15_spill] sm:$0xff] %v5993_v18 }
 0x1e4   : > { %v2777_v16 = vadd.f32 %v2761_v12, %v2732_v38  ;;  %v2717_v60 = vmul.f32 %v5703_v19, %v2696_v30  ;;  %v2762_v14 = vmul.f32 %v5711_v49, %v2746_v58  ;;  %v2807_v12 = vmul.f32 %v5716_v7, %v2791_v50 }
 0x1e5   : > { %v3274_v41 = vadd.f32 %v5874_v63, %v3251_v24  ;;  %v3084_v34 = vadd.f32 %v3068_v11, %v3028_v44  ;;  %v2627_v22 = vadd.f32 %v2611_v35, %v2574_v9  ;;  %v2205_v38 = vadd.f32 %v7056_v33, %v7055_v20  ;;  %v2380_v24 = vld [vmem:[#allocation2 + $0x20c] sm:$0xff] }
 0x1e6   : > { %v2822_v56 = vadd.f32 %v2806_v61, %v2777_v16  ;;  %v2295_v61 = vmul.f32 %v5993_v18, %v2274_v32  ;;  %v2852_v9 = vmul.f32 %v5721_v8, %v2836_v29  ;;  %v2908_v35 = vmul.f32 %v5730_v5, %v2887_v62  ;;  %v6006_v16 = vld [vmem:[#allocation2 + $0x211] sm:$0xff]  ;;  %v7059_v32 = vld [vmem:[#allocation62_spill] sm:$0xff] }
 0x1e7   : > { %3324 = vrot.lane.b32.xlu0 %v3274_v41, %s3849_s23  ;;  %v3140_v54 = vadd.f32 %v5922_v15, %v3084_v34  ;;  %v2680_v11 = vadd.f32 %v2664_v48, %v2627_v22  ;;  %v6001_v15 = vld [vmem:[%s6799_s1 + $0x7] ss:$0 sm:$0xff]  ;;  %v2258_v41 = vadd.f32 %v7059_v32, %v2205_v38  ;;  %v7061_v34 = vld [vmem:[#allocation72_spill] sm:$0xff]  ;;  %v2961_v29 = vmul.f32 %v5735_v25, %v5574_v51 }
 0x1e8   : > { %v2867_v44 = vadd.f32 %v2851_v59, %v2822_v56  ;;  %7058 = vst [vmem:[#allocation22_spill] sm:$0xff] %v6001_v15  ;;  %v2348_v30 = vmul.f32 %v6001_v15, %v5981_v28  ;;  %v7060_v59 = vld [vmem:[#allocation75_spill] sm:$0xff]  ;;  %v2401_v56 = vmul.f32 %v7023_v4, %v2380_v24  ;;  %v3724_v20 = vld [vmem:[#allocation2 + $0x207] sm:$0xff]  ;;  %v3014_v32 = vmul.f32 %v5744_v57, %v6006_v16 }
 0x1e9   : > { %v3196_v58 = vadd.f32 %v5929_v21, %v3140_v54  ;;  %v2733_v50 = vadd.f32 %v2717_v60, %v2680_v11  ;;  %v2469_v22 = vadd.f32 %v7061_v34, %v7060_v59  ;;  %v2559_v33 = vmul.f32 %v3724_v20, %v5654_v3  ;;  %v2433_v54 = vld [vmem:[#allocation2 + $0x20d] sm:$0xff]  ;;  %v7062_v11 = vld [vmem:[#allocation73_spill] sm:$0xff]  ;;  %v6049_v20 = vld [vmem:[%s6799_s1 + $0xa] ss:$0 sm:$0xff] }
 0x1ea   : > { %v2923_v48 = vadd.f32 %v2907_v31, %v2867_v44  ;;  %v2311_v60 = vadd.f32 %v2295_v61, %v2258_v41  ;;  %v3070_v31 = vmul.f32 %v5749_v46, %v5667_v43  ;;  %v2612_v4 = vmul.f32 %v5672_v26, %v7026_v55  ;;  %v6024_v34 = vld [vmem:[#allocation2 + $0x290] sm:$0xff]  ;;  %v6035_v55 = vld [vmem:[%s6799_s1 + $0x9] ss:$0 sm:$0xff] }
 0x1eb   : > { %v3252_v15 = vadd.f32 %v5933_v53, %v3196_v58  ;;  %v2778_v21 = vadd.f32 %v2762_v14, %v2733_v50  ;;  %v2522_v18 = vadd.f32 %v7062_v11, %v2469_v22  ;;  %v2486_v14 = vld [vmem:[#allocation2 + $0x20e] sm:$0xff]  ;;  %v6030_v50 = vmul.f32 %v5766_v6, %v5916_v47 }
 0x1ec   : > { %v2976_v38 = vadd.f32 %v2960_v23, %v2923_v48  ;;  %v2364_v53 = vadd.f32 %v2348_v30, %v2311_v60  ;;  %v3126_v23 = vmul.f32 %v5759_v36, %v5833_v45  ;;  %v2665_v41 = vmul.f32 %v5688_v17, %v5946_v52 }
 0x1ed   : > { %v3275_v44 = vadd.f32 %v5874_v63, %v3252_v15  ;;  %v2823_v59 = vadd.f32 %v2807_v12, %v2778_v21  ;;  %v2575_v61 = vadd.f32 %v2559_v33, %v2522_v18  ;;  %v2454_v12 = vmul.f32 %v6035_v55, %v2433_v54  ;;  %v2697_v15 = vld [vmem:[#allocation2 + $0x20a] sm:$0xff] }
 0x1ee   : > { %v3029_v58 = vadd.f32 %v3013_v13, %v2976_v38  ;;  %v2417_v18 = vadd.f32 %v2401_v56, %v2364_v53  ;;  %v6044_v48 = vmul.f32 %v5773_v37, %v6024_v34  ;;  %v2507_v33 = vmul.f32 %v6049_v20, %v2486_v14  ;;  %v2888_v56 = vld [vmem:[#allocation2 + $0x227] sm:$0xff] }
 0x1ef   : > { %3326 = vrot.lane.b32.xlu1 %v3275_v44, %s3849_s23  ;;  %v2868_v30 = vadd.f32 %v2852_v9, %v2823_v59  ;;  %v2628_v13 = vadd.f32 %v2612_v4, %v2575_v61  ;;  %v2560_v9 = vmul.f32 %v5654_v3, %v2887_v62  ;;  %v2718_v52 = vmul.f32 %v5703_v19, %v2697_v15  ;;  %v6062_v61 = vld [vmem:[#allocation2 + $0x2a8] sm:$0xff] }
 0x1f0   : > { %v3085_v22 = vadd.f32 %v5961_v39, %v3029_v58  ;;  %v2470_v60 = vadd.f32 %v2454_v12, %v2417_v18  ;;  %v6054_v39 = vld [vmem:[#allocation2 + $0x229] sm:$0xff]  ;;  %v2763_v4 = vmul.f32 %v5711_v49, %v5981_v28  ;;  %v2808_v44 = vmul.f32 %v5716_v7, %v2380_v24  ;;  %7063 = vst [vmem:[#allocation69_spill] sm:$0xff] %v6062_v61  ;;  %v2747_v18 = vld [vmem:[#allocation2 + $0x213] sm:$0xff] }
 0x1f1   : > { %v2924_v21 = vadd.f32 %v2908_v35, %v2868_v30  ;;  %v2681_v11 = vadd.f32 %v2665_v41, %v2628_v13  ;;  %v2853_v59 = vmul.f32 %v5721_v8, %v2433_v54  ;;  %v2909_v35 = vmul.f32 %v5730_v5, %v2888_v56  ;;  %v2698_v30 = vld [vmem:[#allocation2 + $0x212] sm:$0xff] }
 0x1f2   : > { %v3141_v38 = vadd.f32 %v5968_v42, %v3085_v22  ;;  %v2523_v14 = vadd.f32 %v2507_v33, %v2470_v60  ;;  %v2962_v12 = vmul.f32 %v5735_v25, %v7043_v1  ;;  %v3015_v42 = vmul.f32 %v5744_v57, %v6054_v39  ;;  %v2792_v13 = vld [vmem:[#allocation2 + $0x214] sm:$0xff] }
 0x1f3   : > { %v2977_v53 = vadd.f32 %v2961_v29, %v2924_v21  ;;  %v2734_v62 = vadd.f32 %v2718_v52, %v2681_v11  ;;  %v6071_v28 = vmul.f32 %v5749_v46, %v7053_v27  ;;  %v2613_v15 = vmul.f32 %v5672_v26, %v5574_v51  ;;  %v2837_v60 = vld [vmem:[#allocation2 + $0x215] sm:$0xff]  ;;  %v2329_v11 = vld [vmem:[#allocation2 + $0x22b] sm:$0xff] }
 0x1f4   : > { %v3197_v58 = vadd.f32 %v5972_v10, %v3141_v38  ;;  %v2576_v29 = vadd.f32 %v2560_v9, %v2523_v14  ;;  %v2276_v10 = vld [vmem:[#allocation2 + $0x211] sm:$0xff]  ;;  %v6078_v22 = vmul.f32 %v5759_v36, %v7054_v2  ;;  %v6082_v33 = vmul.f32 %v5766_v6, %v5953_v40 }
 0x1f5   : > { %v3030_v24 = vadd.f32 %v3014_v32, %v2977_v53  ;;  %v2779_v54 = vadd.f32 %v2763_v4, %v2734_v62  ;;  %v6086_v32 = vmul.f32 %v5773_v37, %v6062_v61  ;;  %v2666_v21 = vmul.f32 %v5688_v17, %v6006_v16  ;;  %v2382_v16 = vld [vmem:[#allocation2 + $0x22c] sm:$0xff] }
 0x1f6   : > { %v3253_v41 = vadd.f32 %v5976_v0, %v3197_v58  ;;  %v2629_v56 = vadd.f32 %v2613_v15, %v2576_v29  ;;  %v2889_v0 = vld [vmem:[#allocation2 + $0x22f] sm:$0xff]  ;;  %v2719_v38 = vmul.f32 %v5703_v19, %v2698_v30  ;;  %v2764_v4 = vmul.f32 %v5711_v49, %v2747_v18 }
 0x1f7   : > { %v3086_v9 = vadd.f32 %v3070_v31, %v3030_v24  ;;  %v2824_v51 = vadd.f32 %v2808_v44, %v2779_v54  ;;  %v2809_v53 = vmul.f32 %v5716_v7, %v2792_v13  ;;  %v6094_v31 = vld [vmem:[#allocation2 + $0x231] sm:$0xff]  ;;  %v2854_v54 = vmul.f32 %v5721_v8, %v2837_v60  ;;  %v7067_v18 = vld [vmem:[#allocation22_spill] sm:$0xff] }
 0x1f8   : > { %v3276_v52 = vadd.f32 %v5874_v63, %v3253_v41  ;;  %v2682_v58 = vadd.f32 %v2666_v21, %v2629_v56  ;;  %v7064_v44 = vld [vmem:[#allocation63_spill] sm:$0xff]  ;;  %v2910_v15 = vmul.f32 %v5730_v5, %v2889_v0  ;;  %v2350_v61 = vmul.f32 %v7067_v18, %v2329_v11  ;;  %v6112_v60 = vld [vmem:[%s6799_s1 + $0x8] ss:$0 sm:$0xff] }
 0x1f9   : > { %v3142_v14 = vadd.f32 %v3126_v23, %v3086_v9  ;;  %v2869_v62 = vadd.f32 %v2853_v59, %v2824_v51  ;;  %v7065_v24 = vld [vmem:[#allocation71_spill] sm:$0xff]  ;;  %v7068_v9 = vld [vmem:[#allocation68_spill] sm:$0xff]  ;;  %v2963_v56 = vmul.f32 %v5735_v25, %v5667_v43  ;;  %v3016_v21 = vmul.f32 %v5744_v57, %v6094_v31  ;;  %7069 = vst [vmem:[#allocation94_spill] sm:$0xff] %v6112_v60 }
 0x1fa   : > { %v2207_v29 = vadd.f32 %v7065_v24, %v7064_v44  ;;  %3328 = vrot.lane.b32.xlu0 %v3276_v52, %s3849_s23  ;;  %v7066_v30 = vld [vmem:[#allocation15_spill] sm:$0xff]  ;;  %v2735_v13 = vadd.f32 %v2719_v38, %v2682_v58  ;;  %v7070_v52 = vld [vmem:[#allocation80_spill] sm:$0xff]  ;;  %v7071_v44 = vld [vmem:[#allocation78_spill] sm:$0xff]  ;;  %v3072_v24 = vmul.f32 %v5749_v46, %v5833_v45 }
 0x1fb   : > { %v2297_v41 = vmul.f32 %v7066_v30, %v2276_v10  ;;  %v3198_v23 = vadd.f32 %v6030_v50, %v3142_v14  ;;  %v2925_v59 = vadd.f32 %v2909_v35, %v2869_v62  ;;  %v2403_v10 = vmul.f32 %v6112_v60, %v2382_v16  ;;  %v6118_v62 = vld [vmem:[#allocation2 + $0x2b0] sm:$0xff]  ;;  %v3728_v30 = vld [vmem:[#allocation2 + $0x227] sm:$0xff] }
 0x1fc   : > { %v2260_v51 = vadd.f32 %v7068_v9, %v2207_v29  ;;  %v2471_v50 = vadd.f32 %v7071_v44, %v7070_v52  ;;  %v2780_v14 = vadd.f32 %v2764_v4, %v2735_v13  ;;  %v6124_v29 = vmul.f32 %v5759_v36, %v5916_v47  ;;  %v2435_v9 = vld [vmem:[#allocation2 + $0x22d] sm:$0xff] }
 0x1fd   : > { %v3254_v35 = vadd.f32 %v6044_v48, %v3198_v23  ;;  %v2978_v38 = vadd.f32 %v2962_v12, %v2925_v59  ;;  %v7072_v18 = vld [vmem:[#allocation79_spill] sm:$0xff]  ;;  %v2561_v52 = vmul.f32 %v3728_v30, %v5654_v3  ;;  %v6135_v13 = vmul.f32 %v5773_v37, %v6118_v62 }
 0x1fe   : > { %v2313_v58 = vadd.f32 %v2297_v41, %v2260_v51  ;;  %v2524_v60 = vadd.f32 %v7072_v18, %v2471_v50  ;;  %v2825_v4 = vadd.f32 %v2809_v53, %v2780_v14  ;;  %v2488_v59 = vld [vmem:[#allocation2 + $0x22e] sm:$0xff]  ;;  %v6131_v41 = vmul.f32 %v5766_v6, %v6024_v34 }
 0x1ff   : > { %v3277_v48 = vadd.f32 %v5874_v63, %v3254_v35  ;;  %v3031_v12 = vadd.f32 %v3015_v42, %v2978_v38  ;;  %v2614_v18 = vmul.f32 %v5672_v26, %v7043_v1  ;;  %v2699_v44 = vld [vmem:[#allocation2 + $0x22a] sm:$0xff]  ;;  %v2456_v30 = vmul.f32 %v6035_v55, %v2435_v9 }
 0x200   : > { %v2366_v23 = vadd.f32 %v2350_v61, %v2313_v58  ;;  %v2577_v51 = vadd.f32 %v2561_v52, %v2524_v60  ;;  %v2870_v53 = vadd.f32 %v2854_v54, %v2825_v4  ;;  %v2509_v50 = vmul.f32 %v6049_v20, %v2488_v59  ;;  %v2890_v14 = vld [vmem:[#allocation2 + $0x247] sm:$0xff] }
 0x201   : > { %3330 = vrot.lane.b32.xlu1 %v3277_v48, %s3849_s23  ;;  %v3087_v42 = vadd.f32 %v6071_v28, %v3031_v12  ;;  %v2562_v35 = vmul.f32 %v5654_v3, %v2889_v0  ;;  %v2667_v60 = vmul.f32 %v5688_v17, %v6054_v39  ;;  %v2720_v48 = vmul.f32 %v5703_v19, %v2699_v44  ;;  %v6148_v28 = vld [vmem:[#allocation2 + $0x249] sm:$0xff]  ;;  %v2700_v44 = vld [vmem:[#allocation2 + $0x232] sm:$0xff] }
 0x202   : > { %v2419_v61 = vadd.f32 %v2403_v10, %v2366_v23  ;;  %v2630_v38 = vadd.f32 %v2614_v18, %v2577_v51  ;;  %v2926_v58 = vadd.f32 %v2910_v15, %v2870_v53  ;;  %v2765_v10 = vmul.f32 %v5711_v49, %v2329_v11  ;;  %v2793_v53 = vld [vmem:[#allocation2 + $0x234] sm:$0xff] }
 0x203   : > { %v3143_v1 = vadd.f32 %v6078_v22, %v3087_v42  ;;  %v2810_v12 = vmul.f32 %v5716_v7, %v2382_v16  ;;  %v2855_v0 = vmul.f32 %v5721_v8, %v2435_v9  ;;  %v2911_v59 = vmul.f32 %v5730_v5, %v2890_v14  ;;  %v6155_v22 = vld [vmem:[#allocation2 + $0x2c8] sm:$0xff]  ;;  %v2748_v42 = vld [vmem:[#allocation2 + $0x233] sm:$0xff] }
 0x204   : > { %v2472_v52 = vadd.f32 %v2456_v30, %v2419_v61  ;;  %v2683_v54 = vadd.f32 %v2667_v60, %v2630_v38  ;;  %v2979_v23 = vadd.f32 %v2963_v56, %v2926_v58  ;;  %7073 = vst [vmem:[#allocation19_spill] sm:$0xff] %v6155_v22  ;;  %v2964_v51 = vmul.f32 %v5735_v25, %v7053_v27  ;;  %v2278_v61 = vld [vmem:[#allocation2 + $0x231] sm:$0xff]  ;;  %v7074_v38 = vld [vmem:[#allocation69_spill] sm:$0xff] }
 0x205   : > { %v3199_v4 = vadd.f32 %v6082_v33, %v3143_v1  ;;  %v3017_v18 = vmul.f32 %v5744_v57, %v6148_v28  ;;  %v6163_v11 = vmul.f32 %v5749_v46, %v7054_v2  ;;  %v2615_v9 = vmul.f32 %v5672_v26, %v5667_v43  ;;  %v2838_v1 = vld [vmem:[#allocation2 + $0x235] sm:$0xff] }
 0x206   : > { %v2525_v39 = vadd.f32 %v2509_v50, %v2472_v52  ;;  %v2736_v15 = vadd.f32 %v2720_v48, %v2683_v54  ;;  %v3032_v33 = vadd.f32 %v3016_v21, %v2979_v23  ;;  %v6170_v50 = vmul.f32 %v5759_v36, %v5953_v40  ;;  %v2891_v58 = vld [vmem:[#allocation2 + $0x24f] sm:$0xff] }
 0x207   : > { %v3255_v16 = vadd.f32 %v6086_v32, %v3199_v4  ;;  %v6174_v60 = vmul.f32 %v5766_v6, %v7074_v38  ;;  %v6178_v32 = vmul.f32 %v5773_v37, %v6155_v22  ;;  %v2668_v14 = vmul.f32 %v5688_v17, %v6094_v31  ;;  %v2331_v52 = vld [vmem:[#allocation2 + $0x24b] sm:$0xff] }
 0x208   : > { %v2578_v56 = vadd.f32 %v2562_v35, %v2525_v39  ;;  %v2781_v30 = vadd.f32 %v2765_v10, %v2736_v15  ;;  %v3088_v43 = vadd.f32 %v3072_v24, %v3032_v33  ;;  %v2721_v54 = vmul.f32 %v5703_v19, %v2700_v44  ;;  %v7075_v24 = vld [vmem:[#allocation70_spill] sm:$0xff]  ;;  %v7076_v15 = vld [vmem:[#allocation77_spill] sm:$0xff]  ;;  %v7077_v33 = vld [vmem:[#allocation15_spill] sm:$0xff] }
 0x209   : > { %v3278_v21 = vadd.f32 %v5874_v63, %v3255_v16  ;;  %v2766_v10 = vmul.f32 %v5711_v49, %v2748_v42  ;;  %v2811_v4 = vmul.f32 %v5716_v7, %v2793_v53  ;;  %v2209_v16 = vadd.f32 %v7076_v15, %v7075_v24 }
 0x20a   : > { %v2631_v35 = vadd.f32 %v2615_v9, %v2578_v56  ;;  %v2826_v48 = vadd.f32 %v2810_v12, %v2781_v30  ;;  %v3144_v23 = vadd.f32 %v6124_v29, %v3088_v43  ;;  %v2299_v31 = vmul.f32 %v7077_v33, %v2278_v61  ;;  %v2384_v56 = vld [vmem:[#allocation2 + $0x24c] sm:$0xff] }
 0x20b   : > { %3332 = vrot.lane.b32.xlu0 %v3278_v21, %s3849_s23  ;;  %v2856_v12 = vmul.f32 %v5721_v8, %v2838_v1  ;;  %v2912_v44 = vmul.f32 %v5730_v5, %v2891_v58  ;;  %v7078_v30 = vld [vmem:[#allocation22_spill] sm:$0xff]  ;;  %v6195_v21 = vld [vmem:[#allocation2 + $0x251] sm:$0xff] }
 0x20c   : > { %v2684_v39 = vadd.f32 %v2668_v14, %v2631_v35  ;;  %v2871_v9 = vadd.f32 %v2855_v0, %v2826_v48  ;;  %v2352_v42 = vmul.f32 %v7078_v30, %v2331_v52  ;;  %v3200_v53 = vadd.f32 %v6131_v41, %v3144_v23  ;;  %v7079_v29 = vld [vmem:[#allocation74_spill] sm:$0xff]  ;;  %v7080_v35 = vld [vmem:[#allocation92_spill] sm:$0xff] }
 0x20d   : > { %v2262_v43 = vadd.f32 %v7079_v29, %v2209_v16  ;;  %v7081_v14 = vld [vmem:[#allocation90_spill] sm:$0xff]  ;;  %v2965_v0 = vmul.f32 %v5735_v25, %v5833_v45  ;;  %v3018_v29 = vmul.f32 %v5744_v57, %v6195_v21 }
 0x20e   : > { %v2737_v22 = vadd.f32 %v2721_v54, %v2684_v39  ;;  %v2473_v24 = vadd.f32 %v7081_v14, %v7080_v35  ;;  %v2927_v15 = vadd.f32 %v2911_v59, %v2871_v9  ;;  %v7082_v61 = vld [vmem:[#allocation94_spill] sm:$0xff]  ;;  %v3256_v30 = vadd.f32 %v6135_v13, %v3200_v53  ;;  %v7083_v39 = vld [vmem:[#allocation91_spill] sm:$0xff] }
 0x20f   : > { %v2405_v1 = vmul.f32 %v7082_v61, %v2384_v56  ;;  %v3729_v48 = vld [vmem:[#allocation2 + $0x247] sm:$0xff]  ;;  %v2315_v54 = vadd.f32 %v2299_v31, %v2262_v43  ;;  %v3074_v59 = vmul.f32 %v5749_v46, %v5916_v47  ;;  %v2616_v9 = vmul.f32 %v5672_v26, %v7053_v27 }
 0x210   : > { %v2563_v33 = vmul.f32 %v3729_v48, %v5654_v3  ;;  %v2782_v41 = vadd.f32 %v2766_v10, %v2737_v22  ;;  %v2437_v23 = vld [vmem:[#allocation2 + $0x24d] sm:$0xff]  ;;  %v2526_v38 = vadd.f32 %v7083_v39, %v2473_v24  ;;  %v2980_v16 = vadd.f32 %v2964_v51, %v2927_v15 }
 0x211   : > { %v3279_v35 = vadd.f32 %v5874_v63, %v3256_v30  ;;  %v6213_v48 = vld [vmem:[#allocation2 + $0x2d0] sm:$0xff]  ;;  %v2368_v13 = vadd.f32 %v2352_v42, %v2315_v54  ;;  %v3130_v51 = vmul.f32 %v5759_v36, %v6024_v34  ;;  %v6219_v53 = vmul.f32 %v5766_v6, %v6118_v62 }
 0x212   : > { %v2827_v14 = vadd.f32 %v2811_v4, %v2782_v41  ;;  %v2490_v22 = vld [vmem:[#allocation2 + $0x24e] sm:$0xff]  ;;  %v2579_v10 = vadd.f32 %v2563_v33, %v2526_v38  ;;  %v3033_v31 = vadd.f32 %v3017_v18, %v2980_v16  ;;  %v2458_v43 = vmul.f32 %v6035_v55, %v2437_v23 }
 0x213   : > { %v2701_v24 = vld [vmem:[#allocation2 + $0x24a] sm:$0xff]  ;;  %3334 = vrot.lane.b32.xlu1 %v3279_v35, %s3849_s23  ;;  %v2421_v4 = vadd.f32 %v2405_v1, %v2368_v13  ;;  %v2669_v42 = vmul.f32 %v5688_v17, %v6148_v28  ;;  %v6228_v38 = vmul.f32 %v5773_v37, %v6213_v48  ;;  %v2511_v33 = vmul.f32 %v6049_v20, %v2490_v22 }
 0x214   : > { %v2872_v27 = vadd.f32 %v2856_v12, %v2827_v14  ;;  %v2632_v30 = vadd.f32 %v2616_v9, %v2579_v10  ;;  %v3089_v18 = vadd.f32 %v6163_v11, %v3033_v31  ;;  %v2564_v15 = vmul.f32 %v5654_v3, %v2891_v58  ;;  %v2892_v41 = vld [vmem:[#allocation2 + $0x267] sm:$0xff]  ;;  %v2702_v10 = vld [vmem:[#allocation2 + $0x252] sm:$0xff] }
 0x215   : > { %v2474_v39 = vadd.f32 %v2458_v43, %v2421_v4  ;;  %v2722_v12 = vmul.f32 %v5703_v19, %v2701_v24  ;;  %v6233_v1 = vld [vmem:[#allocation2 + $0x269] sm:$0xff]  ;;  %v2767_v28 = vmul.f32 %v5711_v49, %v2331_v52  ;;  %v2812_v11 = vmul.f32 %v5716_v7, %v2384_v56  ;;  %v2749_v31 = vld [vmem:[#allocation2 + $0x253] sm:$0xff]  ;;  %v7085_v24 = vld [vmem:[#allocation69_spill] sm:$0xff] }
 0x216   : > { %v2928_v54 = vadd.f32 %v2912_v44, %v2872_v27  ;;  %v2685_v16 = vadd.f32 %v2669_v42, %v2632_v30  ;;  %v3145_v17 = vadd.f32 %v6170_v50, %v3089_v18  ;;  %v2857_v9 = vmul.f32 %v5721_v8, %v2437_v23  ;;  %v6240_v58 = vld [vmem:[#allocation2 + $0x2e8] sm:$0xff]  ;;  %v2280_v43 = vld [vmem:[#allocation2 + $0x251] sm:$0xff]  ;;  %v6268_v30 = vpop.permute.xlu0 %1852 }
 0x217   : > { %v2527_v14 = vadd.f32 %v2511_v33, %v2474_v39  ;;  %v2913_v3 = vmul.f32 %v5730_v5, %v2892_v41  ;;  %7084 = vst [vmem:[#allocation32_spill] sm:$0xff] %v6240_v58  ;;  %v2966_v22 = vmul.f32 %v5735_v25, %v7054_v2  ;;  %v6247_v50 = vmul.f32 %v5744_v57, %v6233_v1  ;;  %v7086_v4 = vld [vmem:[#allocation19_spill] sm:$0xff] }
 0x218   : > { %v2981_v35 = vadd.f32 %v2965_v0, %v2928_v54  ;;  %v2738_v13 = vadd.f32 %v2722_v12, %v2685_v16  ;;  %v3201_v44 = vadd.f32 %v6174_v60, %v3145_v17  ;;  %v6251_v52 = vmul.f32 %v5749_v46, %v5953_v40  ;;  %v2794_v60 = vld [vmem:[#allocation2 + $0x254] sm:$0xff]  ;;  %7087 = vst [vmem:[#allocation29_spill] sm:$0xff] %v6268_v30  ;;  %v6279_v33 = vld [vmem:[#allocation2 + $0x26b] sm:$0xff] }
 0x219   : > { %v2580_v56 = vadd.f32 %v2564_v15, %v2527_v14  ;;  %v2617_v23 = vmul.f32 %v5672_v26, %v5833_v45  ;;  %v6258_v27 = vmul.f32 %v5759_v36, %v7085_v24  ;;  %v6262_v46 = vmul.f32 %v5766_v6, %v7086_v4  ;;  %v2839_v18 = vld [vmem:[#allocation2 + $0x255] sm:$0xff]  ;;  %v7092_v14 = vld [vmem:[#allocation22_spill] sm:$0xff] }
 0x21a   : > { %v3034_v8 = vadd.f32 %v3018_v29, %v2981_v35  ;;  %v2783_v0 = vadd.f32 %v2767_v28, %v2738_v13  ;;  %v3257_v25 = vadd.f32 %v6178_v32, %v3201_v44  ;;  %v6266_v29 = vmul.f32 %v5773_v37, %v6240_v58  ;;  %v6273_v32 = vld [vmem:[%s6799_s1 + $0xd] ss:$0 sm:$0xff]  ;;  %v6277_v6 = vld [vmem:[#allocation2 + $0x26f] sm:$0xff]  ;;  %v7088_v17 = vld [vmem:[#allocation76_spill] sm:$0xff]  ;;  %v6291_v35 = vpop.permute.xlu1 %1854  ;;  %v6305_v44 = vpop.permute.xlu0 %1856 }
 0x21b   : > { %v2633_v42 = vadd.f32 %v2617_v23, %v2580_v56  ;;  %v2670_v36 = vmul.f32 %v6273_v32, %v6195_v21  ;;  %v2723_v15 = vmul.f32 %v5703_v19, %v2702_v10  ;;  %v2813_v41 = vmul.f32 %v5716_v7, %v2794_v60  ;;  %v6285_v12 = vld [vmem:[#allocation2 + $0x271] sm:$0xff]  ;;  %7090 = vst [vmem:[#allocation30_spill] sm:$0xff] %v6291_v35 }
 0x21c   : > { %v3090_v26 = vadd.f32 %v3074_v59, %v3034_v8  ;;  %v2828_v45 = vadd.f32 %v2812_v11, %v2783_v0  ;;  %v3280_v37 = vadd.f32 %v5874_v63, %v3257_v25  ;;  %v2768_v59 = vmul.f32 %v5711_v49, %v2749_v31  ;;  %v7089_v21 = vld [vmem:[#allocation88_spill] sm:$0xff]  ;;  %v6289_v11 = vld [vmem:[#allocation2 + $0x26c] sm:$0xff]  ;;  %7093 = vst [vmem:[#allocation84_spill] sm:$0xff] %v6305_v44 }
 0x21d   : > { %v2686_v16 = vadd.f32 %v2670_v36, %v2633_v42  ;;  %v2211_v28 = vadd.f32 %v7089_v21, %v7088_v17  ;;  %v6297_v19 = vld [vmem:[%s6799_s1 + $0x11] ss:$0 sm:$0xff]  ;;  %v2914_v7 = vmul.f32 %v5730_v5, %v6277_v6  ;;  %v2354_v13 = vmul.f32 %v7092_v14, %v6279_v33  ;;  %v6312_v31 = vld [vmem:[%s6799_s1 + $0x13] ss:$0 sm:$0xff]  ;;  %v6351_v17 = vld [vmem:[%s6799_s1 + $0xb] ss:$0 sm:$0xff] }
 0x21e   : > { %v3146_v54 = vadd.f32 %v3130_v51, %v3090_v26  ;;  %v2873_v39 = vadd.f32 %v2857_v9, %v2828_v45  ;;  %3336 = vrot.lane.b32.xlu0 %v3280_v37, %s3849_s23  ;;  %v2858_v49 = vmul.f32 %v6297_v19, %v2839_v18  ;;  %v7091_v51 = vld [vmem:[#allocation15_spill] sm:$0xff]  ;;  %v2967_v5 = vmul.f32 %v6312_v31, %v5916_v47  ;;  %v6327_v37 = vpop.permute.xlu1 %1858 }
 0x21f   : > { %v2301_v9 = vmul.f32 %v7091_v51, %v2280_v43  ;;  %v2739_v0 = vadd.f32 %v2723_v15, %v2686_v16  ;;  %v7094_v23 = vld [vmem:[#allocation87_spill] sm:$0xff]  ;;  %v6318_v60 = vmul.f32 %v5744_v57, %v6285_v12  ;;  %v2407_v43 = vmul.f32 %v7082_v61, %v6289_v11  ;;  %7097 = vst [vmem:[#allocation13_spill] sm:$0xff] %v6327_v37  ;;  %v3735_v16 = vld [vmem:[#allocation2 + $0x267] sm:$0xff] }
 0x220   : > { %v3202_v8 = vadd.f32 %v6219_v53, %v3146_v54  ;;  %v2929_v56 = vadd.f32 %v2913_v3, %v2873_v39  ;;  %v2264_v10 = vadd.f32 %v7094_v23, %v2211_v28  ;;  %v7095_v53 = vld [vmem:[#allocation83_spill] sm:$0xff]  ;;  %v7096_v3 = vld [vmem:[#allocation86_spill] sm:$0xff]  ;;  %v2565_v21 = vmul.f32 %v6351_v17, %v3735_v16 }
 0x221   : > { %v2475_v25 = vadd.f32 %v7096_v3, %v7095_v53  ;;  %v2784_v42 = vadd.f32 %v2768_v59, %v2739_v0  ;;  %v6325_v36 = vld [vmem:[#allocation2 + $0x2f0] sm:$0xff]  ;;  %v7098_v54 = vld [vmem:[#allocation82_spill] sm:$0xff]  ;;  %v6368_v53 = vld [vmem:[%s6799_s1 + $0x18] ss:$0 sm:$0xff]  ;;  %v2566_v16 = vmul.f32 %v6351_v17, %v6277_v6 }
 0x222   : > { %v3258_v26 = vadd.f32 %v6228_v38, %v3202_v8  ;;  %v2982_v45 = vadd.f32 %v2966_v22, %v2929_v56  ;;  %v2317_v18 = vadd.f32 %v2301_v9, %v2264_v10  ;;  %v6332_v57 = vld [vmem:[%s6799_s1 + $0x15] ss:$0 sm:$0xff]  ;;  %v6341_v38 = vld [vmem:[%s6799_s1 + $0x16] ss:$0 sm:$0xff]  ;;  %v2439_v59 = vld [vmem:[#allocation2 + $0x26d] sm:$0xff] }
 0x223   : > { %v6336_v15 = vmul.f32 %v6332_v57, %v6024_v34  ;;  %v6345_v22 = vmul.f32 %v6341_v38, %v6118_v62  ;;  %v2528_v39 = vadd.f32 %v7098_v54, %v2475_v25  ;;  %v2829_v8 = vadd.f32 %v2813_v41, %v2784_v42  ;;  %v2492_v0 = vld [vmem:[#allocation2 + $0x26e] sm:$0xff]  ;;  %v6359_v23 = vld [vmem:[%s6799_s1 + $0x17] ss:$0 sm:$0xff] }
 0x224   : > { %v3281_v28 = vadd.f32 %v5874_v63, %v3258_v26  ;;  %v3035_v9 = vadd.f32 %v6247_v50, %v2982_v45  ;;  %v2370_v56 = vadd.f32 %v2354_v13, %v2317_v18  ;;  %v6363_v10 = vmul.f32 %v6359_v23, %v6213_v48  ;;  %v6377_v13 = vld [vmem:[%s6799_s1 + $0xc] ss:$0 sm:$0xff]  ;;  %v6381_v26 = vpop.permute.xlu0 %1860 }
 0x225   : > { %v6372_v50 = vmul.f32 %v6368_v53, %v6325_v36  ;;  %v2581_v41 = vadd.f32 %v2565_v21, %v2528_v39  ;;  %v2618_v3 = vmul.f32 %v6377_v13, %v7054_v2  ;;  %v2703_v25 = vld [vmem:[#allocation2 + $0x26a] sm:$0xff]  ;;  %7099 = vst [vmem:[#allocation18_spill] sm:$0xff] %v6381_v26  ;;  %v2874_v42 = vadd.f32 %v2858_v49, %v2829_v8 }
 0x226   : > { %3338 = vrot.lane.b32.xlu1 %v3281_v28, %s3849_s23  ;;  %v3091_v45 = vadd.f32 %v6251_v52, %v3035_v9  ;;  %v2423_v18 = vadd.f32 %v2407_v43, %v2370_v56  ;;  %v2460_v54 = vmul.f32 %v6035_v55, %v2439_v59  ;;  %v2513_v39 = vmul.f32 %v6049_v20, %v2492_v0  ;;  %v2894_v37 = vld [vmem:[#allocation2 + $0x287] sm:$0xff]  ;;  %v6400_v9 = vpop.permute.xlu1 %1862 }
 0x227   : > { %v2634_v21 = vadd.f32 %v2618_v3, %v2581_v41  ;;  %v2671_v2 = vmul.f32 %v6273_v32, %v6233_v1  ;;  %v2930_v44 = vadd.f32 %v2914_v7, %v2874_v42  ;;  %v6395_v52 = vld [vmem:[%s6799_s1 + $0xe] ss:$0 sm:$0xff]  ;;  %7100 = vst [vmem:[#allocation93_spill] sm:$0xff] %v6400_v9  ;;  %v6405_v1 = vld [vmem:[%s6799_s1 + $0xf] ss:$0 sm:$0xff]  ;;  %v2859_v56 = vmul.f32 %v6297_v19, %v2439_v59 }
 0x228   : > { %v3147_v26 = vadd.f32 %v6258_v27, %v3091_v45  ;;  %v2476_v28 = vadd.f32 %v2460_v54, %v2423_v18  ;;  %v2724_v49 = vmul.f32 %v6395_v52, %v2703_v25  ;;  %v6398_v43 = vld [vmem:[#allocation2 + $0x289] sm:$0xff]  ;;  %v2769_v27 = vmul.f32 %v6405_v1, %v6279_v33  ;;  %v6421_v25 = vld [vmem:[%s6799_s1 + $0x12] ss:$0 sm:$0xff] }
 0x229   : > { %v2687_v6 = vadd.f32 %v2671_v2, %v2634_v21  ;;  %v6412_v7 = vld [vmem:[%s6799_s1 + $0x10] ss:$0 sm:$0xff]  ;;  %v2983_v41 = vadd.f32 %v2967_v5, %v2930_v44  ;;  %v2915_v33 = vmul.f32 %v6421_v25, %v2894_v37  ;;  %v6424_v45 = vld [vmem:[#allocation2 + $0x308] sm:$0xff]  ;;  %v2968_v18 = vmul.f32 %v6312_v31, %v5953_v40  ;;  %v6441_v5 = vpop.permute.xlu0 %1864  ;;  %v2750_v21 = vld [vmem:[#allocation2 + $0x273] sm:$0xff] }
 0x22a   : > { %v2814_v8 = vmul.f32 %v6412_v7, %v6289_v11  ;;  %v3203_v0 = vadd.f32 %v6262_v46, %v3147_v26  ;;  %v2529_v3 = vadd.f32 %v2513_v39, %v2476_v28  ;;  %7101 = vst [vmem:[#allocation21_spill] sm:$0xff] %v6424_v45  ;;  %v6431_v11 = vld [vmem:[%s6799_s1 + $0x14] ss:$0 sm:$0xff]  ;;  %v6439_v44 = vmul.f32 %v6332_v57, %v7085_v24 }
 0x22b   : > { %v2740_v42 = vadd.f32 %v2724_v49, %v2687_v6  ;;  %v6435_v46 = vmul.f32 %v6431_v11, %v6398_v43  ;;  %7102 = vst [vmem:[#allocation28_spill] sm:$0xff] %v6441_v5  ;;  %v3036_v59 = vadd.f32 %v6318_v60, %v2983_v41  ;;  %v2619_v54 = vmul.f32 %v6377_v13, %v5916_v47  ;;  %v2704_v39 = vld [vmem:[#allocation2 + $0x272] sm:$0xff] }
 0x22c   : > { %v3259_v37 = vadd.f32 %v6266_v29, %v3203_v0  ;;  %v2582_v26 = vadd.f32 %v2566_v16, %v2529_v3  ;;  %v2795_v2 = vld [vmem:[#allocation2 + $0x274] sm:$0xff]  ;;  %v6449_v6 = vmul.f32 %v6341_v38, %v7086_v4  ;;  %v6453_v5 = vmul.f32 %v6359_v23, %v6240_v58  ;;  %v6463_v3 = vld [vmem:[#allocation2 + $0x28b] sm:$0xff] }
 0x22d   : > { %v2282_v28 = vld [vmem:[#allocation2 + $0x271] sm:$0xff]  ;;  %v2785_v49 = vadd.f32 %v2769_v27, %v2740_v42  ;;  %v6457_v29 = vmul.f32 %v6368_v53, %v6424_v45  ;;  %v3092_v47 = vadd.f32 %v6336_v15, %v3036_v59  ;;  %v2672_v27 = vmul.f32 %v6273_v32, %v6285_v12  ;;  %v6465_v42 = vpop.permute.xlu1 %1866  ;;  %v7104_v12 = vld [vmem:[#allocation89_spill] sm:$0xff] }
 0x22e   : > { %v3282_v60 = vadd.f32 %v5874_v63, %v3259_v37  ;;  %v2635_v16 = vadd.f32 %v2619_v54, %v2582_v26  ;;  %v2840_v0 = vld [vmem:[#allocation2 + $0x275] sm:$0xff]  ;;  %7103 = vst [vmem:[#allocation25_spill] sm:$0xff] %v6465_v42  ;;  %v2725_v35 = vmul.f32 %v6395_v52, %v2704_v39  ;;  %v2770_v45 = vmul.f32 %v6405_v1, %v2750_v21  ;;  %v2546_v63 = vld [vmem:[#allocation2 + $0x287] sm:$0xff] }
 0x22f   : > { %v2895_v41 = vld [vmem:[#allocation2 + $0x28f] sm:$0xff]  ;;  %v2830_v9 = vadd.f32 %v2814_v8, %v2785_v49  ;;  %v2815_v30 = vmul.f32 %v6412_v7, %v2795_v2  ;;  %v3148_v15 = vadd.f32 %v6345_v22, %v3092_v47  ;;  %v7105_v59 = vld [vmem:[#allocation85_spill] sm:$0xff]  ;;  %v2303_v54 = vmul.f32 %v7091_v51, %v2282_v28  ;;  %v6479_v2 = vpop.permute.xlu0 %1868  ;;  %v7108_v51 = vld [vmem:[#allocation20_spill] sm:$0xff] }
 0x230   : > { %3340 = vrot.lane.b32.xlu0 %v3282_v60, %s3849_s23  ;;  %v2688_v37 = vadd.f32 %v2672_v27, %v2635_v16  ;;  %v2213_v26 = vadd.f32 %v7105_v59, %v7104_v12  ;;  %v2388_v58 = vld [vmem:[#allocation2 + $0x28c] sm:$0xff]  ;;  %v2860_v8 = vmul.f32 %v6297_v19, %v2840_v0  ;;  %v2916_v39 = vmul.f32 %v6421_v25, %v2895_v41  ;;  %v7107_v47 = vld [vmem:[#allocation81_spill] sm:$0xff] }
 0x231   : > { %v2875_v42 = vadd.f32 %v2859_v56, %v2830_v9  ;;  %v2356_v21 = vmul.f32 %v7092_v14, %v6463_v3  ;;  %7106 = vst [vmem:[#allocation37_spill] sm:$0xff] %v6479_v2  ;;  %v3204_v49 = vadd.f32 %v6363_v10, %v3148_v15  ;;  %v6482_v60 = vld [vmem:[#allocation2 + $0x291] sm:$0xff]  ;;  %v7109_v28 = vld [vmem:[#allocation10_spill] sm:$0xff]  ;;  %v2969_v0 = vmul.f32 %v6312_v31, %v6024_v34  ;;  %v6493_v2 = vpop.permute.xlu1 %1870 }
 0x232   : > { %v2741_v22 = vadd.f32 %v2725_v35, %v2688_v37  ;;  %v2266_v16 = vadd.f32 %v7107_v47, %v2213_v26  ;;  %v2441_v27 = vld [vmem:[#allocation2 + $0x28d] sm:$0xff]  ;;  %v2477_v9 = vadd.f32 %v7109_v28, %v7108_v51  ;;  %v2409_v12 = vmul.f32 %v7082_v61, %v2388_v58  ;;  %v6503_v61 = vld [vmem:[%s6800_s2] ss:$0 sm:$0xff] }
 0x233   : > { %v2931_v56 = vadd.f32 %v2915_v33, %v2875_v42  ;;  %v2567_v14 = vmul.f32 %v6351_v17, %v2546_v63  ;;  %v3260_v59 = vadd.f32 %v6372_v50, %v3204_v49  ;;  %v7110_v15 = vld [vmem:[#allocation11_spill] sm:$0xff]  ;;  %v3022_v47 = vmul.f32 %v6431_v11, %v6482_v60  ;;  %v6517_v28 = vpop.permute.xlu0 %1872 }
 0x234   : > { %v2786_v10 = vadd.f32 %v2770_v45, %v2741_v22  ;;  %v2319_v35 = vadd.f32 %v2303_v54, %v2266_v16  ;;  %v2530_v37 = vadd.f32 %v7110_v15, %v2477_v9  ;;  %v2462_v33 = vmul.f32 %v6035_v55, %v2441_v27  ;;  %v6506_v63 = vld [vmem:[#allocation2 + $0x310] sm:$0xff] }
 0x235   : > { %v2984_v26 = vadd.f32 %v2968_v18, %v2931_v56  ;;  %v2620_v42 = vmul.f32 %v6377_v13, %v5953_v40  ;;  %v3283_v50 = vadd.f32 %v6503_v61, %v3260_v59  ;;  %v2494_v18 = vld [vmem:[#allocation2 + $0x28e] sm:$0xff]  ;;  %v3078_v55 = vmul.f32 %v6332_v57, %v6118_v62 }
 0x236   : > { %v2831_v45 = vadd.f32 %v2815_v30, %v2786_v10  ;;  %v2372_v54 = vadd.f32 %v2356_v21, %v2319_v35  ;;  %v2583_v49 = vadd.f32 %v2567_v14, %v2530_v37  ;;  %v3134_v40 = vmul.f32 %v6341_v38, %v6213_v48  ;;  %v2705_v51 = vld [vmem:[#allocation2 + $0x28a] sm:$0xff] }
 0x237   : > { %v3037_v22 = vadd.f32 %v6435_v46, %v2984_v26  ;;  %v6515_v16 = vmul.f32 %v6359_v23, %v6325_v36  ;;  %3342 = vrot.lane.b32.xlu1 %v3283_v50, %s3849_s23  ;;  %v2673_v46 = vmul.f32 %v6273_v32, %v6398_v43  ;;  %v6525_v14 = vmul.f32 %v6368_v53, %v6506_v63  ;;  %v2896_v35 = vld [vmem:[#allocation2 + $0x2a7] sm:$0xff] }
 0x238   : > { %v2876_v30 = vadd.f32 %v2860_v8, %v2831_v45  ;;  %v2425_v21 = vadd.f32 %v2409_v12, %v2372_v54  ;;  %v2636_v9 = vadd.f32 %v2620_v42, %v2583_v49  ;;  %v2515_v59 = vmul.f32 %v6049_v20, %v2494_v18  ;;  %v3002_v12 = vld [vmem:[#allocation2 + $0x2a9] sm:$0xff]  ;;  %v6530_v42 = vpop.permute.xlu1 %1874 }
 0x239   : > { %v3093_v56 = vadd.f32 %v6439_v44, %v3037_v22  ;;  %v2568_v10 = vmul.f32 %v6351_v17, %v2895_v41  ;;  %v2726_v8 = vmul.f32 %v6395_v52, %v2705_v51  ;;  %v2771_v44 = vmul.f32 %v6405_v1, %v6463_v3  ;;  %v2751_v3 = vld [vmem:[#allocation2 + $0x293] sm:$0xff] }
 0x23a   : > { %v2932_v15 = vadd.f32 %v2916_v39, %v2876_v30  ;;  %v2478_v37 = vadd.f32 %v2462_v33, %v2425_v21  ;;  %v2689_v26 = vadd.f32 %v2673_v46, %v2636_v9  ;;  %v2816_v50 = vmul.f32 %v6412_v7, %v2388_v58  ;;  %v2706_v33 = vld [vmem:[#allocation2 + $0x292] sm:$0xff] }
 0x23b   : > { %v3149_v43 = vadd.f32 %v6449_v6, %v3093_v56  ;;  %v2861_v20 = vmul.f32 %v6297_v19, %v2441_v27  ;;  %v2917_v39 = vmul.f32 %v6421_v25, %v2896_v35  ;;  %v6541_v18 = vmul.f32 %v6312_v31, %v7085_v24  ;;  %v6550_v27 = vpop.permute.xlu0 %1876  ;;  %v2796_v22 = vld [vmem:[#allocation2 + $0x294] sm:$0xff] }
 0x23c   : > { %v2985_v45 = vadd.f32 %v2969_v0, %v2932_v15  ;;  %v2531_v17 = vadd.f32 %v2515_v59, %v2478_v37  ;;  %v2742_v41 = vadd.f32 %v2726_v8, %v2689_v26  ;;  %v6544_v6 = vmul.f32 %v6431_v11, %v3002_v12  ;;  %v2841_v51 = vld [vmem:[#allocation2 + $0x295] sm:$0xff]  ;;  %v6566_v15 = vpop.permute.xlu1 %1878 }
 0x23d   : > { %v3205_v54 = vadd.f32 %v6453_v5, %v3149_v43  ;;  %v6548_v58 = vmul.f32 %v6332_v57, %v7086_v4  ;;  %v2621_v24 = vmul.f32 %v6377_v13, %v6024_v34  ;;  %v2897_v30 = vld [vmem:[#allocation2 + $0x2af] sm:$0xff]  ;;  %v7111_v9 = vld [vmem:[#allocation32_spill] sm:$0xff]  ;;  %v2727_v46 = vmul.f32 %v6395_v52, %v2706_v33  ;;  %v1820_v13 = vld [vmem:[%s3983_s11] sm:$0xff] }
 0x23e   : > { %v3038_v0 = vadd.f32 %v3022_v47, %v2985_v45  ;;  %v2584_v49 = vadd.f32 %v2568_v10, %v2531_v17  ;;  %v2787_v5 = vadd.f32 %v2771_v44, %v2742_v41  ;;  %v6557_v4 = vmul.f32 %v6341_v38, %v7111_v9  ;;  %v1822_v35 = vld [vmem:[%s3983_s11 + $0x10] sm:$0xff]  ;;  %v1825_v43 = vld [vmem:[%s3983_s11 + $0x28] sm:$0xff]  ;;  %v1828_v17 = vld [vmem:[%s3983_s11 + $0x40] sm:$0xff] }
 0x23f   : > { %v3261_v21 = vadd.f32 %v6457_v29, %v3205_v54  ;;  %v2674_v47 = vmul.f32 %v6273_v32, %v6482_v60  ;;  %v2772_v34 = vmul.f32 %v6405_v1, %v2751_v3  ;;  %v1821_v29 = vld [vmem:[%s3983_s11 + $0x8] sm:$0xff]  ;;  %v2817_v26 = vmul.f32 %v6412_v7, %v2796_v22  ;;  %v1823_v1 = vld [vmem:[%s3983_s11 + $0x18] sm:$0xff]  ;;  %v1824_v60 = vld [vmem:[%s3983_s11 + $0x20] sm:$0xff]  ;;  %v1881_v33 = vpop.permute.xlu0 %1880 }
 0x240   : > { %v3094_v56 = vadd.f32 %v3078_v55, %v3038_v0  ;;  %v2832_v59 = vadd.f32 %v2816_v50, %v2787_v5  ;;  %v2637_v10 = vadd.f32 %v2621_v24, %v2584_v49  ;;  %v6571_v32 = vmul.f32 %v6297_v19, %v2841_v51  ;;  %v1826_v44 = vld [vmem:[%s3983_s11 + $0x30] sm:$0xff]  ;;  %v1827_v50 = vld [vmem:[%s3983_s11 + $0x38] sm:$0xff]  ;;  %v7112_v19 = vld [vmem:[#allocation29_spill] sm:$0xff] }
 0x241   : > { %v3284_v37 = vadd.f32 %v6503_v61, %v3261_v21  ;;  %v6574_v52 = vmul.f32 %v6421_v25, %v2897_v30  ;;  %v1901_v7 = vsel %vm1900_vm2, %v1820_v13, %v7112_v19  ;;  %v7113_v25 = vld [vmem:[#allocation30_spill] sm:$0xff]  ;;  %v7115_v49 = vld [vmem:[#allocation13_spill] sm:$0xff]  ;;  %v1831_v5 = vld [vmem:[%s3983_s11 + $0x58] sm:$0xff] }
 0x242   : > { %v3150_v55 = vadd.f32 %v3134_v40, %v3094_v56  ;;  %v2877_v8 = vadd.f32 %v2861_v20, %v2832_v59  ;;  %v2690_v12 = vadd.f32 %v2674_v47, %v2637_v10  ;;  %v1902_v45 = vsel %vm1900_vm2, %v1821_v29, %v7113_v25  ;;  %v7114_v40 = vld [vmem:[#allocation84_spill] sm:$0xff]  ;;  %v1829_v41 = vld [vmem:[%s3983_s11 + $0x48] sm:$0xff]  ;;  %1919 = vst.msk [vmem:[%s6593_s30] sm:$0xff] %vm1918_vm3, %v1901_v7  ;;  %v1832_v24 = vld [vmem:[%s3983_s11 + $0x60] sm:$0xff] }
 0x243   : > { %3344 = vrot.lane.b32.xlu0 %v3284_v37, %s3849_s23  ;;  %v1903_v20 = vsel %vm1900_vm2, %v1822_v35, %v7114_v40  ;;  %1920 = vst.msk [vmem:[%s6593_s30 + $0x8] sm:$0xff] %vm1918_vm3, %v1902_v45  ;;  %v7116_v22 = vld [vmem:[#allocation18_spill] sm:$0xff]  ;;  %v7117_v30 = vld [vmem:[#allocation93_spill] sm:$0xff]  ;;  %v7118_v9 = vld [vmem:[#allocation28_spill] sm:$0xff] }
 0x244   : > { %v3206_v54 = vadd.f32 %v6515_v16, %v3150_v55  ;;  %v2933_v3 = vadd.f32 %v2917_v39, %v2877_v8  ;;  %v2743_v0 = vadd.f32 %v2727_v46, %v2690_v12  ;;  %1921 = vst.msk [vmem:[%s6593_s30 + $0x10] sm:$0xff] %vm1918_vm3, %v1903_v20  ;;  %v1904_v16 = vsel %vm1900_vm2, %v1823_v1, %v7115_v49  ;;  %v1830_v39 = vld [vmem:[%s3983_s11 + $0x50] sm:$0xff]  ;;  %v7119_v46 = vld [vmem:[#allocation25_spill] sm:$0xff]  ;;  %v1833_v59 = vld [vmem:[%s3983_s11 + $0x68] sm:$0xff] }
 0x245   : > { %1922 = vst.msk [vmem:[%s6593_s30 + $0x18] sm:$0xff] %vm1918_vm3, %v1904_v16  ;;  %v1905_v51 = vsel %vm1900_vm2, %v1824_v60, %v7116_v22  ;;  %v1906_v21 = vsel %vm1900_vm2, %v1825_v43, %v7117_v30  ;;  %v1907_v47 = vsel %vm1900_vm2, %v1826_v44, %v7118_v9  ;;  %v1908_v56 = vsel %vm1900_vm2, %v1827_v50, %v7119_v46  ;;  %v7120_v35 = vld [vmem:[#allocation37_spill] sm:$0xff]  ;;  %v1835_v1 = vld [vmem:[%s3983_s11 + $0x78] sm:$0xff]  ;;  %v1883_v60 = vpop.permute.xlu1 %1882  ;;  %v3227_v49 = vld [vmem:[#allocation2 + $0x330] sm:$0xff] }
 0x246   : > { %v3262_v10 = vadd.f32 %v6525_v14, %v3206_v54  ;;  %v2986_v13 = vadd.f32 %v6541_v18, %v2933_v3  ;;  %v2788_v29 = vadd.f32 %v2772_v34, %v2743_v0  ;;  %1923 = vst.msk [vmem:[%s6593_s30 + $0x20] sm:$0xff] %vm1918_vm3, %v1905_v51  ;;  %1924 = vst.msk [vmem:[%s6593_s30 + $0x28] sm:$0xff] %vm1918_vm3, %v1906_v21  ;;  %v1834_v14 = vld [vmem:[%s3983_s11 + $0x70] sm:$0xff]  ;;  %v3588_v12 = vld [vmem:[%s3983_s11 + $0x80] sm:$0xff] }
 0x247   : > { %1925 = vst.msk [vmem:[%s6593_s30 + $0x30] sm:$0xff] %vm1918_vm3, %v1907_v47  ;;  %1926 = vst.msk [vmem:[%s6593_s30 + $0x38] sm:$0xff] %vm1918_vm3, %v1908_v56  ;;  %v1909_v37 = vsel %vm1900_vm2, %v1828_v17, %v7120_v35  ;;  %v1910_v18 = vsel %vm1900_vm2, %v1829_v41, %v6493_v2  ;;  %v1911_v34 = vsel %vm1900_vm2, %v1830_v39, %v6517_v28  ;;  %v7121_v28 = vld [vmem:[#allocation21_spill] sm:$0xff]  ;;  %v3593_v9 = vld [vmem:[%s3983_s11 + $0xa8] sm:$0xff] }
 0x248   : > { %1927 = vst.msk [vmem:[%s6593_s30 + $0x40] sm:$0xff] %vm1918_vm3, %v1909_v37  ;;  %v1912_v55 = vsel %vm1900_vm2, %v1831_v5, %v6530_v42  ;;  %v1913_v8 = vsel %vm1900_vm2, %v1832_v24, %v6550_v27  ;;  %v3285_v43 = vadd.f32 %v6503_v61, %v3262_v10  ;;  %v3039_v44 = vadd.f32 %v6544_v6, %v2986_v13  ;;  %v3226_v27 = vld [vmem:[#allocation2 + $0x328] sm:$0xff]  ;;  %v3003_v6 = vld [vmem:[#allocation2 + $0x2b1] sm:$0xff]  ;;  %v3321_v7 = vpop.permute.xlu0 %3320  ;;  %v3592_v30 = vld [vmem:[%s3983_s11 + $0xa0] sm:$0xff] }
 0x249   : > { %v2833_v50 = vadd.f32 %v2817_v26, %v2788_v29  ;;  %1928 = vst.msk [vmem:[%s6593_s30 + $0x48] sm:$0xff] %vm1918_vm3, %v1910_v18  ;;  %1929 = vst.msk [vmem:[%s6593_s30 + $0x50] sm:$0xff] %vm1918_vm3, %v1911_v34  ;;  %v1914_v2 = vsel %vm1900_vm2, %v1833_v59, %v6566_v15  ;;  %v3191_v42 = vmul.f32 %v6359_v23, %v7121_v28  ;;  %v3590_v5 = vld [vmem:[%s3983_s11 + $0x90] sm:$0xff]  ;;  %v3595_v13 = vld [vmem:[%s3983_s11 + $0xb8] sm:$0xff] }
 0x24a   : > { %1930 = vst.msk [vmem:[%s6593_s30 + $0x58] sm:$0xff] %vm1918_vm3, %v1912_v55  ;;  %1931 = vst.msk [vmem:[%s6593_s30 + $0x60] sm:$0xff] %vm1918_vm3, %v1913_v8  ;;  %v1915_v26 = vsel %vm1900_vm2, %v1834_v14, %v1881_v33  ;;  %v1916_v19 = vsel %vm1900_vm2, %v1835_v1, %v1883_v60  ;;  %3346 = vrot.lane.b32.xlu1 %v3285_v43, %s3849_s23  ;;  %v3095_v25 = vadd.f32 %v6548_v58, %v3039_v44  ;;  %v3594_v56 = vld [vmem:[%s3983_s11 + $0xb0] sm:$0xff] }
 0x24b   : > { %1932 = vst.msk [vmem:[%s6593_s30 + $0x68] sm:$0xff] %vm1918_vm3, %v1914_v2  ;;  %v2878_v45 = vadd.f32 %v6571_v32, %v2833_v50  ;;  %v2971_v15 = vmul.f32 %v6312_v31, %v6118_v62  ;;  %1933 = vst.msk [vmem:[%s6593_s30 + $0x70] sm:$0xff] %vm1918_vm3, %v1915_v26  ;;  %v3368_v40 = vsel %vm1900_vm2, %v3588_v12, %v3321_v7  ;;  %v3589_v31 = vld [vmem:[%s3983_s11 + $0x88] sm:$0xff]  ;;  %v3596_v37 = vld [vmem:[%s3983_s11 + $0xc0] sm:$0xff] }
 0x24c   : > { %1934 = vst.msk [vmem:[%s6593_s30 + $0x78] sm:$0xff] %vm1918_vm3, %v1916_v19  ;;  %3604 = vst.msk [vmem:[%s6593_s30 + $0x80] sm:$0xff] %vm1918_vm3, %v3368_v40  ;;  %v3151_v20 = vadd.f32 %v6557_v4, %v3095_v25  ;;  %v3247_v17 = vmul.f32 %v6368_v53, %v3226_v27  ;;  %v3024_v32 = vmul.f32 %v6431_v11, %v3003_v6  ;;  %v3597_v60 = vld [vmem:[%s3983_s11 + $0xc8] sm:$0xff]  ;;  %v3598_v55 = vld [vmem:[%s3983_s11 + $0xd0] sm:$0xff] }
 0x24d   : > { %v2934_v58 = vadd.f32 %v6574_v52, %v2878_v45  ;;  %v3080_v62 = vmul.f32 %v6332_v57, %v6213_v48  ;;  %v3136_v0 = vmul.f32 %v6341_v38, %v6325_v36  ;;  %v3192_v39 = vmul.f32 %v6359_v23, %v6506_v63  ;;  %v3591_v63 = vld [vmem:[%s3983_s11 + $0x98] sm:$0xff]  ;;  %v3600_v2 = vld [vmem:[%s3983_s11 + $0xe0] sm:$0xff]  ;;  %v3601_v27 = vld [vmem:[%s3983_s11 + $0xe8] sm:$0xff] }
 0x24e   : > { %v3207_v41 = vadd.f32 %v3191_v42, %v3151_v20  ;;  %v3323_v4 = vpop.permute.xlu1 %3322  ;;  %v3248_v36 = vmul.f32 %v6368_v53, %v3227_v49  ;;  %v3599_v43 = vld [vmem:[%s3983_s11 + $0xd8] sm:$0xff]  ;;  %v3602_v19 = vld [vmem:[%s3983_s11 + $0xf0] sm:$0xff] }
 0x24f   : > { %v2987_v33 = vadd.f32 %v2971_v15, %v2934_v58  ;;  %v3369_v16 = vsel %vm1900_vm2, %v3589_v31, %v3323_v4  ;;  %v3603_v45 = vld [vmem:[%s3983_s11 + $0xf8] sm:$0xff]  ;;  %s3780_s11 = sshll.u32 %s3850_s16, 4  ;;  %s3781_s11 = int_to_ptr.vmem [resolvable:$false] %s3780_s11 }
 0x250   : > { %v3263_v54 = vadd.f32 %v3247_v17, %v3207_v41  ;;  %3605 = vst.msk [vmem:[%s6593_s30 + $0x88] sm:$0xff] %vm1918_vm3, %v3369_v16  ;;  %s3782_s17 = scalar_lea.vmem %s3781_s11, 8192 }
 0x251   : > { %v3040_v3 = vadd.f32 %v3024_v32, %v2987_v33 }
 0x252   : > { %v3286_v11 = vadd.f32 %v6503_v61, %v3263_v54 }
 0x253   : > { %v3096_v52 = vadd.f32 %v3080_v62, %v3040_v3 }
 0x254   : > { %3348 = vrot.lane.b32.xlu0 %v3286_v11, %s3849_s23 }
 0x255   : > { %v3152_v48 = vadd.f32 %v3136_v0, %v3096_v52 }
 0x257   : > { %v3208_v57 = vadd.f32 %v3192_v39, %v3152_v48 }
 0x259   : > { %v3264_v38 = vadd.f32 %v3248_v36, %v3208_v57  ;;  %v3325_v22 = vpop.permute.xlu0 %3324 }
 0x25a   : > { %v3370_v23 = vsel %vm1900_vm2, %v3590_v5, %v3325_v22 }
 0x25b   : > { %v3287_v24 = vadd.f32 %v6503_v61, %v3264_v38  ;;  %3606 = vst.msk [vmem:[%s6593_s30 + $0x90] sm:$0xff] %vm1918_vm3, %v3370_v23 }
 0x25d   : > { %3350 = vrot.lane.b32.xlu1 %v3287_v24, %s3849_s23  ;;  %s3415_s23 = sshll.u32 %s6593_s30, 4  ;;  %s6751_s23 = int_to_ptr.vmem [resolvable:$true] %s3415_s23 }
 0x25e   : > { %s3776_s8 = scalar_lea.vmem %s6751_s23, 4096  ;;  %p3783_p8 = scmp.lt.s32.totalorder %s6751_s23, %s3781_s11 }
 0x25f   : > { %p3777_p6 = scmp.ne.s32.totalorder %s6751_s23, %s3776_s8  ;;  %p3784_p10 = scmp.lt.s32.totalorder %s3782_s17, %s3776_s8 }
 0x261   : > { %v3327_v53 = vpop.permute.xlu1 %3326  ;;  %p3778_p12 = pnand %p3777_p6, %p7122_p11  ;;  %p3785_p0 = por %p3784_p10, %p3783_p8 }
 0x262   : > { %v3371_v51 = vsel %vm1900_vm2, %v3591_v63, %v3327_v53 }
 0x263   : > { %3607 = vst.msk [vmem:[%s6593_s30 + $0x98] sm:$0xff] %vm1918_vm3, %v3371_v51  ;;  %p3779_p13 = pneg %p3778_p12 }
 0x265   : > { %p3786_p2 = pnand %p3785_p0, %p3779_p13 }
 0x26c   : > { %v3329_v61 = vpop.permute.xlu0 %3328 }
 0x26d   : > { %v3372_v21 = vsel %vm1900_vm2, %v3592_v30, %v3329_v61 }
 0x26e   : > { %3608 = vst.msk [vmem:[%s6593_s30 + $0xa0] sm:$0xff] %vm1918_vm3, %v3372_v21 }
 0x273   : > { %v3331_v47 = vpop.permute.xlu1 %3330 }
 0x274   : > { %v3373_v46 = vsel %vm1900_vm2, %v3593_v9, %v3331_v47 }
 0x275   : > { %3609 = vst.msk [vmem:[%s6593_s30 + $0xa8] sm:$0xff] %vm1918_vm3, %v3373_v46 }
 0x27d   : > { %v3333_v59 = vpop.permute.xlu0 %3332 }
 0x27e   : > { %v3374_v10 = vsel %vm1900_vm2, %v3594_v56, %v3333_v59 }
 0x27f   : > { %3610 = vst.msk [vmem:[%s6593_s30 + $0xb0] sm:$0xff] %vm1918_vm3, %v3374_v10 }
 0x285   : > { %v3335_v29 = vpop.permute.xlu1 %3334 }
 0x286   : > { %v3375_v35 = vsel %vm1900_vm2, %v3595_v13, %v3335_v29 }
 0x287   : > { %3611 = vst.msk [vmem:[%s6593_s30 + $0xb8] sm:$0xff] %vm1918_vm3, %v3375_v35 }
 0x290   : > { %v3337_v14 = vpop.permute.xlu0 %3336 }
 0x291   : > { %v3376_v1 = vsel %vm1900_vm2, %v3596_v37, %v3337_v14 }
 0x292   : > { %3612 = vst.msk [vmem:[%s6593_s30 + $0xc0] sm:$0xff] %vm1918_vm3, %v3376_v1 }
 0x298   : > { %v3339_v18 = vpop.permute.xlu1 %3338 }
 0x299   : > { %v3377_v34 = vsel %vm1900_vm2, %v3597_v60, %v3339_v18 }
 0x29a   : > { %3613 = vst.msk [vmem:[%s6593_s30 + $0xc8] sm:$0xff] %vm1918_vm3, %v3377_v34 }
 0x2a2   : > { %v3341_v8 = vpop.permute.xlu0 %3340 }
 0x2a3   : > { %v3378_v12 = vsel %vm1900_vm2, %v3598_v55, %v3341_v8 }
 0x2a4   : > { %3614 = vst.msk [vmem:[%s6593_s30 + $0xd0] sm:$0xff] %vm1918_vm3, %v3378_v12 }
 0x2a9   : > { %v3343_v44 = vpop.permute.xlu1 %3342 }
 0x2aa   : > { %v3379_v50 = vsel %vm1900_vm2, %v3599_v43, %v3343_v44 }
 0x2ab   : > { %3615 = vst.msk [vmem:[%s6593_s30 + $0xd8] sm:$0xff] %vm1918_vm3, %v3379_v50 }
 0x2b5   : > { %v3345_v28 = vpop.permute.xlu0 %3344 }
 0x2b6   : > { %v3380_v42 = vsel %vm1900_vm2, %v3600_v2, %v3345_v28 }
 0x2b7   : > { %3616 = vst.msk [vmem:[%s6593_s30 + $0xe0] sm:$0xff] %vm1918_vm3, %v3380_v42 }
 0x2bc   : > { %v3347_v6 = vpop.permute.xlu1 %3346 }
 0x2bd   : > { %v3381_v26 = vsel %vm1900_vm2, %v3601_v27, %v3347_v6 }
 0x2be   : > { %3617 = vst.msk [vmem:[%s6593_s30 + $0xe8] sm:$0xff] %vm1918_vm3, %v3381_v26 }
 0x2c6   : > { %v3349_v7 = vpop.permute.xlu0 %3348 }
 0x2c7   : > { %v3382_v25 = vsel %vm1900_vm2, %v3602_v19, %v3349_v7 }
 0x2c8   : > { %3618 = vst.msk [vmem:[%s6593_s30 + $0xf0] sm:$0xff] %vm1918_vm3, %v3382_v25 }
 0x2cf   : > { %v3351_v15 = vpop.permute.xlu1 %3350 }
 0x2d0   : > { %v3383_v40 = vsel %vm1900_vm2, %v3603_v45, %v3351_v15 }
 0x2d1   : > { %3619 = vst.msk [vmem:[%s6593_s30 + $0xf8] sm:$0xff] %vm1918_vm3, %v3383_v40 }
 0x2d2   : > { %3789 = shalt.err (!%p3786_p2)
}
 0x2d3   : > { %s3790_s19 = scalar_lea.hbm %s6749_s6, 4096  ;;  %s3794_s26 = scalar_lea.hbm %s6801_s3, 8192 }
 0x2d4   : > { %p3791_p4 = scmp.ne.s32.totalorder %s6749_s6, %s3790_s19  ;;  %p3795_p9 = scmp.lt.u32.totalorder %s6749_s6, %s6801_s3 }
 0x2d5   : > { %p3796_p1 = scmp.lt.u32.totalorder %s3794_s26, %s3790_s19  ;;  %p3798_p6 = scmp.lt.u32.totalorder %s3790_s19, %s6749_s6 }
 0x2d6   : > { %p3792_p5 = pnand %p3791_p4, %p7122_p11 }
 0x2d7   : > { %p3797_p3 = por %p3796_p1, %p3795_p9 }
 0x2d8   : > { %p3793_p7 = pneg %p3792_p5 }
 0x2d9   : > { %p3799_p12 = por %p3798_p6, %p3797_p3 }
 0x2db   : > { %p3800_p13 = pnand %p3799_p12, %p3793_p7 }
 0x2dd   : > { %3803 = shalt.err (!%p3800_p13)
}
 0x2de   : > { %s3851_s29 = smov 128   ;;  %s3852_s30 = smov 8  }
 0x2df   : > { %3629 = dma.vmem_to_hbm [thread:$0]  (%p7122_p11), %s6751_s23, 4096, %s6749_s6, %s3402_s7, %s3851_s29, %s3851_s29, %s3852_s30  }
 0x2e0 PF: > { %s3430_s9 = sand.u32 1, %s3830_s12   ;;  %p7123_p8 = scmp.ne.s32.totalorder %s6859_s25, 0 }
 0x2e1   : > { %p7124_p10 = scmp.ge.s32.totalorder %s3842_s15, 2  ;;  %s3431_s10 = scalar_lea.sflag [#allocation5], %s3430_s9 }
 0x2e3   : > { %p3636_p0 = pnand %p7124_p10, %p7123_p8 }
 0x2e5   : > { %3825 = dma.done.wait (!%p3636_p0), %s3431_s10, 4096  }
 0x2e6   : > { %3827 = vsyncadd (!%p3636_p0), %s3431_s10, 4294963200  ;;  %p16_p2 = scmp.ge.s32.totalorder %s3898_s18, 4   ;;  %s7125_s12 = smov %s3834_s13 }
 0x2e7   : > { %s7126_s13 = smov %s3838_s14  ;;  %s7127_s14 = smov %s3910_s21 }
 0x2e8   : > { %s7128_s15 = smov %s3898_s18  ;;  %18 = sbr.rel (!%p16_p2) target bundleno = 5 (0x5), region = 105 }
 0x2ef   :  { %3436 = vsyncpa [#allocation4], 1 }
 0x2f0   :  { %3438 = vsyncpa [#allocation4 + $0x1], 1 }
 0x2f1   :  { %3439 = vsyncpa [#allocation5], 1 }
 0x2f2   :  { %3441 = vsyncpa [#allocation5 + $0x1], 1 }

</bundles_post_ra>
